<compile_context>
chip_gen: v5e
topology: v5e:2x2
jax: 0.10.0
libtpu: 0.0.40
codegen_flags: <defaults>
</compile_context>

<pallas_src>
import functools

import jax
import jax.numpy as jnp
from jax.experimental import pallas as pl
from jax.experimental.pallas import tpu as pltpu


def _vae_kernel(x_ref, eps_ref,
                w1_ref, b1_ref,
                wmv_ref, bmv_ref,
                wd1_ref, bd1_ref,
                wd2_ref, bd2_ref,
                xrec_ref, stats_ref, *, z_dim):
    x = x_ref[...]

    # --- encoder ---
    h = jnp.dot(x, w1_ref[...], preferred_element_type=jnp.float32) + b1_ref[...]
    h = jnp.maximum(h, 0.0)

    # fused (mean | logvar | zero-pad) projection -> lane-dense slab
    stats = jnp.dot(h, wmv_ref[...], preferred_element_type=jnp.float32) + bmv_ref[...]
    z_mean = stats[:, :z_dim]
    z_logvar = stats[:, z_dim:2 * z_dim]

    # --- reparameterize: z = eps * exp(0.5 * logvar) + mean ---
    z = eps_ref[...] * jnp.exp(z_logvar * 0.5) + z_mean

    # --- decoder ---
    hd = jnp.dot(z, wd1_ref[...], preferred_element_type=jnp.float32) + bd1_ref[...]
    hd = jnp.maximum(hd, 0.0)
    logits = jnp.dot(hd, wd2_ref[...], preferred_element_type=jnp.float32) + bd2_ref[...]

    xrec_ref[...] = jax.nn.sigmoid(logits)
    stats_ref[...] = stats


def vae_forward(x_nchw, eps, params, *, batch_tile=128):
    """Run the VAE forward pass. x_nchw: [B, C, H, W] float32."""
    B, C, H, W = x_nchw.shape
    D = C * H * W
    x_flat = x_nchw.reshape(B, D)

    (w1, b1, wm, bm, wv, bv, wd1, bd1, wd2, bd2) = params
    Dh = w1.shape[1]
    Z = wm.shape[1]

    # Fuse mean/logvar projections into one weight padded to a lane-dense
    # multiple-of-128 output width (extra columns are zero and ignored).
    stat_w = ((max(2 * Z, 128) + 127) // 128) * 128
    wmv = jnp.zeros((Dh, stat_w), jnp.float32)
    wmv = wmv.at[:, :Z].set(wm).at[:, Z:2 * Z].set(wv)
    bmv = jnp.zeros((1, stat_w), jnp.float32)
    bmv = bmv.at[:, :Z].set(bm[0]).at[:, Z:2 * Z].set(bv[0])

    # Zero-pad the batch up to a multiple of the batch tile so every MXU pass
    # is fully populated; the pad rows are sliced off after the call.
    TB = batch_tile
    B_pad = ((B + TB - 1) // TB) * TB
    if B_pad != B:
        x_flat = jnp.pad(x_flat, ((0, B_pad - B), (0, 0)))
        eps_p = jnp.pad(eps, ((0, B_pad - B), (0, 0)))
    else:
        eps_p = eps
    grid = (B_pad // TB,)

    # Activation tiles stream along the grid; weights are VMEM-resident.
    act_x_spec = pl.BlockSpec((TB, D), lambda i: (i, 0))
    act_eps_spec = pl.BlockSpec((TB, Z), lambda i: (i, 0))
    act_stats_spec = pl.BlockSpec((TB, stat_w), lambda i: (i, 0))

    def resident(shape):
        return pl.BlockSpec(shape, lambda i: (0, 0))

    in_specs = [
        act_x_spec,                 # x
        act_eps_spec,               # eps
        resident((D, Dh)),          # w1
        resident((1, Dh)),          # b1
        resident((Dh, stat_w)),     # wmv (fused mean|logvar)
        resident((1, stat_w)),      # bmv
        resident((Z, Dh)),          # wd1
        resident((1, Dh)),          # bd1
        resident((Dh, D)),          # wd2
        resident((1, D)),           # bd2
    ]
    out_specs = (act_x_spec, act_stats_spec)

    out_shapes = (
        jax.ShapeDtypeStruct((B_pad, D), jnp.float32),        # x_recon (flat)
        jax.ShapeDtypeStruct((B_pad, stat_w), jnp.float32),   # [mean | logvar | pad]
    )

    # Advisory cost hint for XLA scheduling around the custom call.
    flops = 2 * B_pad * (D * Dh + Dh * stat_w + Z * Dh + Dh * D)
    transcendentals = B_pad * (Z + D)                         # reparam exp + sigmoid
    bytes_accessed = 4 * (
        B_pad * D * 2 + B_pad * Z + B_pad * stat_w            # activations in/out
        + D * Dh * 2 + Dh * stat_w + Z * Dh                   # weights
        + 2 * Dh + stat_w + D                                 # biases
    )
    cost = pl.CostEstimate(flops=flops,
                           transcendentals=transcendentals,
                           bytes_accessed=bytes_accessed)

    x_rec_pad, stats = pl.pallas_call(
        functools.partial(_vae_kernel, z_dim=Z),
        out_shape=out_shapes,
        grid=grid,
        in_specs=in_specs,
        out_specs=out_specs,
        compiler_params=pltpu.CompilerParams(
            dimension_semantics=("parallel",)),
        cost_estimate=cost,
    )(x_flat, eps_p, w1, b1, wmv, bmv, wd1, bd1, wd2, bd2)

    x_rec = x_rec_pad[:B].reshape(B, C, H, W)
    z_mean = stats[:B, :Z]
    z_logvar = stats[:B, Z:2 * Z]
    return x_rec, z_mean, z_logvar


def init_params(key, d_in, d_hidden, d_latent):
    """Deterministic synthetic parameter init (not a checkpoint load)."""
    ks = jax.random.split(key, 5)
    scale = 0.05
    w1 = scale * jax.random.normal(ks[0], (d_in, d_hidden), jnp.float32)
    b1 = jnp.zeros((1, d_hidden), jnp.float32)
    wm = scale * jax.random.normal(ks[1], (d_hidden, d_latent), jnp.float32)
    bm = jnp.zeros((1, d_latent), jnp.float32)
    wv = scale * jax.random.normal(ks[2], (d_hidden, d_latent), jnp.float32)
    bv = jnp.zeros((1, d_latent), jnp.float32)
    wd1 = scale * jax.random.normal(ks[3], (d_latent, d_hidden), jnp.float32)
    bd1 = jnp.zeros((1, d_hidden), jnp.float32)
    wd2 = scale * jax.random.normal(ks[4], (d_hidden, d_in), jnp.float32)
    bd2 = jnp.zeros((1, d_in), jnp.float32)
    return (w1, b1, wm, bm, wv, bv, wd1, bd1, wd2, bd2)


def _reference(x_nchw, eps, params):
    """Pure-JAX reference for correctness checking."""
    B, C, H, W = x_nchw.shape
    x = x_nchw.reshape(B, -1)
    (w1, b1, wm, bm, wv, bv, wd1, bd1, wd2, bd2) = params
    h = jnp.maximum(x @ w1 + b1, 0.0)
    z_mean = h @ wm + bm
    z_logvar = h @ wv + bv
    z = eps * jnp.exp(0.5 * z_logvar) + z_mean
    hd = jnp.maximum(z @ wd1 + bd1, 0.0)
    x_rec = jax.nn.sigmoid(hd @ wd2 + bd2)
    return x_rec.reshape(B, C, H, W), z_mean, z_logvar


if __name__ == "__main__":
    key = jax.random.PRNGKey(0)
    k_x, k_eps, k_p = jax.random.split(key, 3)

    # Small shapes consistent with the module (NCHW conv-style input).
    B, C, H, W = 2, 4, 16, 16
    D_IN = C * H * W          # 1024
    D_HIDDEN = 128
    D_LATENT = 32

    x = jax.random.normal(k_x, (B, C, H, W), jnp.float32)
    eps = jax.random.normal(k_eps, (B, D_LATENT), jnp.float32)
    params = init_params(k_p, D_IN, D_HIDDEN, D_LATENT)

    x_rec, z_mean, z_logvar = vae_forward(x, eps, params)
    jax.block_until_ready((x_rec, z_mean, z_logvar))

    # correctness check against pure-JAX reference
    x_rec_r, z_mean_r, z_logvar_r = _reference(x, eps, params)
    assert x_rec.shape == (B, C, H, W)
    assert z_mean.shape == (B, D_LATENT) and z_logvar.shape == (B, D_LATENT)
    assert jnp.allclose(x_rec, x_rec_r, atol=1e-5, rtol=1e-5)
    assert jnp.allclose(z_mean, z_mean_r, atol=1e-5, rtol=1e-5)
    assert jnp.allclose(z_logvar, z_logvar_r, atol=1e-5, rtol=1e-5)

    print("KERNEL_OK")
</pallas_src>

<mosaic_0001>
module attributes {stable_mosaic.version = 11 : i64} {
  func.func @_vae_kernel(%arg0: i32, %arg1: memref<128x1024xf32, #tpu.memory_space<vmem>>, %arg2: memref<128x32xf32, #tpu.memory_space<vmem>>, %arg3: memref<1024x128xf32, #tpu.memory_space<vmem>>, %arg4: memref<1x128xf32, #tpu.memory_space<vmem>>, %arg5: memref<128x128xf32, #tpu.memory_space<vmem>>, %arg6: memref<1x128xf32, #tpu.memory_space<vmem>>, %arg7: memref<32x128xf32, #tpu.memory_space<vmem>>, %arg8: memref<1x128xf32, #tpu.memory_space<vmem>>, %arg9: memref<128x1024xf32, #tpu.memory_space<vmem>>, %arg10: memref<1x1024xf32, #tpu.memory_space<vmem>>, %arg11: memref<128x1024xf32, #tpu.memory_space<vmem>>, %arg12: memref<128x128xf32, #tpu.memory_space<vmem>>) attributes {dimension_semantics = [#tpu.dimension_semantics<parallel>], iteration_bounds = array<i64: 1>, scalar_prefetch = 0 : i64, scratch_operands = 0 : i64, tpu.core_type = #tpu.core_type<tc>, window_params = [{transform_indices = @transform_0, window_bounds = array<i64: 128, 1024>}, {transform_indices = @transform_1, window_bounds = array<i64: 128, 32>}, {pipeline_mode = #tpu.pipeline_mode<synchronous>, transform_indices = @transform_2, window_bounds = array<i64: 1024, 128>}, {pipeline_mode = #tpu.pipeline_mode<synchronous>, transform_indices = @transform_3, window_bounds = array<i64: 1, 128>}, {pipeline_mode = #tpu.pipeline_mode<synchronous>, transform_indices = @transform_4, window_bounds = array<i64: 128, 128>}, {pipeline_mode = #tpu.pipeline_mode<synchronous>, transform_indices = @transform_5, window_bounds = array<i64: 1, 128>}, {pipeline_mode = #tpu.pipeline_mode<synchronous>, transform_indices = @transform_6, window_bounds = array<i64: 32, 128>}, {pipeline_mode = #tpu.pipeline_mode<synchronous>, transform_indices = @transform_7, window_bounds = array<i64: 1, 128>}, {pipeline_mode = #tpu.pipeline_mode<synchronous>, transform_indices = @transform_8, window_bounds = array<i64: 128, 1024>}, {pipeline_mode = #tpu.pipeline_mode<synchronous>, transform_indices = @transform_9, window_bounds = array<i64: 1, 1024>}, {transform_indices = @transform_10, window_bounds = array<i64: 128, 1024>}, {transform_indices = @transform_11, window_bounds = array<i64: 128, 128>}]} {
    %c0 = arith.constant 0 : index
    %c0_0 = arith.constant 0 : index
    %0 = vector.load %arg1[%c0, %c0_0] : memref<128x1024xf32, #tpu.memory_space<vmem>>, vector<128x1024xf32>
    %c0_1 = arith.constant 0 : index
    %c0_2 = arith.constant 0 : index
    %1 = vector.load %arg3[%c0_1, %c0_2] : memref<1024x128xf32, #tpu.memory_space<vmem>>, vector<1024x128xf32>
    %cst = arith.constant dense<0.000000e+00> : vector<128x128xf32>
    %2 = tpu.matmul %0, %1, %cst {dimension_numbers = #tpu.dot_dimension_numbers<[1], [0], [0], [1], [0, 0, 1, 1], [], []>} : vector<128x1024xf32>, vector<1024x128xf32>, vector<128x128xf32> -> vector<128x128xf32>
    %c0_3 = arith.constant 0 : index
    %c0_4 = arith.constant 0 : index
    %3 = vector.load %arg4[%c0_3, %c0_4] : memref<1x128xf32, #tpu.memory_space<vmem>>, vector<1x128xf32>
    %4 = vector.broadcast %3 : vector<1x128xf32> to vector<128x128xf32>
    %5 = arith.addf %2, %4 : vector<128x128xf32>
    %cst_5 = arith.constant 0.000000e+00 : f32
    %6 = vector.broadcast %cst_5 : f32 to vector<128x128xf32>
    %7 = arith.maximumf %5, %6 : vector<128x128xf32>
    %c0_6 = arith.constant 0 : index
    %c0_7 = arith.constant 0 : index
    %8 = vector.load %arg5[%c0_6, %c0_7] : memref<128x128xf32, #tpu.memory_space<vmem>>, vector<128x128xf32>
    %cst_8 = arith.constant dense<0.000000e+00> : vector<128x128xf32>
    %9 = tpu.matmul %7, %8, %cst_8 {dimension_numbers = #tpu.dot_dimension_numbers<[1], [0], [0], [1], [0, 0, 1, 1], [], []>} : vector<128x128xf32>, vector<128x128xf32>, vector<128x128xf32> -> vector<128x128xf32>
    %c0_9 = arith.constant 0 : index
    %c0_10 = arith.constant 0 : index
    %10 = vector.load %arg6[%c0_9, %c0_10] : memref<1x128xf32, #tpu.memory_space<vmem>>, vector<1x128xf32>
    %11 = vector.broadcast %10 : vector<1x128xf32> to vector<128x128xf32>
    %12 = arith.addf %9, %11 : vector<128x128xf32>
    %13 = vector.extract_strided_slice %12 {offsets = [0, 0], sizes = [128, 32], strides = [1, 1]} : vector<128x128xf32> to vector<128x32xf32>
    %14 = vector.extract_strided_slice %12 {offsets = [0, 32], sizes = [128, 32], strides = [1, 1]} : vector<128x128xf32> to vector<128x32xf32>
    %c0_11 = arith.constant 0 : index
    %c0_12 = arith.constant 0 : index
    %15 = vector.load %arg2[%c0_11, %c0_12] : memref<128x32xf32, #tpu.memory_space<vmem>>, vector<128x32xf32>
    %cst_13 = arith.constant 5.000000e-01 : f32
    %16 = vector.broadcast %cst_13 : f32 to vector<128x32xf32>
    %17 = arith.mulf %14, %16 : vector<128x32xf32>
    %18 = math.exp %17 : vector<128x32xf32>
    %19 = arith.mulf %15, %18 : vector<128x32xf32>
    %20 = arith.addf %19, %13 : vector<128x32xf32>
    %c0_14 = arith.constant 0 : index
    %c0_15 = arith.constant 0 : index
    %21 = vector.load %arg7[%c0_14, %c0_15] : memref<32x128xf32, #tpu.memory_space<vmem>>, vector<32x128xf32>
    %cst_16 = arith.constant dense<0.000000e+00> : vector<128x128xf32>
    %22 = tpu.matmul %20, %21, %cst_16 {dimension_numbers = #tpu.dot_dimension_numbers<[1], [0], [0], [1], [0, 0, 1, 1], [], []>} : vector<128x32xf32>, vector<32x128xf32>, vector<128x128xf32> -> vector<128x128xf32>
    %c0_17 = arith.constant 0 : index
    %c0_18 = arith.constant 0 : index
    %23 = vector.load %arg8[%c0_17, %c0_18] : memref<1x128xf32, #tpu.memory_space<vmem>>, vector<1x128xf32>
    %24 = vector.broadcast %23 : vector<1x128xf32> to vector<128x128xf32>
    %25 = arith.addf %22, %24 : vector<128x128xf32>
    %cst_19 = arith.constant 0.000000e+00 : f32
    %26 = vector.broadcast %cst_19 : f32 to vector<128x128xf32>
    %27 = arith.maximumf %25, %26 : vector<128x128xf32>
    %c0_20 = arith.constant 0 : index
    %c0_21 = arith.constant 0 : index
    %28 = vector.load %arg9[%c0_20, %c0_21] : memref<128x1024xf32, #tpu.memory_space<vmem>>, vector<128x1024xf32>
    %cst_22 = arith.constant dense<0.000000e+00> : vector<128x1024xf32>
    %29 = tpu.matmul %27, %28, %cst_22 {dimension_numbers = #tpu.dot_dimension_numbers<[1], [0], [0], [1], [0, 0, 1, 1], [], []>} : vector<128x128xf32>, vector<128x1024xf32>, vector<128x1024xf32> -> vector<128x1024xf32>
    %c0_23 = arith.constant 0 : index
    %c0_24 = arith.constant 0 : index
    %30 = vector.load %arg10[%c0_23, %c0_24] : memref<1x1024xf32, #tpu.memory_space<vmem>>, vector<1x1024xf32>
    %31 = vector.broadcast %30 : vector<1x1024xf32> to vector<128x1024xf32>
    %32 = arith.addf %29, %31 : vector<128x1024xf32>
    %33 = arith.negf %32 : vector<128x1024xf32>
    %34 = math.exp %33 : vector<128x1024xf32>
    %cst_25 = arith.constant 1.000000e+00 : f32
    %35 = vector.broadcast %cst_25 : f32 to vector<128x1024xf32>
    %36 = arith.addf %35, %34 : vector<128x1024xf32>
    %37 = arith.divf %35, %36 : vector<128x1024xf32>
    %c0_26 = arith.constant 0 : index
    %c0_27 = arith.constant 0 : index
    %38 = vector.load %arg11[%c0_26, %c0_27] : memref<128x1024xf32, #tpu.memory_space<vmem>>, vector<128x1024xf32>
    tpu.vector_store %arg11[%c0_26, %c0_27], %37 {strides = array<i32>} : memref<128x1024xf32, #tpu.memory_space<vmem>>, vector<128x1024xf32>,
    %c0_28 = arith.constant 0 : index
    %c0_29 = arith.constant 0 : index
    %39 = vector.load %arg12[%c0_28, %c0_29] : memref<128x128xf32, #tpu.memory_space<vmem>>, vector<128x128xf32>
    tpu.vector_store %arg12[%c0_28, %c0_29], %12 {strides = array<i32>} : memref<128x128xf32, #tpu.memory_space<vmem>>, vector<128x128xf32>,
    return
  }
  func.func @transform_0(%arg0: i32) -> (i32, i32) {
    %c0_i32 = arith.constant 0 : i32
    %c0_i32_0 = arith.constant 0 : i32
    return %arg0, %c0_i32 : i32, i32
  }
  func.func @transform_1(%arg0: i32) -> (i32, i32) {
    %c0_i32 = arith.constant 0 : i32
    %c0_i32_0 = arith.constant 0 : i32
    return %arg0, %c0_i32 : i32, i32
  }
  func.func @transform_2(%arg0: i32) -> (i32, i32) {
    %c0_i32 = arith.constant 0 : i32
    %c0_i32_0 = arith.constant 0 : i32
    %c0_i32_1 = arith.constant 0 : i32
    return %c0_i32, %c0_i32_0 : i32, i32
  }
  func.func @transform_3(%arg0: i32) -> (i32, i32) {
    %c0_i32 = arith.constant 0 : i32
    %c0_i32_0 = arith.constant 0 : i32
    %c0_i32_1 = arith.constant 0 : i32
    return %c0_i32, %c0_i32_0 : i32, i32
  }
  func.func @transform_4(%arg0: i32) -> (i32, i32) {
    %c0_i32 = arith.constant 0 : i32
    %c0_i32_0 = arith.constant 0 : i32
    %c0_i32_1 = arith.constant 0 : i32
    return %c0_i32, %c0_i32_0 : i32, i32
  }
  func.func @transform_5(%arg0: i32) -> (i32, i32) {
    %c0_i32 = arith.constant 0 : i32
    %c0_i32_0 = arith.constant 0 : i32
    %c0_i32_1 = arith.constant 0 : i32
    return %c0_i32, %c0_i32_0 : i32, i32
  }
  func.func @transform_6(%arg0: i32) -> (i32, i32) {
    %c0_i32 = arith.constant 0 : i32
    %c0_i32_0 = arith.constant 0 : i32
    %c0_i32_1 = arith.constant 0 : i32
    return %c0_i32, %c0_i32_0 : i32, i32
  }
  func.func @transform_7(%arg0: i32) -> (i32, i32) {
    %c0_i32 = arith.constant 0 : i32
    %c0_i32_0 = arith.constant 0 : i32
    %c0_i32_1 = arith.constant 0 : i32
    return %c0_i32, %c0_i32_0 : i32, i32
  }
  func.func @transform_8(%arg0: i32) -> (i32, i32) {
    %c0_i32 = arith.constant 0 : i32
    %c0_i32_0 = arith.constant 0 : i32
    %c0_i32_1 = arith.constant 0 : i32
    return %c0_i32, %c0_i32_0 : i32, i32
  }
  func.func @transform_9(%arg0: i32) -> (i32, i32) {
    %c0_i32 = arith.constant 0 : i32
    %c0_i32_0 = arith.constant 0 : i32
    %c0_i32_1 = arith.constant 0 : i32
    return %c0_i32, %c0_i32_0 : i32, i32
  }
  func.func @transform_10(%arg0: i32) -> (i32, i32) {
    %c0_i32 = arith.constant 0 : i32
    %c0_i32_0 = arith.constant 0 : i32
    return %arg0, %c0_i32 : i32, i32
  }
  func.func @transform_11(%arg0: i32) -> (i32, i32) {
    %c0_i32 = arith.constant 0 : i32
    %c0_i32_0 = arith.constant 0 : i32
    return %arg0, %c0_i32 : i32, i32
  }
}

</mosaic_0001>

<bundles_post_ra>
// kernel: tpu_custom_call.1
= control target key start
LH: loop header
LB: loop body
LE: loop exit
PB: predicated region body
PF: predicated region fallthrough
CT: control target
= control target key end

     0   :  { %17 = vsyncpa [#allocation3], 0  ;;  %s8124_s0 = inlined_call_operand.hbm [shape: f32[128,1024], index: 0, kind: input, shape index: {}]   ;;  %s8125_s1 = inlined_call_operand.vmem [shape: f32[128,32], index: 1, kind: input, shape index: {}]   ;;  %s8126_s2 = inlined_call_operand.hbm [shape: f32[1024,128], index: 2, kind: input, shape index: {}]   ;;  %s8127_s3 = inlined_call_operand.vmem [shape: f32[1,128], index: 3, kind: input, shape index: {}]   ;;  %s8128_s4 = inlined_call_operand.vmem [shape: f32[128,128], index: 4, kind: input, shape index: {}]   ;;  %s8129_s5 = inlined_call_operand.vmem [shape: f32[1,128], index: 5, kind: input, shape index: {}]   ;;  %s8130_s6 = inlined_call_operand.vmem [shape: f32[32,128], index: 6, kind: input, shape index: {}]   ;;  %s8131_s7 = inlined_call_operand.vmem [shape: f32[1,128], index: 7, kind: input, shape index: {}]   ;;  %s8132_s8 = inlined_call_operand.hbm [shape: f32[128,1024], index: 8, kind: input, shape index: {}]   ;;  %s8133_s9 = inlined_call_operand.hbm [shape: f32[1,1024], index: 9, kind: input, shape index: {}]   ;;  %s8134_s10 = inlined_call_operand.hbm [shape: f32[128,1024], index: 10, kind: output, shape index: {0}]   ;;  %s8135_s11 = inlined_call_operand.hbm [shape: f32[128,128], index: 11, kind: output, shape index: {1}]  }
   0x1   :  { %18 = vsyncpa [#allocation6], 0 }
   0x2   :  { %19 = vsyncpa [#allocation9], 0 }
   0x3   :  { %20 = vsyncpa [#allocation4], 0  ;;  %s41_s19 = sshll.u32 %s8126_s2, 4  ;;  %s42_s19 = int_to_ptr.hbm [resolvable:$true] %s41_s19 }
   0x4   :  { %21 = vsyncpa [#allocation12], 0  ;;  %s5449_s20 = smov [#allocation5]   ;;  %s26_s24 = sshll.u32 %s8124_s0, 4  ;;  %s27_s24 = int_to_ptr.hbm [resolvable:$true] %s26_s24 }
   0x5   :  { %s43_s21 = sshll.u32 %s5449_s20, 4  ;;  %s5450_s25 = smov 128   ;;  %s44_s21 = int_to_ptr.vmem [resolvable:$true] %s43_s21 }
   0x6   :  { %s5451_s26 = smov 8   ;;  %s5452_s27 = smov [#allocation2]  }
   0x7   :  { %49 = dma.hbm_to_vmem [thread:$0]  %s42_s19, 16384, %s44_s21, [#allocation6], %s5450_s25, %s5450_s25, %s5451_s26  }
   0x8   :  { %s28_s28 = sshll.u32 %s5452_s27, 4  ;;  %s5453_s2 = smov 1024   ;;  %s29_s28 = int_to_ptr.vmem [resolvable:$true] %s28_s28 }
   0x9   :  { %s5454_s29 = smov 64   ;;  %s64_s0 = sshll.u32 %s8132_s8, 4  ;;  %s65_s0 = int_to_ptr.hbm [resolvable:$true] %s64_s0 }
   0xa   :  { %34 = dma.hbm_to_vmem [thread:$0]  %s27_s24, 16384, %s29_s28, [#allocation3], %s5453_s2, %s5453_s2, %s5454_s29  }
   0xb   :  { %s5455_s13 = smov [#allocation7]   ;;  %s78_s17 = sshll.u32 %s8133_s9, 4  ;;  %s79_s17 = int_to_ptr.hbm [resolvable:$true] %s78_s17 }
   0xc   :  { %s66_s14 = sshll.u32 %s5455_s13, 4  ;;  %s5456_s18 = smov [#allocation8]   ;;  %s67_s14 = int_to_ptr.vmem [resolvable:$true] %s66_s14 }
   0xd   :  { %72 = dma.hbm_to_vmem [thread:$0]  %s65_s0, 16384, %s67_s14, [#allocation6], %s5453_s2, %s5453_s2, %s5454_s29  }
   0xe   :  { %s80_s19 = sshll.u32 %s5456_s18, 4  ;;  %s81_s19 = int_to_ptr.vmem [resolvable:$true] %s80_s19 }
   0xf   :  { %83 = dma.hbm_to_vmem [thread:$0]  %s79_s17, 128, %s81_s19, [#allocation9]  }
  0x10   :  { %5439 = dma.done.wait [#allocation3], 16384  }
  0x11   :  { %5440 = vsyncadd [#allocation3], 4294950912 }
  0x12   :  { %5441 = dma.done.wait [#allocation6], 32768  }
  0x13   :  { %5442 = vsyncadd [#allocation6], 4294934528 }
  0x14   :  { %5443 = dma.done.wait [#allocation9], 128  }
  0x15   :  { %5444 = vsyncadd [#allocation9], 4294967168  ;;  %v243_v0 = vld [vmem:[#allocation5 + $0x78] sm:$0xff]  ;;  %v242_v1 = vld [vmem:[#allocation5 + $0x70] sm:$0xff]  ;;  %vm1149_vm0 = vcmask 261120   ;;  %s4540_s14 = sshll.u32 %s8135_s11, 4  ;;  %s4541_s14 = int_to_ptr.hbm [resolvable:$true] %s4540_s14 }
  0x16   :  { %v259_v2 = vld [vmem:[#allocation5 + $0xf8] sm:$0xff]  ;;  %4704 = vmatpush.msra.mxu2 %v243_v0  ;;  %v258_v3 = vld [vmem:[#allocation5 + $0xf0] sm:$0xff]  ;;  %v241_v4 = vld [vmem:[#allocation5 + $0x68] sm:$0xff]  ;;  %360 = vmatpush.msra.mxu0 %v243_v0  ;;  %s5459_s11 = smov [#allocation10]   ;;  %s4527_s16 = sshll.u32 %s8134_s10, 4  ;;  %s4528_s16 = int_to_ptr.hbm [resolvable:$true] %s4527_s16 }
  0x17   :  { %4720 = vmatpush.msra.mxu3 %v259_v2  ;;  %v257_v5 = vld [vmem:[#allocation5 + $0xe8] sm:$0xff]  ;;  %425 = vmatpush.msra.mxu1 %v259_v2  ;;  %v240_v6 = vld [vmem:[#allocation5 + $0x60] sm:$0xff]  ;;  %v239_v8 = vld [vmem:[#allocation5 + $0x58] sm:$0xff] }
  0x18   :  { %4705 = vmatpush.msra.mxu2 %v242_v1  ;;  %v256_v7 = vld [vmem:[#allocation5 + $0xe0] sm:$0xff]  ;;  %361 = vmatpush.msra.mxu0 %v242_v1  ;;  %v255_v9 = vld [vmem:[#allocation5 + $0xd8] sm:$0xff]  ;;  %v238_v10 = vld [vmem:[#allocation5 + $0x50] sm:$0xff] }
  0x19   :  { %4721 = vmatpush.msra.mxu3 %v258_v3  ;;  %426 = vmatpush.msra.mxu1 %v258_v3  ;;  %v254_v11 = vld [vmem:[#allocation5 + $0xd0] sm:$0xff]  ;;  %v237_v12 = vld [vmem:[#allocation5 + $0x48] sm:$0xff]  ;;  %v236_v14 = vld [vmem:[#allocation5 + $0x40] sm:$0xff] }
  0x1a   :  { %4706 = vmatpush.msra.mxu2 %v241_v4  ;;  %362 = vmatpush.msra.mxu0 %v241_v4  ;;  %v253_v13 = vld [vmem:[#allocation5 + $0xc8] sm:$0xff]  ;;  %v252_v15 = vld [vmem:[#allocation5 + $0xc0] sm:$0xff]  ;;  %v235_v16 = vld [vmem:[#allocation5 + $0x38] sm:$0xff] }
  0x1b   :  { %4722 = vmatpush.msra.mxu3 %v257_v5  ;;  %427 = vmatpush.msra.mxu1 %v257_v5  ;;  %v251_v17 = vld [vmem:[#allocation5 + $0xb8] sm:$0xff]  ;;  %v234_v18 = vld [vmem:[#allocation5 + $0x30] sm:$0xff]  ;;  %v233_v20 = vld [vmem:[#allocation5 + $0x28] sm:$0xff] }
  0x1c   :  { %4707 = vmatpush.msra.mxu2 %v240_v6  ;;  %363 = vmatpush.msra.mxu0 %v240_v6  ;;  %v250_v19 = vld [vmem:[#allocation5 + $0xb0] sm:$0xff]  ;;  %v249_v21 = vld [vmem:[#allocation5 + $0xa8] sm:$0xff]  ;;  %v232_v22 = vld [vmem:[#allocation5 + $0x20] sm:$0xff] }
  0x1d   :  { %4723 = vmatpush.msra.mxu3 %v256_v7  ;;  %428 = vmatpush.msra.mxu1 %v256_v7  ;;  %v248_v23 = vld [vmem:[#allocation5 + $0xa0] sm:$0xff]  ;;  %v231_v24 = vld [vmem:[#allocation5 + $0x18] sm:$0xff]  ;;  %v230_v26 = vld [vmem:[#allocation5 + $0x10] sm:$0xff] }
  0x1e   :  { %4708 = vmatpush.msra.mxu2 %v239_v8  ;;  %364 = vmatpush.msra.mxu0 %v239_v8  ;;  %v247_v25 = vld [vmem:[#allocation5 + $0x98] sm:$0xff]  ;;  %v246_v27 = vld [vmem:[#allocation5 + $0x90] sm:$0xff]  ;;  %v229_v28 = vld [vmem:[#allocation5 + $0x8] sm:$0xff] }
  0x1f   :  { %4724 = vmatpush.msra.mxu3 %v255_v9  ;;  %429 = vmatpush.msra.mxu1 %v255_v9  ;;  %v245_v29 = vld [vmem:[#allocation5 + $0x88] sm:$0xff]  ;;  %v228_v30 = vld [vmem:[#allocation5] sm:$0xff]  ;;  %v275_v34 = vld [vmem:[#allocation5 + $0x178] sm:$0xff] }
  0x20   :  { %4709 = vmatpush.msra.mxu2 %v238_v10  ;;  %365 = vmatpush.msra.mxu0 %v238_v10  ;;  %v244_v31 = vld [vmem:[#allocation5 + $0x80] sm:$0xff]  ;;  %v165_v33 = vld [vmem:[#allocation2 + $0x208] sm:$0xff]  ;;  %v291_v35 = vld [vmem:[#allocation5 + $0x1f8] sm:$0xff] }
  0x21   :  { %4725 = vmatpush.msra.mxu3 %v254_v11  ;;  %430 = vmatpush.msra.mxu1 %v254_v11  ;;  %v164_v32 = vld [vmem:[#allocation2 + $0x200] sm:$0xff]  ;;  %v274_v36 = vld [vmem:[#allocation5 + $0x170] sm:$0xff]  ;;  %v101_v39 = vld [vmem:[#allocation2 + $0x8] sm:$0xff] }
  0x22   :  { %4710 = vmatpush.msra.mxu2 %v237_v12  ;;  %366 = vmatpush.msra.mxu0 %v237_v12  ;;  %v290_v37 = vld [vmem:[#allocation5 + $0x1f0] sm:$0xff]  ;;  %v100_v38 = vld [vmem:[#allocation2] sm:$0xff]  ;;  %v273_v40 = vld [vmem:[#allocation5 + $0x168] sm:$0xff] }
  0x23   :  { %4726 = vmatpush.msra.mxu3 %v253_v13  ;;  %431 = vmatpush.msra.mxu1 %v253_v13  ;;  %v289_v41 = vld [vmem:[#allocation5 + $0x1e8] sm:$0xff]  ;;  %v272_v42 = vld [vmem:[#allocation5 + $0x160] sm:$0xff]  ;;  %v271_v46 = vld [vmem:[#allocation5 + $0x158] sm:$0xff] }
  0x24   :  { %4711 = vmatpush.msra.mxu2 %v236_v14  ;;  %367 = vmatpush.msra.mxu0 %v236_v14  ;;  %v288_v43 = vld [vmem:[#allocation5 + $0x1e0] sm:$0xff]  ;;  %v173_v45 = vld [vmem:[#allocation2 + $0x248] sm:$0xff]  ;;  %v287_v47 = vld [vmem:[#allocation5 + $0x1d8] sm:$0xff] }
  0x25   :  { %4727 = vmatpush.msra.mxu3 %v252_v15  ;;  %432 = vmatpush.msra.mxu1 %v252_v15  ;;  %v172_v44 = vld [vmem:[#allocation2 + $0x240] sm:$0xff]  ;;  %v270_v48 = vld [vmem:[#allocation5 + $0x150] sm:$0xff]  ;;  %v109_v51 = vld [vmem:[#allocation2 + $0x48] sm:$0xff] }
  0x26   :  { %4712 = vmatpush.msra.mxu2 %v235_v16  ;;  %368 = vmatpush.msra.mxu0 %v235_v16  ;;  %v286_v49 = vld [vmem:[#allocation5 + $0x1d0] sm:$0xff]  ;;  %v108_v50 = vld [vmem:[#allocation2 + $0x40] sm:$0xff]  ;;  %v307_v52 = vld [vmem:[#allocation5 + $0x278] sm:$0xff] }
  0x27   :  { %4728 = vmatpush.msra.mxu3 %v251_v17  ;;  %433 = vmatpush.msra.mxu1 %v251_v17  ;;  %v269_v53 = vld [vmem:[#allocation5 + $0x148] sm:$0xff]  ;;  %v306_v55 = vld [vmem:[#allocation5 + $0x270] sm:$0xff]  ;;  %v323_v56 = vld [vmem:[#allocation5 + $0x2f8] sm:$0xff] }
  0x28   :  { %4713 = vmatpush.msra.mxu2 %v234_v18  ;;  %369 = vmatpush.msra.mxu0 %v234_v18  ;;  %v285_v54 = vld [vmem:[#allocation5 + $0x1c8] sm:$0xff]  ;;  %v268_v57 = vld [vmem:[#allocation5 + $0x140] sm:$0xff]  ;;  %v267_v61 = vld [vmem:[#allocation5 + $0x138] sm:$0xff] }
  0x29   :  { %4729 = vmatpush.msra.mxu3 %v250_v19  ;;  %434 = vmatpush.msra.mxu1 %v250_v19  ;;  %v284_v58 = vld [vmem:[#allocation5 + $0x1c0] sm:$0xff]  ;;  %v181_v60 = vld [vmem:[#allocation2 + $0x288] sm:$0xff]  ;;  %v283_v62 = vld [vmem:[#allocation5 + $0x1b8] sm:$0xff] }
  0x2a   :  { %4714 = vmatpush.msra.mxu2 %v233_v20  ;;  %370 = vmatpush.msra.mxu0 %v233_v20  ;;  %v180_v59 = vld [vmem:[#allocation2 + $0x280] sm:$0xff]  ;;  %v305_v63 = vld [vmem:[#allocation5 + $0x268] sm:$0xff]  ;;  %v322_v0 = vld [vmem:[#allocation5 + $0x2f0] sm:$0xff] }
  0x2b   :  { %4730 = vmatpush.msra.mxu3 %v249_v21  ;;  %435 = vmatpush.msra.mxu1 %v249_v21  ;;  %v266_v1 = vld [vmem:[#allocation5 + $0x130] sm:$0xff]  ;;  %v116_v3 = vld [vmem:[#allocation2 + $0x80] sm:$0xff]  ;;  %v117_v4 = vld [vmem:[#allocation2 + $0x88] sm:$0xff] }
  0x2c   :  { %4715 = vmatpush.msra.mxu2 %v232_v22  ;;  %371 = vmatpush.msra.mxu0 %v232_v22  ;;  %v282_v2 = vld [vmem:[#allocation5 + $0x1b0] sm:$0xff]  ;;  %v265_v5 = vld [vmem:[#allocation5 + $0x128] sm:$0xff]  ;;  %v304_v7 = vld [vmem:[#allocation5 + $0x260] sm:$0xff] }
  0x2d   :  { %4731 = vmatpush.msra.mxu3 %v248_v23  ;;  %436 = vmatpush.msra.mxu1 %v248_v23  ;;  %v281_v6 = vld [vmem:[#allocation5 + $0x1a8] sm:$0xff]  ;;  %v264_v9 = vld [vmem:[#allocation5 + $0x120] sm:$0xff]  ;;  %v263_v13 = vld [vmem:[#allocation5 + $0x118] sm:$0xff] }
  0x2e   :  { %4716 = vmatpush.msra.mxu2 %v231_v24  ;;  %372 = vmatpush.msra.mxu0 %v231_v24  ;;  %v321_v8 = vld [vmem:[#allocation5 + $0x2e8] sm:$0xff]  ;;  %v280_v10 = vld [vmem:[#allocation5 + $0x1a0] sm:$0xff]  ;;  %v279_v14 = vld [vmem:[#allocation5 + $0x198] sm:$0xff] }
  0x2f   :  { %4732 = vmatpush.msra.mxu3 %v247_v25  ;;  %437 = vmatpush.msra.mxu1 %v247_v25  ;;  %v188_v11 = vld [vmem:[#allocation2 + $0x2c0] sm:$0xff]  ;;  %v189_v12 = vld [vmem:[#allocation2 + $0x2c8] sm:$0xff]  ;;  %v303_v15 = vld [vmem:[#allocation5 + $0x258] sm:$0xff] }
  0x30   :  { %4717 = vmatpush.msra.mxu2 %v230_v26  ;;  %373 = vmatpush.msra.mxu0 %v230_v26  ;;  %v320_v16 = vld [vmem:[#allocation5 + $0x2e0] sm:$0xff]  ;;  %v262_v17 = vld [vmem:[#allocation5 + $0x110] sm:$0xff]  ;;  %v125_v20 = vld [vmem:[#allocation2 + $0xc8] sm:$0xff] }
  0x31   :  { %4733 = vmatpush.msra.mxu3 %v246_v27  ;;  %438 = vmatpush.msra.mxu1 %v246_v27  ;;  %v278_v18 = vld [vmem:[#allocation5 + $0x190] sm:$0xff]  ;;  %v124_v19 = vld [vmem:[#allocation2 + $0xc0] sm:$0xff]  ;;  %v319_v22 = vld [vmem:[#allocation5 + $0x2d8] sm:$0xff] }
  0x32   :  { %4718 = vmatpush.msra.mxu2 %v229_v28  ;;  %374 = vmatpush.msra.mxu0 %v229_v28  ;;  %v302_v21 = vld [vmem:[#allocation5 + $0x250] sm:$0xff]  ;;  %v261_v23 = vld [vmem:[#allocation5 + $0x108] sm:$0xff]  ;;  %v196_v27 = vld [vmem:[#allocation2 + $0x300] sm:$0xff] }
  0x33   :  { %4734 = vmatpush.msra.mxu3 %v245_v29  ;;  %439 = vmatpush.msra.mxu1 %v245_v29  ;;  %v277_v24 = vld [vmem:[#allocation5 + $0x188] sm:$0xff]  ;;  %v318_v26 = vld [vmem:[#allocation5 + $0x2d0] sm:$0xff]  ;;  %v300_v29 = vld [vmem:[#allocation5 + $0x240] sm:$0xff] }
  0x34   :  { %4719 = vmatpush.msra.mxu2 %v228_v30  ;;  %375 = vmatpush.msra.mxu0 %v228_v30  ;;  %v301_v25 = vld [vmem:[#allocation5 + $0x248] sm:$0xff] }
  0x35   :  { %4735 = vmatpush.msra.mxu3 %v244_v31  ;;  %400 = vmatmul.f32.vlgmr.msra.gmra.mxu2 %v164_v32  ;;  %v197_v28 = vld [vmem:[#allocation2 + $0x308] sm:$0xff]  ;;  %v276_v32 = vld [vmem:[#allocation5 + $0x180] sm:$0xff] }
  0x36   :  { %465 = vmatmul.f32.vlgmr.msra.gmra.mxu3 %v165_v33  ;;  %490 = vmatpush.msrb.mxu2 %v275_v34  ;;  %v317_v30 = vld [vmem:[#allocation5 + $0x2c8] sm:$0xff]  ;;  %v299_v33 = vld [vmem:[#allocation5 + $0x238] sm:$0xff]  ;;  %v316_v34 = vld [vmem:[#allocation5 + $0x2c0] sm:$0xff] }
  0x37   :  { %555 = vmatpush.msrb.mxu3 %v291_v35  ;;  %440 = vmatpush.msra.mxu1 %v244_v31  ;;  %v260_v31 = vld [vmem:[#allocation5 + $0x100] sm:$0xff] }
  0x38   :  { %491 = vmatpush.msrb.mxu2 %v274_v36  ;;  %376 = vmatmul.f32.vlgmr.msra.gmra.mxu0 %v100_v38  ;;  %v132_v35 = vld [vmem:[#allocation2 + $0x100] sm:$0xff]  ;;  %v133_v36 = vld [vmem:[#allocation2 + $0x108] sm:$0xff]  ;;  %v315_v38 = vld [vmem:[#allocation5 + $0x2b8] sm:$0xff] }
  0x39   :  { %556 = vmatpush.msrb.mxu3 %v290_v37  ;;  %441 = vmatmul.f32.vlgmr.msra.gmra.mxu1 %v101_v39  ;;  %v298_v37 = vld [vmem:[#allocation5 + $0x230] sm:$0xff]  ;;  %v339_v39 = vld [vmem:[#allocation5 + $0x378] sm:$0xff] }
  0x3a   :  { %492 = vmatpush.msrb.mxu2 %v273_v40  ;;  %620 = vmatpush.msrb.mxu0 %v307_v52  ;;  %v355_v40 = vld [vmem:[#allocation5 + $0x3f8] sm:$0xff]  ;;  %v354_v52 = vld [vmem:[#allocation5 + $0x3f0] sm:$0xff] }
  0x3b   :  { %557 = vmatpush.msrb.mxu3 %v289_v41  ;;  %685 = vmatpush.msrb.mxu1 %v323_v56  ;;  %v297_v41 = vld [vmem:[#allocation5 + $0x228] sm:$0xff]  ;;  %v310_v56 = vld [vmem:[#allocation5 + $0x290] sm:$0xff] }
  0x3c   :  { %493 = vmatpush.msrb.mxu2 %v272_v42  ;;  %621 = vmatpush.msrb.mxu0 %v306_v55  ;;  %v314_v42 = vld [vmem:[#allocation5 + $0x2b0] sm:$0xff]  ;;  %v293_v55 = vld [vmem:[#allocation5 + $0x208] sm:$0xff] }
  0x3d   :  { %558 = vmatpush.msrb.mxu3 %v288_v43  ;;  %403 = vmatmul.f32.gmra.mxu2 %v172_v44  ;;  %v204_v43 = vld [vmem:[#allocation2 + $0x340] sm:$0xff]  ;;  %v205_v44 = vld [vmem:[#allocation2 + $0x348] sm:$0xff] }
  0x3e   :  { %468 = vmatmul.f32.gmra.mxu3 %v173_v45  ;;  %494 = vmatpush.msrb.mxu2 %v271_v46  ;;  %v296_v45 = vld [vmem:[#allocation5 + $0x220] sm:$0xff]  ;;  %v313_v46 = vld [vmem:[#allocation5 + $0x2a8] sm:$0xff] }
  0x3f   :  { %559 = vmatpush.msrb.mxu3 %v287_v47  ;;  %622 = vmatpush.msrb.mxu0 %v305_v63  ;;  %v295_v47 = vld [vmem:[#allocation5 + $0x218] sm:$0xff]  ;;  %v148_v63 = vld [vmem:[#allocation2 + $0x180] sm:$0xff] }
  0x40   :  { %495 = vmatpush.msrb.mxu2 %v270_v48  ;;  %379 = vmatmul.f32.gmra.mxu0 %v108_v50  ;;  %v312_v48 = vld [vmem:[#allocation5 + $0x2a0] sm:$0xff] }
  0x41   :  { %560 = vmatpush.msrb.mxu3 %v286_v49  ;;  %444 = vmatmul.f32.gmra.mxu1 %v109_v51  ;;  %v338_v49 = vld [vmem:[#allocation5 + $0x370] sm:$0xff]  ;;  %v140_v50 = vld [vmem:[#allocation2 + $0x140] sm:$0xff]  ;;  %v141_v51 = vld [vmem:[#allocation2 + $0x148] sm:$0xff] }
  0x42   :  { %496 = vmatpush.msrb.mxu2 %v269_v53  ;;  %686 = vmatpush.msrb.mxu1 %v322_v0  ;;  %v294_v53 = vld [vmem:[#allocation5 + $0x210] sm:$0xff]  ;;  %v149_v0 = vld [vmem:[#allocation2 + $0x188] sm:$0xff] }
  0x43   :  { %561 = vmatpush.msrb.mxu3 %v285_v54  ;;  %623 = vmatpush.msrb.mxu0 %v304_v7  ;;  %v311_v54 = vld [vmem:[#allocation5 + $0x298] sm:$0xff]  ;;  %v352_v7 = vld [vmem:[#allocation5 + $0x3e0] sm:$0xff] }
  0x44   :  { %497 = vmatpush.msrb.mxu2 %v268_v57  ;;  %687 = vmatpush.msrb.mxu1 %v321_v8  ;;  %v212_v57 = vld [vmem:[#allocation2 + $0x380] sm:$0xff]  ;;  %v102_v8 = vld [vmem:[#allocation2 + $0x10] sm:$0xff] }
  0x45   :  { %562 = vmatpush.msrb.mxu3 %v284_v58  ;;  %406 = vmatmul.f32.gmra.mxu2 %v180_v59  ;;  %v213_v58 = vld [vmem:[#allocation2 + $0x388] sm:$0xff]  ;;  %v292_v59 = vld [vmem:[#allocation5 + $0x200] sm:$0xff] }
  0x46   :  { %471 = vmatmul.f32.gmra.mxu3 %v181_v60  ;;  %498 = vmatpush.msrb.mxu2 %v267_v61  ;;  %v309_v60 = vld [vmem:[#allocation5 + $0x288] sm:$0xff]  ;;  %v308_v61 = vld [vmem:[#allocation5 + $0x280] sm:$0xff] }
  0x47   :  { %563 = vmatpush.msrb.mxu3 %v283_v62  ;;  %624 = vmatpush.msrb.mxu0 %v303_v15  ;;  %v337_v62 = vld [vmem:[#allocation5 + $0x368] sm:$0xff]  ;;  %v111_v15 = vld [vmem:[#allocation2 + $0x58] sm:$0xff] }
  0x48   :  { %499 = vmatpush.msrb.mxu2 %v266_v1  ;;  %382 = vmatmul.f32.gmra.mxu0 %v116_v3  ;;  %v353_v1 = vld [vmem:[#allocation5 + $0x3e8] sm:$0xff] }
  0x49   :  { %564 = vmatpush.msrb.mxu3 %v282_v2  ;;  %447 = vmatmul.f32.gmra.mxu1 %v117_v4  ;;  %v220_v2 = vld [vmem:[#allocation2 + $0x3c0] sm:$0xff]  ;;  %v221_v3 = vld [vmem:[#allocation2 + $0x3c8] sm:$0xff] }
  0x4a   :  { %500 = vmatpush.msrb.mxu2 %v265_v5  ;;  %688 = vmatpush.msrb.mxu1 %v320_v16  ;;  %v336_v4 = vld [vmem:[#allocation5 + $0x360] sm:$0xff]  ;;  %v334_v16 = vld [vmem:[#allocation5 + $0x350] sm:$0xff] }
  0x4b   :  { %565 = vmatpush.msrb.mxu3 %v281_v6  ;;  %625 = vmatpush.msrb.mxu0 %v302_v21  ;;  %v156_v5 = vld [vmem:[#allocation2 + $0x1c0] sm:$0xff]  ;;  %v157_v6 = vld [vmem:[#allocation2 + $0x1c8] sm:$0xff]  ;;  %v119_v21 = vld [vmem:[#allocation2 + $0x98] sm:$0xff] }
  0x4c   :  { %501 = vmatpush.msrb.mxu2 %v264_v9  ;;  %689 = vmatpush.msrb.mxu1 %v319_v22  ;;  %v103_v9 = vld [vmem:[#allocation2 + $0x18] sm:$0xff]  ;;  %v333_v22 = vld [vmem:[#allocation5 + $0x348] sm:$0xff] }
  0x4d   :  { %566 = vmatpush.msrb.mxu3 %v280_v10  ;;  %409 = vmatmul.f32.gmra.mxu2 %v188_v11  ;;  %v335_v10 = vld [vmem:[#allocation5 + $0x358] sm:$0xff]  ;;  %v104_v11 = vld [vmem:[#allocation2 + $0x20] sm:$0xff] }
  0x4e   :  { %474 = vmatmul.f32.gmra.mxu3 %v189_v12  ;;  %502 = vmatpush.msrb.mxu2 %v263_v13  ;;  %v105_v12 = vld [vmem:[#allocation2 + $0x28] sm:$0xff]  ;;  %v351_v13 = vld [vmem:[#allocation5 + $0x3d8] sm:$0xff] }
  0x4f   :  { %567 = vmatpush.msrb.mxu3 %v279_v14  ;;  %626 = vmatpush.msrb.mxu0 %v301_v25  ;;  %v110_v14 = vld [vmem:[#allocation2 + $0x50] sm:$0xff]  ;;  %v349_v25 = vld [vmem:[#allocation5 + $0x3c8] sm:$0xff] }
  0x50   :  { %503 = vmatpush.msrb.mxu2 %v262_v17  ;;  %385 = vmatmul.f32.gmra.mxu0 %v124_v19  ;;  %v112_v17 = vld [vmem:[#allocation2 + $0x60] sm:$0xff]  ;;  %v350_v19 = vld [vmem:[#allocation5 + $0x3d0] sm:$0xff] }
  0x51   :  { %568 = vmatpush.msrb.mxu3 %v278_v18  ;;  %450 = vmatmul.f32.gmra.mxu1 %v125_v20  ;;  %v113_v18 = vld [vmem:[#allocation2 + $0x68] sm:$0xff]  ;;  %v118_v20 = vld [vmem:[#allocation2 + $0x90] sm:$0xff] }
  0x52   :  { %504 = vmatpush.msrb.mxu2 %v261_v23  ;;  %690 = vmatpush.msrb.mxu1 %v318_v26  ;;  %v120_v23 = vld [vmem:[#allocation2 + $0xa0] sm:$0xff]  ;;  %v126_v26 = vld [vmem:[#allocation2 + $0xd0] sm:$0xff] }
  0x53   :  { %569 = vmatpush.msrb.mxu3 %v277_v24  ;;  %627 = vmatpush.msrb.mxu0 %v300_v29  ;;  %v121_v24 = vld [vmem:[#allocation2 + $0xa8] sm:$0xff]  ;;  %v128_v29 = vld [vmem:[#allocation2 + $0xe0] sm:$0xff] }
  0x54   :  { %691 = vmatpush.msrb.mxu1 %v317_v30  ;;  %505 = vmatpush.msrb.mxu2 %v260_v31  ;;  %v129_v30 = vld [vmem:[#allocation2 + $0xe8] sm:$0xff]  ;;  %v348_v31 = vld [vmem:[#allocation5 + $0x3c0] sm:$0xff] }
  0x55   :  { %412 = vmatmul.f32.gmra.mxu2 %v196_v27  ;;  %570 = vmatpush.msrb.mxu3 %v276_v32  ;;  %v127_v27 = vld [vmem:[#allocation2 + $0xd8] sm:$0xff]  ;;  %v134_v32 = vld [vmem:[#allocation2 + $0x110] sm:$0xff] }
  0x56   :  { %477 = vmatmul.f32.gmra.mxu3 %v197_v28  ;;  %628 = vmatpush.msrb.mxu0 %v299_v33  ;;  %v332_v28 = vld [vmem:[#allocation5 + $0x340] sm:$0xff]  ;;  %v135_v33 = vld [vmem:[#allocation2 + $0x118] sm:$0xff] }
  0x57   :  { %692 = vmatpush.msrb.mxu1 %v316_v34  ;;  %750 = vmatpush.msra.mxu2 %v339_v39  ;;  %v331_v34 = vld [vmem:[#allocation5 + $0x338] sm:$0xff] }
  0x58   :  { %388 = vmatmul.f32.gmra.mxu0 %v132_v35  ;;  %815 = vmatpush.msra.mxu3 %v355_v40  ;;  %v136_v35 = vld [vmem:[#allocation2 + $0x120] sm:$0xff]  ;;  %v143_v39 = vld [vmem:[#allocation2 + $0x158] sm:$0xff]  ;;  %v330_v40 = vld [vmem:[#allocation5 + $0x330] sm:$0xff] }
  0x59   :  { %453 = vmatmul.f32.gmra.mxu1 %v133_v36  ;;  %629 = vmatpush.msrb.mxu0 %v298_v37  ;;  %v137_v36 = vld [vmem:[#allocation2 + $0x128] sm:$0xff]  ;;  %v347_v37 = vld [vmem:[#allocation5 + $0x3b8] sm:$0xff] }
  0x5a   :  { %693 = vmatpush.msrb.mxu1 %v315_v38  ;;  %751 = vmatpush.msra.mxu2 %v338_v49  ;;  %v142_v38 = vld [vmem:[#allocation2 + $0x150] sm:$0xff]  ;;  %v345_v49 = vld [vmem:[#allocation5 + $0x3a8] sm:$0xff] }
  0x5b   :  { %630 = vmatpush.msrb.mxu0 %v297_v41  ;;  %816 = vmatpush.msra.mxu3 %v354_v52  ;;  %v144_v41 = vld [vmem:[#allocation2 + $0x160] sm:$0xff] }
  0x5c   :  { %694 = vmatpush.msrb.mxu1 %v314_v42  ;;  %752 = vmatpush.msra.mxu2 %v337_v62  ;;  %v145_v42 = vld [vmem:[#allocation2 + $0x168] sm:$0xff]  ;;  %v328_v52 = vld [vmem:[#allocation5 + $0x320] sm:$0xff]  ;;  %v343_v62 = vld [vmem:[#allocation5 + $0x398] sm:$0xff] }
  0x5d   :  { %415 = vmatmul.f32.gmra.mxu2 %v204_v43  ;;  %631 = vmatpush.msrb.mxu0 %v296_v45  ;;  %v346_v43 = vld [vmem:[#allocation5 + $0x3b0] sm:$0xff]  ;;  %v151_v45 = vld [vmem:[#allocation2 + $0x198] sm:$0xff] }
  0x5e   :  { %480 = vmatmul.f32.gmra.mxu3 %v205_v44  ;;  %695 = vmatpush.msrb.mxu1 %v313_v46  ;;  %v150_v44 = vld [vmem:[#allocation2 + $0x190] sm:$0xff]  ;;  %v329_v46 = vld [vmem:[#allocation5 + $0x328] sm:$0xff] }
  0x5f   :  { %632 = vmatpush.msrb.mxu0 %v295_v47  ;;  %817 = vmatpush.msra.mxu3 %v353_v1  ;;  %v152_v47 = vld [vmem:[#allocation2 + $0x1a0] sm:$0xff] }
  0x60   :  { %696 = vmatpush.msrb.mxu1 %v312_v48  ;;  %391 = vmatmul.f32.gmra.mxu0 %v140_v50  ;;  %v153_v48 = vld [vmem:[#allocation2 + $0x1a8] sm:$0xff]  ;;  %v158_v50 = vld [vmem:[#allocation2 + $0x1d0] sm:$0xff] }
  0x61   :  { %456 = vmatmul.f32.gmra.mxu1 %v141_v51  ;;  %633 = vmatpush.msrb.mxu0 %v294_v53  ;;  %v159_v51 = vld [vmem:[#allocation2 + $0x1d8] sm:$0xff]  ;;  %v160_v53 = vld [vmem:[#allocation2 + $0x1e0] sm:$0xff] }
  0x62   :  { %697 = vmatpush.msrb.mxu1 %v311_v54  ;;  %753 = vmatpush.msra.mxu2 %v336_v4  ;;  %v161_v54 = vld [vmem:[#allocation2 + $0x1e8] sm:$0xff] }
  0x63   :  { %634 = vmatpush.msrb.mxu0 %v293_v55  ;;  %818 = vmatpush.msra.mxu3 %v352_v7  ;;  %v344_v55 = vld [vmem:[#allocation5 + $0x3a0] sm:$0xff]  ;;  %v177_v7 = vld [vmem:[#allocation2 + $0x268] sm:$0xff] }
  0x64   :  { %698 = vmatpush.msrb.mxu1 %v310_v56  ;;  %754 = vmatpush.msra.mxu2 %v335_v10  ;;  %v166_v56 = vld [vmem:[#allocation2 + $0x210] sm:$0xff] }
  0x65   :  { %418 = vmatmul.f32.gmra.mxu2 %v212_v57  ;;  %635 = vmatpush.msrb.mxu0 %v292_v59  ;;  %v167_v57 = vld [vmem:[#allocation2 + $0x218] sm:$0xff] }
  0x66   :  { %483 = vmatmul.f32.gmra.mxu3 %v213_v58  ;;  %699 = vmatpush.msrb.mxu1 %v309_v60  ;;  %v5544_v58 = vld [vmem:[%s8127_s3] ss:$0 sm:$0xff]  ;;  %v327_v59 = vld [vmem:[#allocation5 + $0x318] sm:$0xff] }
  0x67   :  { %819 = vmatpush.msra.mxu3 %v351_v13  ;;  %755 = vmatpush.msra.mxu2 %v334_v16  ;;  %v168_v60 = vld [vmem:[#allocation2 + $0x220] sm:$0xff]  ;;  %v183_v13 = vld [vmem:[#allocation2 + $0x298] sm:$0xff] }
  0x68   :  { %700 = vmatpush.msrb.mxu1 %v308_v61  ;;  %394 = vmatmul.f32.gmra.mxu0 %v148_v63  ;;  %v169_v61 = vld [vmem:[#allocation2 + $0x228] sm:$0xff]  ;;  %v184_v16 = vld [vmem:[#allocation2 + $0x2a0] sm:$0xff] }
  0x69   :  { %459 = vmatmul.f32.gmra.mxu1 %v149_v0  ;;  %820 = vmatpush.msra.mxu3 %v350_v19 }
  0x6a   :  { %756 = vmatpush.msra.mxu2 %v333_v22  ;;  %v190_v22 = vld [vmem:[#allocation2 + $0x2d0] sm:$0xff] }
  0x6b   :  { %821 = vmatpush.msra.mxu3 %v349_v25  ;;  %v324_v25 = vld [vmem:[#allocation5 + $0x300] sm:$0xff] }
  0x6c   :  { %757 = vmatpush.msra.mxu2 %v332_v28  ;;  %v340_v28 = vld [vmem:[#allocation5 + $0x380] sm:$0xff] }
  0x6d   :  { %421 = vmatmul.f32.gmra.mxu2 %v220_v2  ;;  %822 = vmatpush.msra.mxu3 %v348_v31  ;;  %v174_v2 = vld [vmem:[#allocation2 + $0x250] sm:$0xff] }
  0x6e   :  { %486 = vmatmul.f32.gmra.mxu3 %v221_v3  ;;  %758 = vmatpush.msra.mxu2 %v331_v34  ;;  %v175_v3 = vld [vmem:[#allocation2 + $0x258] sm:$0xff] }
  0x6f   :  { %823 = vmatpush.msra.mxu3 %v347_v37 }
  0x70   :  { %397 = vmatmul.f32.gmra.mxu0 %v156_v5  ;;  %759 = vmatpush.msra.mxu2 %v330_v40  ;;  %v326_v5 = vld [vmem:[#allocation5 + $0x310] sm:$0xff] }
  0x71   :  { %462 = vmatmul.f32.gmra.mxu1 %v157_v6  ;;  %824 = vmatpush.msra.mxu3 %v346_v43  ;;  %v176_v6 = vld [vmem:[#allocation2 + $0x260] sm:$0xff]  ;;  %v206_v40 = vld [vmem:[#allocation2 + $0x350] sm:$0xff] }
  0x72   :  { %760 = vmatpush.msra.mxu2 %v329_v46  ;;  %v208_v43 = vld [vmem:[#allocation2 + $0x360] sm:$0xff] }
  0x73   :  { %825 = vmatpush.msra.mxu3 %v345_v49 }
  0x74   :  { %761 = vmatpush.msra.mxu2 %v328_v52 }
  0x75   :  { %506 = vmatmul.f32.vlgmr.msrb.gmra.mxu2 %v102_v8  ;;  %826 = vmatpush.msra.mxu3 %v344_v55  ;;  %v342_v8 = vld [vmem:[#allocation5 + $0x390] sm:$0xff]  ;;  %v217_v55 = vld [vmem:[#allocation2 + $0x3a8] sm:$0xff] }
  0x76   :  { %571 = vmatmul.f32.vlgmr.msrb.gmra.mxu3 %v103_v9  ;;  %762 = vmatpush.msra.mxu2 %v327_v59 }
  0x77   :  { %827 = vmatpush.msra.mxu3 %v343_v62  ;;  %v223_v62 = vld [vmem:[#allocation2 + $0x3d8] sm:$0xff] }
  0x78   :  { %636 = vmatmul.f32.vlgmr.msrb.gmra.mxu0 %v104_v11  ;;  %763 = vmatpush.msra.mxu2 %v326_v5  ;;  %v909_v5 = vld [vmem:[%s8128_s4 + $0x68] sm:$0xff] }
  0x79   :  { %701 = vmatmul.f32.vlgmr.msrb.gmra.mxu1 %v105_v12  ;;  %828 = vmatpush.msra.mxu3 %v342_v8  ;;  %v182_v12 = vld [vmem:[#allocation2 + $0x290] sm:$0xff] }
  0x7d   :  { %509 = vmatmul.f32.gmra.mxu2 %v110_v14 }
  0x7e   :  { %574 = vmatmul.f32.gmra.mxu3 %v111_v15  ;;  %v325_v15 = vld [vmem:[#allocation5 + $0x308] sm:$0xff] }
  0x7f   :  { %764 = vmatpush.msra.mxu2 %v325_v15 }
  0x80   :  { %639 = vmatmul.f32.gmra.mxu0 %v112_v17  ;;  %v185_v17 = vld [vmem:[#allocation2 + $0x2a8] sm:$0xff] }
  0x81   :  { %704 = vmatmul.f32.gmra.mxu1 %v113_v18  ;;  %v341_v18 = vld [vmem:[#allocation5 + $0x388] sm:$0xff]  ;;  %765 = vmatpush.msra.mxu2 %v324_v25 }
  0x82   :  { %829 = vmatpush.msra.mxu3 %v341_v18 }
  0x84   :  { %830 = vmatpush.msra.mxu3 %v340_v28  ;;  %v907_v28 = vld [vmem:[%s8128_s4 + $0x58] sm:$0xff] }
  0x85   :  { %512 = vmatmul.f32.gmra.mxu2 %v118_v20 }
  0x86   :  { %577 = vmatmul.f32.gmra.mxu3 %v119_v21 }
  0x88   :  { %642 = vmatmul.f32.gmra.mxu0 %v120_v23  ;;  %v191_v23 = vld [vmem:[#allocation2 + $0x2d8] sm:$0xff] }
  0x89   :  { %707 = vmatmul.f32.gmra.mxu1 %v121_v24 }
  0x8d   :  { %515 = vmatmul.f32.gmra.mxu2 %v126_v26  ;;  %v192_v26 = vld [vmem:[#allocation2 + $0x2e0] sm:$0xff] }
  0x8e   :  { %580 = vmatmul.f32.gmra.mxu3 %v127_v27  ;;  %v193_v27 = vld [vmem:[#allocation2 + $0x2e8] sm:$0xff] }
  0x90   :  { %645 = vmatmul.f32.gmra.mxu0 %v128_v29 }
  0x91   :  { %710 = vmatmul.f32.gmra.mxu1 %v129_v30 }
  0x95   :  { %518 = vmatmul.f32.gmra.mxu2 %v134_v32  ;;  %v198_v32 = vld [vmem:[#allocation2 + $0x310] sm:$0xff] }
  0x96   :  { %583 = vmatmul.f32.gmra.mxu3 %v135_v33  ;;  %v199_v33 = vld [vmem:[#allocation2 + $0x318] sm:$0xff] }
  0x98   :  { %648 = vmatmul.f32.gmra.mxu0 %v136_v35  ;;  %v200_v35 = vld [vmem:[#allocation2 + $0x320] sm:$0xff] }
  0x99   :  { %713 = vmatmul.f32.gmra.mxu1 %v137_v36  ;;  %v201_v36 = vld [vmem:[#allocation2 + $0x328] sm:$0xff] }
  0x9d   :  { %521 = vmatmul.f32.gmra.mxu2 %v142_v38 }
  0x9e   :  { %586 = vmatmul.f32.gmra.mxu3 %v143_v39 }
  0xa0   :  { %651 = vmatmul.f32.gmra.mxu0 %v144_v41  ;;  %v207_v41 = vld [vmem:[#allocation2 + $0x358] sm:$0xff] }
  0xa1   :  { %716 = vmatmul.f32.gmra.mxu1 %v145_v42 }
  0xa5   :  { %524 = vmatmul.f32.gmra.mxu2 %v150_v44  ;;  %v209_v44 = vld [vmem:[#allocation2 + $0x368] sm:$0xff] }
  0xa6   :  { %589 = vmatmul.f32.gmra.mxu3 %v151_v45  ;;  %v911_v45 = vld [vmem:[%s8128_s4 + $0x78] sm:$0xff] }
  0xa7   :  { %916 = vmatpush.msra.mxu0 %v911_v45 }
  0xa8   :  { %654 = vmatmul.f32.gmra.mxu0 %v152_v47 }
  0xa9   :  { %719 = vmatmul.f32.gmra.mxu1 %v153_v48 }
  0xad   :  { %527 = vmatmul.f32.gmra.mxu2 %v158_v50  ;;  %v214_v50 = vld [vmem:[#allocation2 + $0x390] sm:$0xff] }
  0xae   :  { %592 = vmatmul.f32.gmra.mxu3 %v159_v51  ;;  %v215_v51 = vld [vmem:[#allocation2 + $0x398] sm:$0xff] }
  0xb0   :  { %657 = vmatmul.f32.gmra.mxu0 %v160_v53 }
  0xb1   :  { %722 = vmatmul.f32.gmra.mxu1 %v161_v54  ;;  %v216_v54 = vld [vmem:[#allocation2 + $0x3a0] sm:$0xff] }
  0xb5   :  { %530 = vmatmul.f32.gmra.mxu2 %v166_v56  ;;  %v377_v48 = vpop.f32.mrf.mxu0  ;;  %v910_v56 = vld [vmem:[%s8128_s4 + $0x70] sm:$0xff] }
  0xb6   :  { %595 = vmatmul.f32.gmra.mxu3 %v167_v57  ;;  %v442_v53 = vpop.f32.mrf.mxu1  ;;  %917 = vmatpush.msra.mxu0 %v910_v56  ;;  %v378_v8 = vadd.f32 %v5544_v58, %v377_v48 }
  0xb8   :  { %v401_v63 = vpop.f32.mrf.mxu2  ;;  %660 = vmatmul.f32.gmra.mxu0 %v168_v60 }
  0xb9   :  { %v466_v0 = vpop.f32.mrf.mxu3  ;;  %v402_v1 = vadd.f32 %v5544_v58, %v401_v63  ;;  %725 = vmatmul.f32.gmra.mxu1 %v169_v61  ;;  %v222_v61 = vld [vmem:[#allocation2 + $0x3d0] sm:$0xff]  ;;  %918 = vmatpush.msra.mxu0 %v909_v5 }
  0xbb   :  { %v5547_v4 = vadd.f32 %v466_v0, %v402_v1  ;;  %v224_v1 = vld [vmem:[#allocation2 + $0x3e0] sm:$0xff] }
  0xbd   :  { %533 = vmatmul.f32.gmra.mxu2 %v174_v2  ;;  %v380_v63 = vpop.f32.mrf.mxu0  ;;  %v225_v2 = vld [vmem:[#allocation2 + $0x3e8] sm:$0xff] }
  0xbe   :  { %598 = vmatmul.f32.gmra.mxu3 %v175_v3  ;;  %v445_v3 = vpop.f32.mrf.mxu1 }
  0xc0   :  { %v404_v9 = vpop.f32.mrf.mxu2  ;;  %663 = vmatmul.f32.gmra.mxu0 %v176_v6 }
  0xc1   :  { %v469_v10 = vpop.f32.mrf.mxu3  ;;  %v405_v11 = vadd.f32 %v5544_v58, %v404_v9  ;;  %728 = vmatmul.f32.gmra.mxu1 %v177_v7 }
  0xc3   :  { %v5550_v14 = vadd.f32 %v469_v10, %v405_v11  ;;  %v106_v10 = vld [vmem:[#allocation2 + $0x30] sm:$0xff]  ;;  %v107_v11 = vld [vmem:[#allocation2 + $0x38] sm:$0xff] }
  0xc5   :  { %536 = vmatmul.f32.gmra.mxu2 %v182_v12  ;;  %v383_v15 = vpop.f32.mrf.mxu0 }
  0xc6   :  { %601 = vmatmul.f32.gmra.mxu3 %v183_v13  ;;  %v443_v13 = vadd.f32 %v442_v53, %v378_v8  ;;  %v147_v8 = vld [vmem:[#allocation2 + $0x178] sm:$0xff] }
  0xc8   :  { %v407_v19 = vpop.f32.mrf.mxu2  ;;  %666 = vmatmul.f32.gmra.mxu0 %v184_v16  ;;  %v908_v16 = vld [vmem:[%s8128_s4 + $0x60] sm:$0xff] }
  0xc9   :  { %v472_v20 = vpop.f32.mrf.mxu3  ;;  %v408_v21 = vadd.f32 %v5544_v58, %v407_v19  ;;  %731 = vmatmul.f32.gmra.mxu1 %v185_v17  ;;  %919 = vmatpush.msra.mxu0 %v908_v16  ;;  %v381_v19 = vadd.f32 %v5544_v58, %v380_v63 }
  0xcb   :  { %v5553_v24 = vadd.f32 %v472_v20, %v408_v21  ;;  %v448_v20 = vpop.f32.mrf.mxu1  ;;  %920 = vmatpush.msra.mxu0 %v907_v28 }
  0xcd   :  { %539 = vmatmul.f32.gmra.mxu2 %v190_v22  ;;  %v114_v22 = vld [vmem:[#allocation2 + $0x70] sm:$0xff] }
  0xce   :  { %604 = vmatmul.f32.gmra.mxu3 %v191_v23  ;;  %v115_v23 = vld [vmem:[#allocation2 + $0x78] sm:$0xff] }
  0xd0   :  { %v410_v29 = vpop.f32.mrf.mxu2  ;;  %669 = vmatmul.f32.gmra.mxu0 %v192_v26  ;;  %v446_v26 = vadd.f32 %v445_v3, %v381_v19 }
  0xd1   :  { %v475_v30 = vpop.f32.mrf.mxu3  ;;  %v411_v31 = vadd.f32 %v5544_v58, %v410_v29  ;;  %734 = vmatmul.f32.gmra.mxu1 %v193_v27  ;;  %v386_v27 = vpop.f32.mrf.mxu0 }
  0xd3   :  { %v5556_v34 = vadd.f32 %v475_v30, %v411_v31  ;;  %v384_v31 = vadd.f32 %v5544_v58, %v383_v15 }
  0xd5   :  { %542 = vmatmul.f32.gmra.mxu2 %v198_v32 }
  0xd6   :  { %607 = vmatmul.f32.gmra.mxu3 %v199_v33  ;;  %v122_v33 = vld [vmem:[#allocation2 + $0xb0] sm:$0xff] }
  0xd8   :  { %v413_v37 = vpop.f32.mrf.mxu2  ;;  %672 = vmatmul.f32.gmra.mxu0 %v200_v35  ;;  %v123_v35 = vld [vmem:[#allocation2 + $0xb8] sm:$0xff] }
  0xd9   :  { %v478_v38 = vpop.f32.mrf.mxu3  ;;  %v414_v39 = vadd.f32 %v5544_v58, %v413_v37  ;;  %737 = vmatmul.f32.gmra.mxu1 %v201_v36  ;;  %v451_v36 = vpop.f32.mrf.mxu1 }
  0xdb   :  { %v5559_v42 = vadd.f32 %v478_v38, %v414_v39  ;;  %v449_v38 = vadd.f32 %v448_v20, %v384_v31  ;;  %v906_v39 = vld [vmem:[%s8128_s4 + $0x50] sm:$0xff] }
  0xdc   :  { %921 = vmatpush.msra.mxu0 %v906_v39  ;;  %v154_v20 = vld [vmem:[#allocation2 + $0x1b0] sm:$0xff]  ;;  %v901_v39 = vld [vmem:[%s8128_s4 + $0x28] sm:$0xff] }
  0xdd   :  { %545 = vmatmul.f32.gmra.mxu2 %v206_v40 }
  0xde   :  { %610 = vmatmul.f32.gmra.mxu3 %v207_v41 }
  0xe0   :  { %v416_v46 = vpop.f32.mrf.mxu2  ;;  %675 = vmatmul.f32.gmra.mxu0 %v208_v43  ;;  %v387_v43 = vadd.f32 %v5544_v58, %v386_v27  ;;  %v902_v27 = vld [vmem:[%s8128_s4 + $0x30] sm:$0xff] }
  0xe1   :  { %v481_v47 = vpop.f32.mrf.mxu3  ;;  %v417_v49 = vadd.f32 %v5544_v58, %v416_v46  ;;  %740 = vmatmul.f32.gmra.mxu1 %v209_v44  ;;  %v389_v44 = vpop.f32.mrf.mxu0  ;;  %v130_v46 = vld [vmem:[#allocation2 + $0xf0] sm:$0xff] }
  0xe3   :  { %v5565_v52 = vadd.f32 %v481_v47, %v417_v49  ;;  %v131_v47 = vld [vmem:[#allocation2 + $0xf8] sm:$0xff]  ;;  %v452_v49 = vadd.f32 %v451_v36, %v387_v43 }
  0xe5   :  { %548 = vmatmul.f32.gmra.mxu2 %v214_v50  ;;  %v454_v50 = vpop.f32.mrf.mxu1 }
  0xe6   :  { %613 = vmatmul.f32.gmra.mxu3 %v215_v51  ;;  %v905_v51 = vld [vmem:[%s8128_s4 + $0x48] sm:$0xff] }
  0xe7   :  { %922 = vmatpush.msra.mxu0 %v905_v51  ;;  %v179_v51 = vld [vmem:[#allocation2 + $0x278] sm:$0xff] }
  0xe8   :  { %v419_v57 = vpop.f32.mrf.mxu2  ;;  %678 = vmatmul.f32.gmra.mxu0 %v216_v54 }
  0xe9   :  { %v484_v59 = vpop.f32.mrf.mxu3  ;;  %v420_v60 = vadd.f32 %v5544_v58, %v419_v57  ;;  %743 = vmatmul.f32.gmra.mxu1 %v217_v55  ;;  %v390_v55 = vadd.f32 %v5544_v58, %v389_v44  ;;  %v138_v57 = vld [vmem:[#allocation2 + $0x130] sm:$0xff] }
  0xea   :  { %v170_v44 = vld [vmem:[#allocation2 + $0x230] sm:$0xff] }
  0xeb   :  { %v5571_v0 = vadd.f32 %v484_v59, %v420_v60  ;;  %v139_v59 = vld [vmem:[#allocation2 + $0x138] sm:$0xff]  ;;  %v392_v60 = vpop.f32.mrf.mxu0 }
  0xec   :  { %v393_v5 = vadd.f32 %v5544_v58, %v392_v60 }
  0xed   :  { %551 = vmatmul.f32.gmra.mxu2 %v222_v61  ;;  %v457_v63 = vpop.f32.mrf.mxu1 }
  0xee   :  { %616 = vmatmul.f32.gmra.mxu3 %v223_v62  ;;  %v455_v62 = vadd.f32 %v454_v50, %v390_v55  ;;  %v178_v50 = vld [vmem:[#allocation2 + $0x270] sm:$0xff] }
  0xf0   :  { %v422_v6 = vpop.f32.mrf.mxu2  ;;  %681 = vmatmul.f32.gmra.mxu0 %v224_v1  ;;  %v904_v1 = vld [vmem:[%s8128_s4 + $0x40] sm:$0xff] }
  0xf1   :  { %v487_v7 = vpop.f32.mrf.mxu3  ;;  %v423_v9 = vadd.f32 %v5544_v58, %v422_v6  ;;  %746 = vmatmul.f32.gmra.mxu1 %v225_v2  ;;  %923 = vmatpush.msra.mxu0 %v904_v1  ;;  %v195_v1 = vld [vmem:[#allocation2 + $0x2f8] sm:$0xff] }
  0xf3   :  { %v5578_v12 = vadd.f32 %v487_v7, %v423_v9  ;;  %v146_v7 = vld [vmem:[#allocation2 + $0x170] sm:$0xff] }
  0xf5   :  { %766 = vmatmul.f32.vlgmr.msra.gmra.mxu2 %v106_v10  ;;  %v458_v10 = vadd.f32 %v457_v63, %v393_v5  ;;  %v460_v19 = vpop.f32.mrf.mxu1  ;;  %v194_v63 = vld [vmem:[#allocation2 + $0x2f0] sm:$0xff] }
  0xf6   :  { %831 = vmatmul.f32.vlgmr.msra.gmra.mxu3 %v107_v11  ;;  %v395_v11 = vpop.f32.mrf.mxu0 }
  0xf8   :  { %v507_v17 = vpop.f32.mrf.mxu2 }
  0xf9   :  { %v572_v18 = vpop.f32.mrf.mxu3  ;;  %v508_v21 = vadd.f32 %v507_v17, %v443_v13  ;;  %v903_v13 = vld [vmem:[%s8128_s4 + $0x38] sm:$0xff]  ;;  %v396_v17 = vadd.f32 %v5544_v58, %v395_v11  ;;  %v896_v11 = vld [vmem:[%s8128_s4] sm:$0xff] }
  0xfa   :  { %924 = vmatpush.msra.mxu0 %v903_v13 }
  0xfb   :  { %v5584_v25 = vadd.f32 %v572_v18, %v508_v21  ;;  %v155_v21 = vld [vmem:[#allocation2 + $0x1b8] sm:$0xff] }
  0xfc   :  { %925 = vmatpush.msra.mxu0 %v902_v27 }
  0xfd   :  { %769 = vmatmul.f32.gmra.mxu2 %v114_v22  ;;  %v463_v36 = vpop.f32.mrf.mxu1 }
  0xfe   :  { %834 = vmatmul.f32.gmra.mxu3 %v115_v23  ;;  %v461_v23 = vadd.f32 %v460_v19, %v396_v17  ;;  %926 = vmatpush.msra.mxu0 %v901_v39  ;;  %v211_v17 = vld [vmem:[#allocation2 + $0x378] sm:$0xff] }
 0x100   :  { %v510_v29 = vpop.f32.mrf.mxu2 }
 0x101   :  { %v575_v30 = vpop.f32.mrf.mxu3  ;;  %v511_v32 = vadd.f32 %v510_v29, %v446_v26  ;;  %v398_v26 = vpop.f32.mrf.mxu0 }
 0x103   :  { %v5590_v37 = vadd.f32 %v575_v30, %v511_v32  ;;  %v399_v30 = vadd.f32 %v5544_v58, %v398_v26  ;;  %v162_v32 = vld [vmem:[#allocation2 + $0x1f0] sm:$0xff]  ;;  %v219_v26 = vld [vmem:[#allocation2 + $0x3b8] sm:$0xff] }
 0x105   :  { %772 = vmatmul.f32.gmra.mxu2 %v122_v33  ;;  %v163_v33 = vld [vmem:[#allocation2 + $0x1f8] sm:$0xff] }
 0x106   :  { %837 = vmatmul.f32.gmra.mxu3 %v123_v35 }
 0x108   :  { %v513_v40 = vpop.f32.mrf.mxu2 }
 0x109   :  { %v578_v41 = vpop.f32.mrf.mxu3  ;;  %v514_v45 = vadd.f32 %v513_v40, %v449_v38  ;;  %v464_v38 = vadd.f32 %v463_v36, %v399_v30 }
 0x10b   :  { %v5596_v48 = vadd.f32 %v578_v41, %v514_v45  ;;  %v171_v45 = vld [vmem:[#allocation2 + $0x238] sm:$0xff] }
 0x10d   :  { %775 = vmatmul.f32.gmra.mxu2 %v130_v46  ;;  %v900_v46 = vld [vmem:[%s8128_s4 + $0x20] sm:$0xff] }
 0x10e   :  { %840 = vmatmul.f32.gmra.mxu3 %v131_v47  ;;  %927 = vmatpush.msra.mxu0 %v900_v46 }
 0x110   :  { %v516_v53 = vpop.f32.mrf.mxu2 }
 0x111   :  { %v581_v54 = vpop.f32.mrf.mxu3  ;;  %v517_v56 = vadd.f32 %v516_v53, %v452_v49  ;;  %v899_v53 = vld [vmem:[%s8128_s4 + $0x18] sm:$0xff] }
 0x112   :  { %928 = vmatpush.msra.mxu0 %v899_v53 }
 0x113   :  { %v5602_v61 = vadd.f32 %v581_v54, %v517_v56  ;;  %v186_v56 = vld [vmem:[#allocation2 + $0x2b0] sm:$0xff] }
 0x115   :  { %778 = vmatmul.f32.gmra.mxu2 %v138_v57  ;;  %v187_v57 = vld [vmem:[#allocation2 + $0x2b8] sm:$0xff] }
 0x116   :  { %843 = vmatmul.f32.gmra.mxu3 %v139_v59  ;;  %v898_v59 = vld [vmem:[%s8128_s4 + $0x10] sm:$0xff] }
 0x117   :  { %929 = vmatpush.msra.mxu0 %v898_v59 }
 0x118   :  { %v519_v2 = vpop.f32.mrf.mxu2 }
 0x119   :  { %v584_v3 = vpop.f32.mrf.mxu3  ;;  %v520_v6 = vadd.f32 %v519_v2, %v455_v62  ;;  %v897_v2 = vld [vmem:[%s8128_s4 + $0x8] sm:$0xff] }
 0x11a   :  { %930 = vmatpush.msra.mxu0 %v897_v2 }
 0x11b   :  { %v5608_v9 = vadd.f32 %v584_v3, %v520_v6  ;;  %v637_v6 = vpop.f32.mrf.mxu0 }
 0x11c   :  { %931 = vmatpush.msra.mxu0 %v896_v11  ;;  %v638_v39 = vadd.f32 %v637_v6, %v5584_v25 }
 0x11d   :  { %781 = vmatmul.f32.gmra.mxu2 %v146_v7  ;;  %v202_v7 = vld [vmem:[#allocation2 + $0x330] sm:$0xff] }
 0x11e   :  { %846 = vmatmul.f32.gmra.mxu3 %v147_v8  ;;  %v203_v8 = vld [vmem:[#allocation2 + $0x338] sm:$0xff] }
 0x120   :  { %v522_v15 = vpop.f32.mrf.mxu2 }
 0x121   :  { %v587_v16 = vpop.f32.mrf.mxu3  ;;  %v523_v18 = vadd.f32 %v522_v15, %v458_v10  ;;  %v702_v10 = vpop.f32.mrf.mxu1 }
 0x123   :  { %v5614_v22 = vadd.f32 %v587_v16, %v523_v18  ;;  %v210_v16 = vld [vmem:[#allocation2 + $0x370] sm:$0xff]  ;;  %v640_v18 = vpop.f32.mrf.mxu0 }
 0x125   :  { %784 = vmatmul.f32.gmra.mxu2 %v154_v20 }
 0x126   :  { %849 = vmatmul.f32.gmra.mxu3 %v155_v21 }
 0x128   :  { %v525_v28 = vpop.f32.mrf.mxu2 }
 0x129   :  { %v590_v29 = vpop.f32.mrf.mxu3  ;;  %v526_v31 = vadd.f32 %v525_v28, %v461_v23  ;;  %v705_v19 = vpop.f32.mrf.mxu1  ;;  %v218_v23 = vld [vmem:[#allocation2 + $0x3b0] sm:$0xff] }
 0x12b   :  { %v5620_v35 = vadd.f32 %v590_v29, %v526_v31  ;;  %v643_v27 = vpop.f32.mrf.mxu0  ;;  %v226_v31 = vld [vmem:[#allocation2 + $0x3f0] sm:$0xff] }
 0x12c   :  { %v644_v2 = vadd.f32 %v643_v27, %v5596_v48 }
 0x12d   :  { %787 = vmatmul.f32.gmra.mxu2 %v162_v32  ;;  %v227_v32 = vld [vmem:[#allocation2 + $0x3f8] sm:$0xff] }
 0x12e   :  { %852 = vmatmul.f32.gmra.mxu3 %v163_v33 }
 0x130   :  { %v528_v40 = vpop.f32.mrf.mxu2 }
 0x131   :  { %v593_v41 = vpop.f32.mrf.mxu3  ;;  %v529_v43 = vadd.f32 %v528_v40, %v464_v38  ;;  %v708_v30 = vpop.f32.mrf.mxu1 }
 0x133   :  { %v5625_v58 = vadd.f32 %v593_v41, %v529_v43  ;;  %v646_v33 = vpop.f32.mrf.mxu0  ;;  %v703_v41 = vadd.f32 %v702_v10, %v638_v39 }
 0x135   :  { %790 = vmatmul.f32.gmra.mxu2 %v170_v44 }
 0x136   :  { %855 = vmatmul.f32.gmra.mxu3 %v171_v45 }
 0x138   :  { %v5630_v47 = vpop.f32.mrf.mxu2 }
 0x139   :  { %v5632_v49 = vpop.f32.mrf.mxu3  ;;  %v711_v40 = vpop.f32.mrf.mxu1 }
 0x13b   :  { %v649_v45 = vpop.f32.mrf.mxu0 }
 0x13c   :  { %v650_v27 = vadd.f32 %v649_v45, %v5608_v9 }
 0x13d   :  { %793 = vmatmul.f32.gmra.mxu2 %v178_v50  ;;  %v641_v50 = vadd.f32 %v640_v18, %v5590_v37  ;;  %v647_v37 = vadd.f32 %v646_v33, %v5602_v61 }
 0x13e   :  { %858 = vmatmul.f32.gmra.mxu3 %v179_v51 }
 0x140   :  { %v5637_v54 = vpop.f32.mrf.mxu2 }
 0x141   :  { %v5639_v55 = vpop.f32.mrf.mxu3  ;;  %v714_v53 = vpop.f32.mrf.mxu1 }
 0x145   :  { %796 = vmatmul.f32.gmra.mxu2 %v186_v56 }
 0x146   :  { %861 = vmatmul.f32.gmra.mxu3 %v187_v57  ;;  %v706_v57 = vadd.f32 %v705_v19, %v641_v50 }
 0x148   :  { %v5644_v60 = vpop.f32.mrf.mxu2 }
 0x149   :  { %v5646_v62 = vpop.f32.mrf.mxu3  ;;  %v717_v10 = vpop.f32.mrf.mxu1 }
 0x14d   :  { %799 = vmatmul.f32.gmra.mxu2 %v194_v63 }
 0x14e   :  { %864 = vmatmul.f32.gmra.mxu3 %v195_v1 }
 0x150   :  { %v5651_v3 = vpop.f32.mrf.mxu2 }
 0x151   :  { %v5653_v5 = vpop.f32.mrf.mxu3  ;;  %v720_v39 = vpop.f32.mrf.mxu1 }
 0x155   :  { %802 = vmatmul.f32.gmra.mxu2 %v202_v7  ;;  %v652_v7 = vpop.f32.mrf.mxu0 }
 0x156   :  { %867 = vmatmul.f32.gmra.mxu3 %v203_v8  ;;  %v709_v8 = vadd.f32 %v708_v30, %v644_v2  ;;  %v653_v61 = vadd.f32 %v652_v7, %v5614_v22  ;;  %v532_v7 = vadd.f32 %v5630_v47, %v5547_v4 }
 0x158   :  { %v5658_v13 = vpop.f32.mrf.mxu2 }
 0x159   :  { %v5660_v15 = vpop.f32.mrf.mxu3  ;;  %v723_v33 = vpop.f32.mrf.mxu1 }
 0x15d   :  { %805 = vmatmul.f32.gmra.mxu2 %v210_v16 }
 0x15e   :  { %870 = vmatmul.f32.gmra.mxu3 %v211_v17 }
 0x160   :  { %v5662_v20 = vpop.f32.mrf.mxu2 }
 0x161   :  { %v5664_v21 = vpop.f32.mrf.mxu3 }
 0x165   :  { %808 = vmatmul.f32.gmra.mxu2 %v218_v23  ;;  %v655_v23 = vpop.f32.mrf.mxu0 }
 0x166   :  { %873 = vmatmul.f32.gmra.mxu3 %v219_v26  ;;  %v712_v26 = vadd.f32 %v711_v40, %v647_v37  ;;  %v656_v9 = vadd.f32 %v655_v23, %v5620_v35 }
 0x168   :  { %v5666_v28 = vpop.f32.mrf.mxu2 }
 0x169   :  { %v5668_v29 = vpop.f32.mrf.mxu3 }
 0x16d   :  { %811 = vmatmul.f32.gmra.mxu2 %v226_v31 }
 0x16e   :  { %876 = vmatmul.f32.gmra.mxu3 %v227_v32 }
 0x170   :  { %v5670_v36 = vpop.f32.mrf.mxu2 }
 0x171   :  { %v5672_v38 = vpop.f32.mrf.mxu3 }
 0x178   :  { %v767_v43 = vpop.f32.mrf.mxu2 }
 0x179   :  { %v832_v44 = vpop.f32.mrf.mxu3  ;;  %v768_v46 = vadd.f32 %v767_v43, %v703_v41  ;;  %v715_v43 = vadd.f32 %v714_v53, %v650_v27  ;;  %v726_v53 = vpop.f32.mrf.mxu1 }
 0x17b   :  { %v833_v51 = vadd.f32 %v832_v44, %v768_v46  ;;  %v658_v44 = vpop.f32.mrf.mxu0 }
 0x17c   :  { %v659_v22 = vadd.f32 %v658_v44, %v5625_v58 }
 0x17d   :  { %v880_v56 = vmax.f32 %v833_v51, 0.0 }
 0x17f   :  { %932 = vmatmul.f32.vlgmr.msra.gmra.mxu0 %v880_v56 }
 0x180   :  { %v770_v59 = vpop.f32.mrf.mxu2 }
 0x181   :  { %v835_v63 = vpop.f32.mrf.mxu3  ;;  %v771_v1 = vadd.f32 %v770_v59, %v706_v57  ;;  %v718_v57 = vadd.f32 %v717_v10, %v653_v61  ;;  %v729_v35 = vpop.f32.mrf.mxu1 }
 0x183   :  { %v836_v25 = vadd.f32 %v835_v63, %v771_v1  ;;  %v661_v1 = vpop.f32.mrf.mxu0 }
 0x185   :  { %v881_v6 = vmax.f32 %v836_v25, 0.0 }
 0x187   :  { %935 = vmatmul.f32.gmra.mxu0 %v881_v6  ;;  %v721_v6 = vadd.f32 %v720_v39, %v656_v9  ;;  %v535_v39 = vadd.f32 %v5637_v54, %v5550_v14 }
 0x188   :  { %v773_v11 = vpop.f32.mrf.mxu2 }
 0x189   :  { %v838_v16 = vpop.f32.mrf.mxu3  ;;  %v774_v17 = vadd.f32 %v773_v11, %v709_v8  ;;  %v600_v4 = vadd.f32 %v5639_v55, %v535_v39 }
 0x18b   :  { %v839_v18 = vadd.f32 %v838_v16, %v774_v17  ;;  %v664_v10 = vpop.f32.mrf.mxu0 }
 0x18c   :  { %v665_v44 = vadd.f32 %v664_v10, %v600_v4  ;;  %v547_v10 = vadd.f32 %v5662_v20, %v5565_v52 }
 0x18d   :  { %v882_v19 = vmax.f32 %v839_v18, 0.0  ;;  %v724_v18 = vadd.f32 %v723_v33, %v659_v22 }
 0x18e   :  { %v730_v61 = vadd.f32 %v729_v35, %v665_v44 }
 0x18f   :  { %938 = vmatmul.f32.gmra.mxu0 %v882_v19  ;;  %v597_v19 = vadd.f32 %v5632_v49, %v532_v7 }
 0x190   :  { %v776_v31 = vpop.f32.mrf.mxu2 }
 0x191   :  { %v841_v32 = vpop.f32.mrf.mxu3  ;;  %v777_v48 = vadd.f32 %v776_v31, %v712_v26 }
 0x193   :  { %v842_v41 = vadd.f32 %v841_v32, %v777_v48  ;;  %v662_v32 = vadd.f32 %v661_v1, %v597_v19  ;;  %v667_v58 = vpop.f32.mrf.mxu0 }
 0x195   :  { %v883_v30 = vmax.f32 %v842_v41, 0.0  ;;  %v727_v41 = vadd.f32 %v726_v53, %v662_v32 }
 0x197   :  { %941 = vmatmul.f32.gmra.mxu0 %v883_v30 }
 0x198   :  { %v779_v46 = vpop.f32.mrf.mxu2 }
 0x199   :  { %v844_v50 = vpop.f32.mrf.mxu3  ;;  %v780_v51 = vadd.f32 %v779_v46, %v715_v43  ;;  %v732_v43 = vpop.f32.mrf.mxu1  ;;  %v538_v46 = vadd.f32 %v5644_v60, %v5553_v24 }
 0x19b   :  { %v845_v56 = vadd.f32 %v844_v50, %v780_v51  ;;  %v603_v14 = vadd.f32 %v5646_v62, %v538_v46  ;;  %v670_v54 = vpop.f32.mrf.mxu0 }
 0x19d   :  { %v884_v40 = vmax.f32 %v845_v56, 0.0  ;;  %v668_v55 = vadd.f32 %v667_v58, %v603_v14 }
 0x19f   :  { %944 = vmatmul.f32.gmra.mxu0 %v884_v40 }
 0x1a0   :  { %v782_v59 = vpop.f32.mrf.mxu2 }
 0x1a1   :  { %v847_v63 = vpop.f32.mrf.mxu3  ;;  %v783_v2 = vadd.f32 %v782_v59, %v718_v57  ;;  %v541_v57 = vadd.f32 %v5651_v3, %v5556_v34  ;;  %v735_v59 = vpop.f32.mrf.mxu1 }
 0x1a3   :  { %v848_v45 = vadd.f32 %v847_v63, %v783_v2  ;;  %v733_v2 = vadd.f32 %v732_v43, %v668_v55  ;;  %v606_v24 = vadd.f32 %v5653_v5, %v541_v57 }
 0x1a5   :  { %v885_v25 = vmax.f32 %v848_v45, 0.0  ;;  %v673_v45 = vpop.f32.mrf.mxu0  ;;  %v671_v53 = vadd.f32 %v670_v54, %v606_v24 }
 0x1a7   :  { %947 = vmatmul.f32.gmra.mxu0 %v885_v25  ;;  %v544_v25 = vadd.f32 %v5658_v13, %v5559_v42  ;;  %v612_v42 = vadd.f32 %v5664_v21, %v547_v10  ;;  %v1144_v21 = vld [vmem:[%s8130_s6 + $0x18] sm:$0xff] }
 0x1a8   :  { %v785_v8 = vpop.f32.mrf.mxu2  ;;  %1210 = vmatpush.msra.mxu1 %v1144_v21 }
 0x1a9   :  { %v850_v11 = vpop.f32.mrf.mxu3  ;;  %v786_v16 = vadd.f32 %v785_v8, %v721_v6  ;;  %v738_v8 = vpop.f32.mrf.mxu1  ;;  %v609_v34 = vadd.f32 %v5660_v15, %v544_v25 }
 0x1ab   :  { %v851_v17 = vadd.f32 %v850_v11, %v786_v16  ;;  %v736_v16 = vadd.f32 %v735_v59, %v671_v53  ;;  %v674_v5 = vadd.f32 %v673_v45, %v609_v34 }
 0x1ad   :  { %v886_v37 = vmax.f32 %v851_v17, 0.0  ;;  %v676_v17 = vpop.f32.mrf.mxu0  ;;  %v739_v19 = vadd.f32 %v738_v8, %v674_v5 }
 0x1ae   :  { %v677_v15 = vadd.f32 %v676_v17, %v612_v42 }
 0x1af   :  { %950 = vmatmul.f32.gmra.mxu0 %v886_v37 }
 0x1b0   :  { %v788_v23 = vpop.f32.mrf.mxu2 }
 0x1b1   :  { %v853_v26 = vpop.f32.mrf.mxu3  ;;  %v789_v31 = vadd.f32 %v788_v23, %v724_v18  ;;  %v741_v13 = vpop.f32.mrf.mxu1 }
 0x1b2   :  { %v742_v58 = vadd.f32 %v741_v13, %v677_v15 }
 0x1b3   :  { %v854_v48 = vadd.f32 %v853_v26, %v789_v31  ;;  %v550_v31 = vadd.f32 %v5666_v28, %v5571_v0  ;;  %v553_v0 = vadd.f32 %v5670_v36, %v5578_v12 }
 0x1b5   :  { %v887_v27 = vmax.f32 %v854_v48, 0.0  ;;  %v679_v39 = vpop.f32.mrf.mxu0  ;;  %v615_v52 = vadd.f32 %v5668_v29, %v550_v31 }
 0x1b7   :  { %953 = vmatmul.f32.gmra.mxu0 %v887_v27 }
 0x1b8   :  { %v791_v47 = vpop.f32.mrf.mxu2 }
 0x1b9   :  { %v856_v30 = vpop.f32.mrf.mxu3  ;;  %v792_v49 = vadd.f32 %v791_v47, %v727_v41  ;;  %v744_v4 = vpop.f32.mrf.mxu1  ;;  %v680_v47 = vadd.f32 %v679_v39, %v615_v52 }
 0x1bb   :  { %v857_v50 = vadd.f32 %v856_v30, %v792_v49  ;;  %v745_v43 = vadd.f32 %v744_v4, %v680_v47  ;;  %v618_v49 = vadd.f32 %v5672_v38, %v553_v0  ;;  %v5712_v38 = vld [vmem:[%s8129_s5] ss:$0 sm:$0xff]  ;;  %s5457_s5 = smov 96  }
 0x1bd   :  { %v888_v51 = vmax.f32 %v857_v50, 0.0  ;;  %v682_v29 = vpop.f32.mrf.mxu0 }
 0x1bf   :  { %956 = vmatmul.f32.gmra.mxu0 %v888_v51  ;;  %v683_v51 = vadd.f32 %v682_v29, %v618_v49 }
 0x1c0   :  { %v794_v33 = vpop.f32.mrf.mxu2 }
 0x1c1   :  { %v859_v56 = vpop.f32.mrf.mxu3  ;;  %v795_v40 = vadd.f32 %v794_v33, %v730_v61  ;;  %v747_v14 = vpop.f32.mrf.mxu1 }
 0x1c2   :  { %v748_v33 = vadd.f32 %v747_v14, %v683_v51 }
 0x1c3   :  { %v860_v63 = vadd.f32 %v859_v56, %v795_v40 }
 0x1c5   :  { %v889_v1 = vmax.f32 %v860_v63, 0.0 }
 0x1c7   :  { %959 = vmatmul.f32.gmra.mxu0 %v889_v1 }
 0x1c8   :  { %v797_v60 = vpop.f32.mrf.mxu2 }
 0x1c9   :  { %v862_v9 = vpop.f32.mrf.mxu3  ;;  %v798_v62 = vadd.f32 %v797_v60, %v733_v2  ;;  %v1143_v2 = vld [vmem:[%s8130_s6 + $0x10] sm:$0xff] }
 0x1ca   :  { %1211 = vmatpush.msra.mxu1 %v1143_v2 }
 0x1cb   :  { %v863_v6 = vadd.f32 %v862_v9, %v798_v62 }
 0x1cd   :  { %v890_v11 = vmax.f32 %v863_v6, 0.0 }
 0x1cf   :  { %962 = vmatmul.f32.gmra.mxu0 %v890_v11 }
 0x1d0   :  { %v800_v3 = vpop.f32.mrf.mxu2 }
 0x1d1   :  { %v865_v22 = vpop.f32.mrf.mxu3  ;;  %v801_v7 = vadd.f32 %v800_v3, %v736_v16 }
 0x1d3   :  { %v866_v37 = vadd.f32 %v865_v22, %v801_v7 }
 0x1d5   :  { %v891_v18 = vmax.f32 %v866_v37, 0.0 }
 0x1d7   :  { %965 = vmatmul.f32.gmra.mxu0 %v891_v18 }
 0x1d8   :  { %v803_v35 = vpop.f32.mrf.mxu2 }
 0x1d9   :  { %v868_v23 = vpop.f32.mrf.mxu3  ;;  %v804_v26 = vadd.f32 %v803_v35, %v739_v19  ;;  %v1142_v19 = vld [vmem:[%s8130_s6 + $0x8] sm:$0xff] }
 0x1da   :  { %1212 = vmatpush.msra.mxu1 %v1142_v19  ;;  %v1393_v19 = vld [vmem:[#allocation7 + $0x390] sm:$0xff] }
 0x1db   :  { %v869_v32 = vadd.f32 %v868_v23, %v804_v26 }
 0x1dd   :  { %v892_v48 = vmax.f32 %v869_v32, 0.0 }
 0x1df   :  { %968 = vmatmul.f32.gmra.mxu0 %v892_v48 }
 0x1e0   :  { %v806_v20 = vpop.f32.mrf.mxu2 }
 0x1e1   :  { %v871_v27 = vpop.f32.mrf.mxu3  ;;  %v807_v41 = vadd.f32 %v806_v20, %v742_v58 }
 0x1e3   :  { %v872_v28 = vadd.f32 %v871_v27, %v807_v41 }
 0x1e5   :  { %v893_v30 = vmax.f32 %v872_v28, 0.0 }
 0x1e7   :  { %971 = vmatmul.f32.gmra.mxu0 %v893_v30  ;;  %v1141_v30 = vld [vmem:[%s8130_s6] sm:$0xff] }
 0x1e8   :  { %v809_v44 = vpop.f32.mrf.mxu2  ;;  %1213 = vmatpush.msra.mxu1 %v1141_v30  ;;  %v1377_v30 = vld [vmem:[#allocation7 + $0x310] sm:$0xff] }
 0x1e9   :  { %v874_v46 = vpop.f32.mrf.mxu3  ;;  %v810_v50 = vadd.f32 %v809_v44, %v745_v43 }
 0x1eb   :  { %v875_v61 = vadd.f32 %v874_v46, %v810_v50 }
 0x1ed   :  { %v894_v54 = vmax.f32 %v875_v61, 0.0 }
 0x1ef   :  { %974 = vmatmul.f32.gmra.mxu0 %v894_v54 }
 0x1f0   :  { %v812_v56 = vpop.f32.mrf.mxu2 }
 0x1f1   :  { %v877_v40 = vpop.f32.mrf.mxu3  ;;  %v813_v55 = vadd.f32 %v812_v56, %v748_v33 }
 0x1f3   :  { %v878_v12 = vadd.f32 %v877_v40, %v813_v55 }
 0x1f5   :  { %v895_v36 = vmax.f32 %v878_v12, 0.0 }
 0x1f7   :  { %977 = vmatmul.f32.gmra.mxu0 %v895_v36 }
 0x1fc   :  { %v933_v57 = vpop.f32.mrf.mxu0 }
 0x1fd   :  { %v5715_v59 = vadd.f32 %v5712_v38, %v933_v57 }
 0x1ff   :  { %v997_v63 = vmul.f32 0.5, %v5715_v59  ;;  %4505 = vst [vmem:[#allocation11] sm:$0xff] %v5715_v59 }
 0x201   :  { %v1013_v1 = vmul.f32 1.442695, %v997_v63 }
 0x203   :  { %4750 = vpow2.f32 %v1013_v1 }
 0x204   :  { %v936_v24 = vpop.f32.mrf.mxu0 }
 0x205   :  { %v5723_v60 = vadd.f32 %v5712_v38, %v936_v24  ;;  %v1399_v24 = vld [vmem:[#allocation7 + $0x3c0] sm:$0xff] }
 0x206   :  { %1425 = vmatpush.msrb.mxu2 %v1399_v24  ;;  %v984_v24 = vld [vmem:[%s8125_s1 + $0x18] sm:$0xff] }
 0x207   :  { %v998_v9 = vmul.f32 0.5, %v5723_v60  ;;  %4506 = vst [vmem:[#allocation11 + $0x8] sm:$0xff] %v5723_v60 }
 0x209   :  { %v4751_v45 = vpop.eup %4750  ;;  %v1015_v62 = vmul.f32 1.442695, %v998_v9  ;;  %v1400_v9 = vld [vmem:[#allocation7 + $0x3c8] sm:$0xff] }
 0x20a   :  { %1061 = vrot.lane.b32.xlu0 %v4751_v45, %s5457_s5  ;;  %1490 = vmatpush.msrb.mxu3 %v1400_v9  ;;  %v1352_v9 = vld [vmem:[#allocation7 + $0x248] sm:$0xff] }
 0x20b   :  { %4752 = vpow2.f32 %v1015_v62 }
 0x20c   :  { %v939_v53 = vpop.f32.mrf.mxu0 }
 0x20d   :  { %v5729_v25 = vadd.f32 %v5712_v38, %v939_v53 }
 0x20f   :  { %v999_v6 = vmul.f32 0.5, %v5729_v25  ;;  %4507 = vst [vmem:[#allocation11 + $0x10] sm:$0xff] %v5729_v25 }
 0x211   :  { %v4753_v8 = vpop.eup %4752  ;;  %v1017_v11 = vmul.f32 1.442695, %v999_v6 }
 0x212   :  { %1063 = vrot.lane.b32.xlu0 %v4753_v8, %s5457_s5 }
 0x213   :  { %4754 = vpow2.f32 %v1017_v11  ;;  %v1401_v11 = vld [vmem:[#allocation7 + $0x3d0] sm:$0xff] }
 0x214   :  { %v942_v16 = vpop.f32.mrf.mxu0  ;;  %1555 = vmatpush.msrb.mxu0 %v1401_v11  ;;  %v1353_v11 = vld [vmem:[#allocation7 + $0x250] sm:$0xff] }
 0x215   :  { %v5735_v34 = vadd.f32 %v5712_v38, %v942_v16  ;;  %v1402_v16 = vld [vmem:[#allocation7 + $0x3d8] sm:$0xff] }
 0x216   :  { %1620 = vmatpush.msrb.mxu1 %v1402_v16  ;;  %1556 = vmatpush.msrb.mxu0 %v1393_v19  ;;  %v1354_v16 = vld [vmem:[#allocation7 + $0x258] sm:$0xff] }
 0x217   :  { %v1000_v3 = vmul.f32 0.5, %v5735_v34  ;;  %4508 = vst [vmem:[#allocation11 + $0x18] sm:$0xff] %v5735_v34  ;;  %v1346_v19 = vld [vmem:[#allocation7 + $0x218] sm:$0xff] }
 0x219   :  { %v4755_v22 = vpop.eup %4754  ;;  %v1019_v7 = vmul.f32 1.442695, %v1000_v3  ;;  %v1391_v3 = vld [vmem:[#allocation7 + $0x380] sm:$0xff] }
 0x21a   :  { %1065 = vrot.lane.b32.xlu1 %v4755_v22, %s5457_s5  ;;  %v1392_v22 = vld [vmem:[#allocation7 + $0x388] sm:$0xff]  ;;  %1426 = vmatpush.msrb.mxu2 %v1391_v3  ;;  %v1343_v3 = vld [vmem:[#allocation7 + $0x200] sm:$0xff] }
 0x21b   :  { %4756 = vpow2.f32 %v1019_v7  ;;  %1491 = vmatpush.msrb.mxu3 %v1392_v22  ;;  %v1344_v22 = vld [vmem:[#allocation7 + $0x208] sm:$0xff] }
 0x21c   :  { %v945_v5 = vpop.f32.mrf.mxu0 }
 0x21d   :  { %v5741_v10 = vadd.f32 %v5712_v38, %v945_v5 }
 0x21f   :  { %v1001_v17 = vmul.f32 0.5, %v5741_v10  ;;  %4509 = vst [vmem:[#allocation11 + $0x20] sm:$0xff] %v5741_v10 }
 0x221   :  { %v4757_v37 = vpop.eup %4756  ;;  %v1021_v18 = vmul.f32 1.442695, %v1001_v17 }
 0x222   :  { %1067 = vrot.lane.b32.xlu1 %v4757_v37, %s5457_s5 }
 0x223   :  { %4758 = vpow2.f32 %v1021_v18 }
 0x224   :  { %v948_v42 = vpop.f32.mrf.mxu0 }
 0x225   :  { %v5750_v13 = vadd.f32 %v5712_v38, %v948_v42  ;;  %v1394_v42 = vld [vmem:[#allocation7 + $0x398] sm:$0xff] }
 0x226   :  { %1621 = vmatpush.msrb.mxu1 %v1394_v42  ;;  %v1335_v42 = vld [vmem:[#allocation7 + $0x1c0] sm:$0xff] }
 0x227   :  { %v1002_v35 = vmul.f32 0.5, %v5750_v13  ;;  %4510 = vst [vmem:[#allocation11 + $0x28] sm:$0xff] %v5750_v13 }
 0x229   :  { %v4759_v23 = vpop.eup %4758  ;;  %v1023_v26 = vmul.f32 1.442695, %v1002_v35  ;;  %v1383_v35 = vld [vmem:[#allocation7 + $0x340] sm:$0xff] }
 0x22a   :  { %1069 = vrot.lane.b32.xlu2 %v4759_v23, %s5457_s5  ;;  %v1384_v23 = vld [vmem:[#allocation7 + $0x348] sm:$0xff]  ;;  %1427 = vmatpush.msrb.mxu2 %v1383_v35 }
 0x22b   :  { %4760 = vpow2.f32 %v1023_v26  ;;  %1492 = vmatpush.msrb.mxu3 %v1384_v23  ;;  %v1336_v35 = vld [vmem:[#allocation7 + $0x1c8] sm:$0xff] }
 0x22c   :  { %v951_v15 = vpop.f32.mrf.mxu0 }
 0x22d   :  { %v5756_v31 = vadd.f32 %v5712_v38, %v951_v15 }
 0x22f   :  { %v1003_v32 = vmul.f32 0.5, %v5756_v31  ;;  %4511 = vst [vmem:[#allocation11 + $0x30] sm:$0xff] %v5756_v31 }
 0x231   :  { %v4761_v39 = vpop.eup %4760  ;;  %v1025_v48 = vmul.f32 1.442695, %v1003_v32 }
 0x232   :  { %1071 = vrot.lane.b32.xlu2 %v4761_v39, %s5457_s5 }
 0x233   :  { %4762 = vpow2.f32 %v1025_v48 }
 0x234   :  { %v954_v58 = vpop.f32.mrf.mxu0 }
 0x235   :  { %v5762_v52 = vadd.f32 %v5712_v38, %v954_v58  ;;  %v1385_v58 = vld [vmem:[#allocation7 + $0x350] sm:$0xff] }
 0x236   :  { %1557 = vmatpush.msrb.mxu0 %v1385_v58  ;;  %v1328_v58 = vld [vmem:[#allocation7 + $0x188] sm:$0xff] }
 0x237   :  { %v1004_v20 = vmul.f32 0.5, %v5762_v52  ;;  %4512 = vst [vmem:[#allocation11 + $0x38] sm:$0xff] %v5762_v52 }
 0x238   :  { %1558 = vmatpush.msrb.mxu0 %v1377_v30 }
 0x239   :  { %v4763_v27 = vpop.eup %4762  ;;  %v1027_v41 = vmul.f32 1.442695, %v1004_v20  ;;  %v1386_v20 = vld [vmem:[#allocation7 + $0x358] sm:$0xff] }
 0x23a   :  { %1073 = vrot.lane.b32.xlu0 %v4763_v27, %s5457_s5  ;;  %v1375_v27 = vld [vmem:[#allocation7 + $0x300] sm:$0xff]  ;;  %1622 = vmatpush.msrb.mxu1 %v1386_v20 }
 0x23b   :  { %4764 = vpow2.f32 %v1027_v41  ;;  %v981_v41 = vld [vmem:[%s8125_s1] sm:$0xff]  ;;  %1428 = vmatpush.msrb.mxu2 %v1375_v27 }
 0x23c   :  { %v957_v21 = vpop.f32.mrf.mxu0 }
 0x23d   :  { %v5768_v4 = vadd.f32 %v5712_v38, %v957_v21  ;;  %v1376_v21 = vld [vmem:[#allocation7 + $0x308] sm:$0xff] }
 0x23e   :  { %1493 = vmatpush.msrb.mxu3 %v1376_v21  ;;  %v1330_v21 = vld [vmem:[#allocation7 + $0x198] sm:$0xff] }
 0x23f   :  { %v1005_v47 = vmul.f32 0.5, %v5768_v4  ;;  %4513 = vst [vmem:[#allocation11 + $0x40] sm:$0xff] %v5768_v4 }
 0x241   :  { %v4765_v0 = vpop.eup %4764  ;;  %v1029_v28 = vmul.f32 1.442695, %v1005_v47 }
 0x242   :  { %1075 = vrot.lane.b32.xlu1 %v4765_v0, %s5457_s5 }
 0x243   :  { %4766 = vpow2.f32 %v1029_v28 }
 0x244   :  { %v960_v43 = vpop.f32.mrf.mxu0 }
 0x245   :  { %v5777_v49 = vadd.f32 %v5712_v38, %v960_v43  ;;  %v1378_v43 = vld [vmem:[#allocation7 + $0x318] sm:$0xff] }
 0x246   :  { %1623 = vmatpush.msrb.mxu1 %v1378_v43 }
 0x247   :  { %v1006_v29 = vmul.f32 0.5, %v5777_v49  ;;  %4514 = vst [vmem:[#allocation11 + $0x48] sm:$0xff] %v5777_v49 }
 0x249   :  { %v4767_v44 = vpop.eup %4766  ;;  %v1031_v46 = vmul.f32 1.442695, %v1006_v29  ;;  %v1367_v29 = vld [vmem:[#allocation7 + $0x2c0] sm:$0xff] }
 0x24a   :  { %1077 = vrot.lane.b32.xlu2 %v4767_v44, %s5457_s5  ;;  %v982_v44 = vld [vmem:[%s8125_s1 + $0x8] sm:$0xff]  ;;  %1429 = vmatpush.msrb.mxu2 %v1367_v29 }
 0x24b   :  { %4768 = vpow2.f32 %v1031_v46  ;;  %v1368_v46 = vld [vmem:[#allocation7 + $0x2c8] sm:$0xff] }
 0x24c   :  { %v963_v50 = vpop.f32.mrf.mxu0  ;;  %1494 = vmatpush.msrb.mxu3 %v1368_v46  ;;  %v1322_v46 = vld [vmem:[#allocation7 + $0x158] sm:$0xff] }
 0x24d   :  { %v5783_v51 = vadd.f32 %v5712_v38, %v963_v50 }
 0x24f   :  { %v1007_v61 = vmul.f32 0.5, %v5783_v51  ;;  %4515 = vst [vmem:[#allocation11 + $0x50] sm:$0xff] %v5783_v51 }
 0x251   :  { %v4769_v14 = vpop.eup %4768  ;;  %v1033_v54 = vmul.f32 1.442695, %v1007_v61 }
 0x252   :  { %1079 = vrot.lane.b32.xlu0 %v4769_v14, %s5457_s5  ;;  %v1369_v14 = vld [vmem:[#allocation7 + $0x2d0] sm:$0xff] }
 0x253   :  { %4770 = vpow2.f32 %v1033_v54  ;;  %v1370_v54 = vld [vmem:[#allocation7 + $0x2d8] sm:$0xff]  ;;  %1559 = vmatpush.msrb.mxu0 %v1369_v14 }
 0x254   :  { %v966_v33 = vpop.f32.mrf.mxu0  ;;  %1624 = vmatpush.msrb.mxu1 %v1370_v54  ;;  %v1314_v54 = vld [vmem:[#allocation7 + $0x118] sm:$0xff] }
 0x255   :  { %v5789_v56 = vadd.f32 %v5712_v38, %v966_v33  ;;  %v1359_v33 = vld [vmem:[#allocation7 + $0x280] sm:$0xff] }
 0x256   :  { %1430 = vmatpush.msrb.mxu2 %v1359_v33  ;;  %v1303_v33 = vld [vmem:[#allocation7 + $0xc0] sm:$0xff] }
 0x257   :  { %v1008_v40 = vmul.f32 0.5, %v5789_v56  ;;  %4516 = vst [vmem:[#allocation11 + $0x58] sm:$0xff] %v5789_v56 }
 0x259   :  { %v4771_v55 = vpop.eup %4770  ;;  %v1035_v12 = vmul.f32 1.442695, %v1008_v40  ;;  %v983_v40 = vld [vmem:[%s8125_s1 + $0x10] sm:$0xff] }
 0x25a   :  { %1081 = vrot.lane.b32.xlu1 %v4771_v55, %s5457_s5  ;;  %v1360_v55 = vld [vmem:[#allocation7 + $0x288] sm:$0xff] }
 0x25b   :  { %4772 = vpow2.f32 %v1035_v12  ;;  %1495 = vmatpush.msrb.mxu3 %v1360_v55  ;;  %v1304_v55 = vld [vmem:[#allocation7 + $0xc8] sm:$0xff] }
 0x25c   :  { %v969_v36 = vpop.f32.mrf.mxu0 }
 0x25d   :  { %v5795_v57 = vadd.f32 %v5712_v38, %v969_v36  ;;  %1496 = vmatpush.msrb.mxu3 %v1352_v9 }
 0x25f   :  { %v1009_v63 = vmul.f32 0.5, %v5795_v57  ;;  %4517 = vst [vmem:[#allocation11 + $0x60] sm:$0xff] %v5795_v57  ;;  %1497 = vmatpush.msrb.mxu3 %v1344_v22 }
 0x261   :  { %v4773_v1 = vpop.eup %4772  ;;  %v1037_v2 = vmul.f32 1.442695, %v1009_v63  ;;  %1498 = vmatpush.msrb.mxu3 %v1336_v35  ;;  %v1282_v35 = vld [vmem:[#allocation7 + $0x18] sm:$0xff] }
 0x262   :  { %1083 = vrot.lane.b32.xlu2 %v4773_v1, %s5457_s5  ;;  %v1362_v1 = vld [vmem:[#allocation7 + $0x298] sm:$0xff] }
 0x263   :  { %4774 = vpow2.f32 %v1037_v2  ;;  %v1351_v2 = vld [vmem:[#allocation7 + $0x240] sm:$0xff]  ;;  %1625 = vmatpush.msrb.mxu1 %v1362_v1  ;;  %1499 = vmatpush.msrb.mxu3 %v1328_v58 }
 0x264   :  { %v972_v45 = vpop.f32.mrf.mxu0  ;;  %1431 = vmatpush.msrb.mxu2 %v1351_v2  ;;  %v1295_v1 = vld [vmem:[#allocation7 + $0x80] sm:$0xff]  ;;  %v991_v2 = vld [vmem:[%s8125_s1 + $0x50] sm:$0xff] }
 0x265   :  { %v5801_v62 = vadd.f32 %v5712_v38, %v972_v45  ;;  %1626 = vmatpush.msrb.mxu1 %v1354_v16  ;;  %v1288_v16 = vld [vmem:[#allocation7 + $0x48] sm:$0xff] }
 0x266   :  { %1432 = vmatpush.msrb.mxu2 %v1343_v3 }
 0x267   :  { %v1010_v53 = vmul.f32 0.5, %v5801_v62  ;;  %4518 = vst [vmem:[#allocation11 + $0x68] sm:$0xff] %v5801_v62  ;;  %1627 = vmatpush.msrb.mxu1 %v1346_v19 }
 0x268   :  { %1433 = vmatpush.msrb.mxu2 %v1335_v42 }
 0x269   :  { %v4775_v6 = vpop.eup %4774  ;;  %v1039_v8 = vmul.f32 1.442695, %v1010_v53 }
 0x26a   :  { %1085 = vrot.lane.b32.xlu0 %v4775_v6, %s5457_s5 }
 0x26b   :  { %4776 = vpow2.f32 %v1039_v8 }
 0x26c   :  { %v975_v7 = vpop.f32.mrf.mxu0 }
 0x26d   :  { %v5807_v5 = vadd.f32 %v5712_v38, %v975_v7 }
 0x26f   :  { %v1011_v17 = vmul.f32 0.5, %v5807_v5  ;;  %4519 = vst [vmem:[#allocation11 + $0x70] sm:$0xff] %v5807_v5 }
 0x271   :  { %v4777_v37 = vpop.eup %4776  ;;  %v1041_v18 = vmul.f32 1.442695, %v1011_v17 }
 0x272   :  { %1087 = vrot.lane.b32.xlu1 %v4777_v37, %s5457_s5 }
 0x273   :  { %4778 = vpow2.f32 %v1041_v18  ;;  %v1345_v18 = vld [vmem:[#allocation7 + $0x210] sm:$0xff] }
 0x274   :  { %v978_v26 = vpop.f32.mrf.mxu0 }
 0x275   :  { %v5813_v15 = vadd.f32 %v5712_v38, %v978_v26 }
 0x277   :  { %v1012_v32 = vmul.f32 0.5, %v5813_v15  ;;  %4520 = vst [vmem:[#allocation11 + $0x78] sm:$0xff] %v5813_v15 }
 0x279   :  { %v4779_v39 = vpop.eup %4778  ;;  %v1043_v48 = vmul.f32 1.442695, %v1012_v32  ;;  %v1338_v32 = vld [vmem:[#allocation7 + $0x1d8] sm:$0xff] }
 0x27a   :  { %1089 = vrot.lane.b32.xlu2 %v4779_v39, %s5457_s5  ;;  %v1327_v39 = vld [vmem:[#allocation7 + $0x180] sm:$0xff]  ;;  %1628 = vmatpush.msrb.mxu1 %v1338_v32  ;;  %v1404_v32 = vld [vmem:[#allocation7 + $0x3e8] sm:$0xff] }
 0x27b   :  { %4780 = vpow2.f32 %v1043_v48  ;;  %v987_v48 = vld [vmem:[%s8125_s1 + $0x30] sm:$0xff]  ;;  %1434 = vmatpush.msrb.mxu2 %v1327_v39 }
 0x27c   :  { %v1062_v38 = vpop.permute.xlu0 %1061  ;;  %1629 = vmatpush.msrb.mxu1 %v1330_v21  ;;  %v1396_v21 = vld [vmem:[#allocation7 + $0x3a8] sm:$0xff] }
 0x27d   :  { %v1109_v47 = vmul.f32 %v1062_v38, %v981_v41  ;;  %v1319_v38 = vld [vmem:[#allocation7 + $0x140] sm:$0xff] }
 0x27e   :  { %1435 = vmatpush.msrb.mxu2 %v1319_v38  ;;  %1630 = vmatpush.msrb.mxu1 %v1322_v46  ;;  %v5902_v46 = vld [vmem:[%s8131_s7] ss:$0 sm:$0xff] }
 0x27f   :  { %v1125_v0 = vadd.f32 %v1109_v47, %v5715_v59  ;;  %v988_v47 = vld [vmem:[%s8125_s1 + $0x38] sm:$0xff] }
 0x280   :  { %1631 = vmatpush.msrb.mxu1 %v1314_v54  ;;  %v1382_v54 = vld [vmem:[#allocation7 + $0x338] sm:$0xff] }
 0x281   :  { %v4781_v28 = vpop.eup %4780  ;;  %4560 = vmatmul.msk.f32.vlgmr.msra.gmra.mxu1 %vm1149_vm0, %v1125_v0  ;;  %v1320_v0 = vld [vmem:[#allocation7 + $0x148] sm:$0xff] }
 0x282   :  { %1091 = vrot.lane.b32.xlu0 %v4781_v28, %s5457_s5  ;;  %1500 = vmatpush.msrb.mxu3 %v1320_v0  ;;  %v996_v0 = vld [vmem:[%s8125_s1 + $0x78] sm:$0xff] }
 0x284   :  { %v1064_v50 = vpop.permute.xlu0 %1063  ;;  %v1070_v6 = vpop.permute.xlu2 %1069 }
 0x285   :  { %v1110_v61 = vmul.f32 %v1064_v50, %v982_v44  ;;  %v1321_v44 = vld [vmem:[#allocation7 + $0x150] sm:$0xff]  ;;  %v1311_v50 = vld [vmem:[#allocation7 + $0x100] sm:$0xff] }
 0x286   :  { %1436 = vmatpush.msrb.mxu2 %v1311_v50  ;;  %v1379_v50 = vld [vmem:[#allocation7 + $0x320] sm:$0xff] }
 0x287   :  { %v1126_v59 = vadd.f32 %v1110_v61, %v5723_v60  ;;  %v1361_v60 = vld [vmem:[#allocation7 + $0x290] sm:$0xff]  ;;  %v1312_v61 = vld [vmem:[#allocation7 + $0x108] sm:$0xff] }
 0x288   :  { %1560 = vmatpush.msrb.mxu0 %v1361_v60  ;;  %1501 = vmatpush.msrb.mxu3 %v1312_v61  ;;  %v1306_v60 = vld [vmem:[#allocation7 + $0xd8] sm:$0xff]  ;;  %v1380_v61 = vld [vmem:[#allocation7 + $0x328] sm:$0xff] }
 0x289   :  { %4561 = vmatmul.msk.f32.gmra.mxu1 %vm1149_vm0, %v1126_v59  ;;  %1437 = vmatpush.msrb.mxu2 %v1303_v33  ;;  %v1371_v33 = vld [vmem:[#allocation7 + $0x2e0] sm:$0xff] }
 0x28a   :  { %1561 = vmatpush.msrb.mxu0 %v1353_v11  ;;  %1502 = vmatpush.msrb.mxu3 %v1304_v55  ;;  %v1287_v11 = vld [vmem:[#allocation7 + $0x40] sm:$0xff] }
 0x28b   :  { %1632 = vmatpush.msrb.mxu1 %v1306_v60  ;;  %1438 = vmatpush.msrb.mxu2 %v1295_v1  ;;  %v1363_v60 = vld [vmem:[#allocation7 + $0x2a0] sm:$0xff]  ;;  %v1364_v1 = vld [vmem:[#allocation7 + $0x2a8] sm:$0xff] }
 0x28c   :  { %v1066_v12 = vpop.permute.xlu1 %1065  ;;  %v1072_v37 = vpop.permute.xlu2 %1071  ;;  %1562 = vmatpush.msrb.mxu0 %v1345_v18 }
 0x28d   :  { %v1111_v36 = vmul.f32 %v1066_v12, %v983_v40  ;;  %v990_v40 = vld [vmem:[%s8125_s1 + $0x48] sm:$0xff]  ;;  %1439 = vmatpush.msrb.mxu2 %v1287_v11 }
 0x28f   :  { %v1127_v63 = vadd.f32 %v1111_v36, %v5729_v25  ;;  %v985_v25 = vld [vmem:[%s8125_s1 + $0x20] sm:$0xff] }
 0x290   :  { %v1113_v7 = vmul.f32 %v1070_v6, %v985_v25  ;;  %v1298_v25 = vld [vmem:[#allocation7 + $0x98] sm:$0xff] }
 0x291   :  { %4562 = vmatmul.msk.f32.gmra.mxu1 %vm1149_vm0, %v1127_v63 }
 0x292   :  { %v1129_v17 = vadd.f32 %v1113_v7, %v5741_v10  ;;  %v1337_v10 = vld [vmem:[#allocation7 + $0x1d0] sm:$0xff]  ;;  %1633 = vmatpush.msrb.mxu1 %v1298_v25  ;;  %v1290_v7 = vld [vmem:[#allocation7 + $0x58] sm:$0xff] }
 0x293   :  { %1563 = vmatpush.msrb.mxu0 %v1337_v10  ;;  %v1403_v10 = vld [vmem:[#allocation7 + $0x3e0] sm:$0xff] }
 0x294   :  { %v1068_v45 = vpop.permute.xlu1 %1067  ;;  %1634 = vmatpush.msrb.mxu1 %v1290_v7 }
 0x295   :  { %v1112_v53 = vmul.f32 %v1068_v45, %v984_v24  ;;  %v1296_v24 = vld [vmem:[#allocation7 + $0x88] sm:$0xff] }
 0x296   :  { %1503 = vmatpush.msrb.mxu3 %v1296_v24  ;;  %1635 = vmatpush.msrb.mxu1 %v1282_v35 }
 0x297   :  { %v1128_v8 = vadd.f32 %v1112_v53, %v5735_v34  ;;  %v986_v34 = vld [vmem:[%s8125_s1 + $0x28] sm:$0xff] }
 0x298   :  { %v1114_v23 = vmul.f32 %v1072_v37, %v986_v34  ;;  %1504 = vmatpush.msrb.mxu3 %v1288_v16  ;;  %v993_v34 = vld [vmem:[%s8125_s1 + $0x60] sm:$0xff]  ;;  %v1280_v37 = vld [vmem:[#allocation7 + $0x8] sm:$0xff]  ;;  %v1357_v16 = vld [vmem:[#allocation7 + $0x270] sm:$0xff] }
 0x299   :  { %4563 = vmatmul.msk.f32.gmra.mxu1 %vm1149_vm0, %v1128_v8  ;;  %v1297_v8 = vld [vmem:[#allocation7 + $0x90] sm:$0xff] }
 0x29a   :  { %v1130_v26 = vadd.f32 %v1114_v23, %v5750_v13  ;;  %v1329_v13 = vld [vmem:[#allocation7 + $0x190] sm:$0xff]  ;;  %1505 = vmatpush.msrb.mxu3 %v1280_v37  ;;  %v994_v23 = vld [vmem:[%s8125_s1 + $0x68] sm:$0xff] }
 0x29b   :  { %1564 = vmatpush.msrb.mxu0 %v1329_v13  ;;  %v1395_v13 = vld [vmem:[#allocation7 + $0x3a0] sm:$0xff]  ;;  %v1349_v37 = vld [vmem:[#allocation7 + $0x230] sm:$0xff] }
 0x29c   :  { %1750 = vmatpush.msra.mxu3 %v1404_v32  ;;  %v1331_v32 = vld [vmem:[#allocation7 + $0x1a0] sm:$0xff] }
 0x29d   :  { %1565 = vmatpush.msrb.mxu0 %v1321_v44  ;;  %v1390_v44 = vld [vmem:[#allocation7 + $0x378] sm:$0xff] }
 0x29e   :  { %1751 = vmatpush.msra.mxu3 %v1396_v21 }
 0x2a1   :  { %4564 = vmatmul.msk.f32.gmra.mxu1 %vm1149_vm0, %v1129_v17  ;;  %v1279_v17 = vld [vmem:[#allocation7] sm:$0xff] }
 0x2a2   :  { %1440 = vmatpush.msrb.mxu2 %v1279_v17 }
 0x2a4   :  { %v1078_v29 = vpop.permute.xlu2 %1077  ;;  %1685 = vmatpush.msra.mxu2 %v1403_v10  ;;  %v1342_v10 = vld [vmem:[#allocation7 + $0x1f8] sm:$0xff] }
 0x2a6   :  { %1686 = vmatpush.msra.mxu2 %v1395_v13  ;;  %v1324_v13 = vld [vmem:[#allocation7 + $0x168] sm:$0xff] }
 0x2a9   :  { %4565 = vmatmul.msk.f32.gmra.mxu1 %vm1149_vm0, %v1130_v26 }
 0x2ac   :  { %v1074_v20 = vpop.permute.xlu0 %1073 }
 0x2ad   :  { %v1115_v27 = vmul.f32 %v1074_v20, %v987_v48  ;;  %v1405_v20 = vld [vmem:[#allocation7 + $0x3f0] sm:$0xff] }
 0x2af   :  { %v1131_v41 = vadd.f32 %v1115_v27, %v5756_v31  ;;  %v989_v31 = vld [vmem:[%s8125_s1 + $0x40] sm:$0xff]  ;;  %v1406_v27 = vld [vmem:[#allocation7 + $0x3f8] sm:$0xff] }
 0x2b0   :  { %v1117_v59 = vmul.f32 %v1078_v29, %v989_v31  ;;  %1880 = vmatpush.msra.mxu1 %v1406_v27  ;;  %v1334_v27 = vld [vmem:[#allocation7 + $0x1b8] sm:$0xff] }
 0x2b1   :  { %4566 = vmatmul.msk.f32.gmra.mxu1 %vm1149_vm0, %v1131_v41 }
 0x2b2   :  { %v1133_v14 = vadd.f32 %v1117_v59, %v5768_v4  ;;  %v1305_v4 = vld [vmem:[#allocation7 + $0xd0] sm:$0xff] }
 0x2b4   :  { %v1076_v28 = vpop.permute.xlu1 %1075 }
 0x2b5   :  { %v1116_v30 = vmul.f32 %v1076_v28, %v988_v47  ;;  %v1398_v47 = vld [vmem:[#allocation7 + $0x3b8] sm:$0xff] }
 0x2b6   :  { %1881 = vmatpush.msra.mxu1 %v1398_v47  ;;  %v1325_v47 = vld [vmem:[#allocation7 + $0x170] sm:$0xff] }
 0x2b7   :  { %v1132_v43 = vadd.f32 %v1116_v30, %v5762_v52  ;;  %v1313_v52 = vld [vmem:[#allocation7 + $0x110] sm:$0xff]  ;;  %v1387_v30 = vld [vmem:[#allocation7 + $0x360] sm:$0xff] }
 0x2b8   :  { %1566 = vmatpush.msrb.mxu0 %v1313_v52  ;;  %1687 = vmatpush.msra.mxu2 %v1387_v30  ;;  %v1316_v30 = vld [vmem:[#allocation7 + $0x128] sm:$0xff] }
 0x2b9   :  { %4567 = vmatmul.msk.f32.gmra.mxu1 %vm1149_vm0, %v1132_v43  ;;  %v1388_v43 = vld [vmem:[#allocation7 + $0x368] sm:$0xff] }
 0x2ba   :  { %1567 = vmatpush.msrb.mxu0 %v1305_v4  ;;  %1752 = vmatpush.msra.mxu3 %v1388_v43  ;;  %v1374_v4 = vld [vmem:[#allocation7 + $0x2f8] sm:$0xff] }
 0x2bb   :  { %1882 = vmatpush.msra.mxu1 %v1390_v44  ;;  %1688 = vmatpush.msra.mxu2 %v1379_v50  ;;  %v1318_v44 = vld [vmem:[#allocation7 + $0x138] sm:$0xff]  ;;  %v1307_v50 = vld [vmem:[#allocation7 + $0xe0] sm:$0xff] }
 0x2bc   :  { %v1084_v6 = vpop.permute.xlu2 %1083  ;;  %1568 = vmatpush.msrb.mxu0 %v1297_v8  ;;  %1753 = vmatpush.msra.mxu3 %v1380_v61  ;;  %v1308_v61 = vld [vmem:[#allocation7 + $0xe8] sm:$0xff] }
 0x2bd   :  { %1883 = vmatpush.msra.mxu1 %v1382_v54  ;;  %1689 = vmatpush.msra.mxu2 %v1371_v33  ;;  %v1309_v54 = vld [vmem:[#allocation7 + $0xf0] sm:$0xff]  ;;  %v1310_v33 = vld [vmem:[#allocation7 + $0xf8] sm:$0xff] }
 0x2bf   :  { %1884 = vmatpush.msra.mxu1 %v1374_v4  ;;  %1690 = vmatpush.msra.mxu2 %v1363_v60  ;;  %v1301_v60 = vld [vmem:[#allocation7 + $0xb0] sm:$0xff] }
 0x2c1   :  { %4568 = vmatmul.msk.f32.gmra.mxu1 %vm1149_vm0, %v1133_v14 }
 0x2c4   :  { %v1080_v12 = vpop.permute.xlu0 %1079 }
 0x2c5   :  { %v1118_v36 = vmul.f32 %v1080_v12, %v990_v40  ;;  %v1372_v40 = vld [vmem:[#allocation7 + $0x2e8] sm:$0xff] }
 0x2c6   :  { %1754 = vmatpush.msra.mxu3 %v1372_v40  ;;  %v1299_v40 = vld [vmem:[#allocation7 + $0xa0] sm:$0xff] }
 0x2c7   :  { %v1134_v63 = vadd.f32 %v1118_v36, %v5777_v49  ;;  %v992_v49 = vld [vmem:[%s8125_s1 + $0x58] sm:$0xff] }
 0x2c8   :  { %v1120_v3 = vmul.f32 %v1084_v6, %v992_v49  ;;  %1755 = vmatpush.msra.mxu3 %v1364_v1  ;;  %v1355_v49 = vld [vmem:[#allocation7 + $0x260] sm:$0xff]  ;;  %v1356_v6 = vld [vmem:[#allocation7 + $0x268] sm:$0xff]  ;;  %v1302_v1 = vld [vmem:[#allocation7 + $0xb8] sm:$0xff] }
 0x2c9   :  { %4569 = vmatmul.msk.f32.gmra.mxu1 %vm1149_vm0, %v1134_v63  ;;  %v1373_v63 = vld [vmem:[#allocation7 + $0x2f0] sm:$0xff]  ;;  %1691 = vmatpush.msra.mxu2 %v1355_v49 }
 0x2ca   :  { %v1136_v22 = vadd.f32 %v1120_v3, %v5789_v56  ;;  %v1281_v56 = vld [vmem:[#allocation7 + $0x10] sm:$0xff]  ;;  %1756 = vmatpush.msra.mxu3 %v1356_v6  ;;  %v1358_v3 = vld [vmem:[#allocation7 + $0x278] sm:$0xff] }
 0x2cb   :  { %v1293_v6 = vld [vmem:[#allocation7 + $0x70] sm:$0xff] }
 0x2cc   :  { %v1082_v9 = vpop.permute.xlu1 %1081 }
 0x2cd   :  { %v1119_v45 = vmul.f32 %v1082_v9, %v991_v2 }
 0x2cf   :  { %v1135_v53 = vadd.f32 %v1119_v45, %v5783_v51  ;;  %v1289_v51 = vld [vmem:[#allocation7 + $0x50] sm:$0xff] }
 0x2d0   :  { %1569 = vmatpush.msrb.mxu0 %v1289_v51  ;;  %v1365_v45 = vld [vmem:[#allocation7 + $0x2b0] sm:$0xff]  ;;  %v1348_v51 = vld [vmem:[#allocation7 + $0x228] sm:$0xff] }
 0x2d1   :  { %4570 = vmatmul.msk.f32.gmra.mxu1 %vm1149_vm0, %v1135_v53  ;;  %v1366_v53 = vld [vmem:[#allocation7 + $0x2b8] sm:$0xff]  ;;  %1757 = vmatpush.msra.mxu3 %v1348_v51 }
 0x2d2   :  { %1570 = vmatpush.msrb.mxu0 %v1281_v56  ;;  %1885 = vmatpush.msra.mxu1 %v1366_v53 }
 0x2d4   :  { %v1090_v58 = vpop.permute.xlu2 %1089  ;;  %1815 = vmatpush.msra.mxu0 %v1405_v20  ;;  %1886 = vmatpush.msra.mxu1 %v1358_v3  ;;  %v1333_v20 = vld [vmem:[#allocation7 + $0x1b0] sm:$0xff] }
 0x2d9   :  { %4571 = vmatmul.msk.f32.gmra.mxu1 %vm1149_vm0, %v1136_v22  ;;  %v1347_v22 = vld [vmem:[#allocation7 + $0x220] sm:$0xff] }
 0x2da   :  { %1692 = vmatpush.msra.mxu2 %v1347_v22 }
 0x2dc   :  { %v1086_v18 = vpop.permute.xlu0 %1085 }
 0x2dd   :  { %v1121_v19 = vmul.f32 %v1086_v18, %v993_v34  ;;  %v1350_v18 = vld [vmem:[#allocation7 + $0x238] sm:$0xff] }
 0x2de   :  { %1887 = vmatpush.msra.mxu1 %v1350_v18 }
 0x2df   :  { %v1137_v42 = vadd.f32 %v1121_v19, %v5795_v57  ;;  %v995_v57 = vld [vmem:[%s8125_s1 + $0x70] sm:$0xff]  ;;  %v1339_v19 = vld [vmem:[#allocation7 + $0x1e0] sm:$0xff]  ;;  %s5458_s1 = smov [#allocation11]  }
 0x2e0   :  { %v1123_v41 = vmul.f32 %v1090_v58, %v995_v57  ;;  %1693 = vmatpush.msra.mxu2 %v1339_v19  ;;  %1888 = vmatpush.msra.mxu1 %v1342_v10  ;;  %s4538_s7 = sshll.u32 %s5458_s1, 4  ;;  %s4539_s7 = int_to_ptr.vmem [resolvable:$true] %s4538_s7 }
 0x2e1   :  { %4572 = vmatmul.msk.f32.gmra.mxu1 %vm1149_vm0, %v1137_v42  ;;  %v1340_v42 = vld [vmem:[#allocation7 + $0x1e8] sm:$0xff]  ;;  %4546 = dma.vmem_to_hbm [thread:$0]  %s4539_s7, 2048, %s4541_s14, [#allocation12], %s5450_s25, %s5450_s25, %s5451_s26  }
 0x2e2   :  { %v1139_v38 = vadd.f32 %v1123_v41, %v5807_v5  ;;  %v1389_v5 = vld [vmem:[#allocation7 + $0x370] sm:$0xff]  ;;  %1758 = vmatpush.msra.mxu3 %v1340_v42  ;;  %1694 = vmatpush.msra.mxu2 %v1331_v32  ;;  %v1323_v41 = vld [vmem:[#allocation7 + $0x160] sm:$0xff]  ;;  %s4525_s25 = sshll.u32 %s5459_s11, 4  ;;  %s4526_s25 = int_to_ptr.vmem [resolvable:$true] %s4525_s25 }
 0x2e3   :  { %1889 = vmatpush.msra.mxu1 %v1334_v27 }
 0x2e4   :  { %v1088_v26 = vpop.permute.xlu1 %1087  ;;  %1695 = vmatpush.msra.mxu2 %v1323_v41 }
 0x2e5   :  { %v1122_v39 = vmul.f32 %v1088_v26, %v994_v23  ;;  %v1341_v26 = vld [vmem:[#allocation7 + $0x1f0] sm:$0xff] }
 0x2e7   :  { %v1138_v48 = vadd.f32 %v1122_v39, %v5801_v62  ;;  %v1397_v62 = vld [vmem:[#allocation7 + $0x3b0] sm:$0xff]  ;;  %v1332_v39 = vld [vmem:[#allocation7 + $0x1a8] sm:$0xff] }
 0x2e8   :  { %1816 = vmatpush.msra.mxu0 %v1397_v62  ;;  %1759 = vmatpush.msra.mxu3 %v1332_v39  ;;  %v1407_v39 = vld [vmem:[#allocation8] sm:$0xff] }
 0x2e9   :  { %4573 = vmatmul.msk.f32.gmra.mxu1 %vm1149_vm0, %v1138_v48 }
 0x2ea   :  { %1817 = vmatpush.msra.mxu0 %v1389_v5  ;;  %1760 = vmatpush.msra.mxu3 %v1324_v13  ;;  %v1317_v5 = vld [vmem:[#allocation7 + $0x130] sm:$0xff]  ;;  %v6024_v13 = vperm.slane %v1407_v39, 0 }
 0x2ec   :  { %1761 = vmatpush.msra.mxu3 %v1316_v30 }
 0x2ee   :  { %1762 = vmatpush.msra.mxu3 %v1308_v61 }
 0x2f1   :  { %4574 = vmatmul.msk.f32.gmra.mxu1 %vm1149_vm0, %v1139_v38 }
 0x2f4   :  { %v1092_v28 = vpop.permute.xlu0 %1091 }
 0x2f5   :  { %v1124_v31 = vmul.f32 %v1092_v28, %v996_v0  ;;  %v1326_v0 = vld [vmem:[#allocation7 + $0x178] sm:$0xff]  ;;  %v1315_v28 = vld [vmem:[#allocation7 + $0x120] sm:$0xff] }
 0x2f6   :  { %1890 = vmatpush.msra.mxu1 %v1326_v0  ;;  %1696 = vmatpush.msra.mxu2 %v1315_v28 }
 0x2f7   :  { %v1140_v29 = vadd.f32 %v1124_v31, %v5813_v15  ;;  %v1381_v15 = vld [vmem:[#allocation7 + $0x330] sm:$0xff] }
 0x2f8   :  { %1818 = vmatpush.msra.mxu0 %v1381_v15  ;;  %1891 = vmatpush.msra.mxu1 %v1318_v44 }
 0x2f9   :  { %4575 = vmatmul.msk.f32.gmra.mxu1 %vm1149_vm0, %v1140_v29  ;;  %1697 = vmatpush.msra.mxu2 %v1307_v50 }
 0x2fa   :  { %1819 = vmatpush.msra.mxu0 %v1373_v63  ;;  %1892 = vmatpush.msra.mxu1 %v1310_v33 }
 0x2fb   :  { %1698 = vmatpush.msra.mxu2 %v1299_v40 }
 0x2fc   :  { %1820 = vmatpush.msra.mxu0 %v1365_v45  ;;  %1893 = vmatpush.msra.mxu1 %v1302_v1 }
 0x2fe   :  { %v1215_v59 = vpop.f32.mrf.mxu1  ;;  %1821 = vmatpush.msra.mxu0 %v1357_v16  ;;  %v1284_v16 = vld [vmem:[#allocation7 + $0x28] sm:$0xff] }
 0x2ff   :  { %v1216_v14 = vadd.f32 %v5902_v46, %v1215_v59 }
 0x300   :  { %1822 = vmatpush.msra.mxu0 %v1349_v37 }
 0x301   :  { %v5905_v52 = vmax.f32 %v1216_v14, 0.0 }
 0x302   :  { %1823 = vmatpush.msra.mxu0 %v1341_v26 }
 0x303   :  { %1441 = vmatmul.f32.vlgmr.msrb.gmra.mxu2 %v5905_v52  ;;  %1506 = vmatmul.f32.vlgmr.msrb.gmra.mxu3 %v5905_v52 }
 0x304   :  { %1571 = vmatmul.f32.vlgmr.msrb.gmra.mxu0 %v5905_v52  ;;  %1636 = vmatmul.f32.vlgmr.msrb.gmra.mxu1 %v5905_v52 }
 0x305   :  { %1824 = vmatpush.msra.mxu0 %v1333_v20 }
 0x306   :  { %v1218_v55 = vpop.f32.mrf.mxu1 }
 0x307   :  { %v1219_v12 = vadd.f32 %v5902_v46, %v1218_v55  ;;  %1825 = vmatpush.msra.mxu0 %v1325_v47  ;;  %v1300_v55 = vld [vmem:[#allocation7 + $0xa8] sm:$0xff] }
 0x308   :  { %1763 = vmatpush.msra.mxu3 %v1300_v55 }
 0x309   :  { %v5912_v36 = vmax.f32 %v1219_v12, 0.0  ;;  %1826 = vmatpush.msra.mxu0 %v1317_v5 }
 0x30b   :  { %1444 = vmatmul.f32.gmra.mxu2 %v5912_v36  ;;  %1509 = vmatmul.f32.gmra.mxu3 %v5912_v36 }
 0x30c   :  { %1574 = vmatmul.f32.gmra.mxu0 %v5912_v36  ;;  %1639 = vmatmul.f32.gmra.mxu1 %v5912_v36 }
 0x30d   :  { %1827 = vmatpush.msra.mxu0 %v1309_v54 }
 0x30e   :  { %v1221_v2 = vpop.f32.mrf.mxu1 }
 0x30f   :  { %v1222_v24 = vadd.f32 %v5902_v46, %v1221_v2  ;;  %1828 = vmatpush.msra.mxu0 %v1301_v60  ;;  %v1291_v2 = vld [vmem:[#allocation7 + $0x60] sm:$0xff] }
 0x310   :  { %1699 = vmatpush.msra.mxu2 %v1291_v2 }
 0x311   :  { %v5919_v9 = vmax.f32 %v1222_v24, 0.0  ;;  %v1292_v24 = vld [vmem:[#allocation7 + $0x68] sm:$0xff]  ;;  %1829 = vmatpush.msra.mxu0 %v1293_v6 }
 0x312   :  { %1764 = vmatpush.msra.mxu3 %v1292_v24 }
 0x313   :  { %1447 = vmatmul.f32.gmra.mxu2 %v5919_v9  ;;  %1512 = vmatmul.f32.gmra.mxu3 %v5919_v9 }
 0x314   :  { %1577 = vmatmul.f32.gmra.mxu0 %v5919_v9  ;;  %1642 = vmatmul.f32.gmra.mxu1 %v5919_v9 }
 0x315   :  { %1765 = vmatpush.msra.mxu3 %v1284_v16 }
 0x316   :  { %v1224_v8 = vpop.f32.mrf.mxu1 }
 0x317   :  { %v1225_v25 = vadd.f32 %v5902_v46, %v1224_v8  ;;  %v1294_v8 = vld [vmem:[#allocation7 + $0x78] sm:$0xff] }
 0x318   :  { %1894 = vmatpush.msra.mxu1 %v1294_v8 }
 0x319   :  { %v5926_v11 = vmax.f32 %v1225_v25, 0.0  ;;  %v1283_v25 = vld [vmem:[#allocation7 + $0x20] sm:$0xff] }
 0x31a   :  { %1700 = vmatpush.msra.mxu2 %v1283_v25 }
 0x31b   :  { %1450 = vmatmul.f32.gmra.mxu2 %v5926_v11  ;;  %1515 = vmatmul.f32.gmra.mxu3 %v5926_v11 }
 0x31c   :  { %1580 = vmatmul.f32.gmra.mxu0 %v5926_v11  ;;  %1645 = vmatmul.f32.gmra.mxu1 %v5926_v11 }
 0x31e   :  { %v1227_v7 = vpop.f32.mrf.mxu1 }
 0x31f   :  { %v1228_v17 = vadd.f32 %v5902_v46, %v1227_v7  ;;  %v1285_v7 = vld [vmem:[#allocation7 + $0x30] sm:$0xff] }
 0x320   :  { %1830 = vmatpush.msra.mxu0 %v1285_v7 }
 0x321   :  { %v5933_v34 = vmax.f32 %v1228_v17, 0.0  ;;  %v1286_v17 = vld [vmem:[#allocation7 + $0x38] sm:$0xff] }
 0x322   :  { %1895 = vmatpush.msra.mxu1 %v1286_v17 }
 0x323   :  { %1453 = vmatmul.f32.gmra.mxu2 %v5933_v34  ;;  %1518 = vmatmul.f32.gmra.mxu3 %v5933_v34 }
 0x324   :  { %1583 = vmatmul.f32.gmra.mxu0 %v5933_v34  ;;  %1648 = vmatmul.f32.gmra.mxu1 %v5933_v34 }
 0x326   :  { %v1230_v56 = vpop.f32.mrf.mxu1 }
 0x327   :  { %v1231_v35 = vadd.f32 %v5902_v46, %v1230_v56 }
 0x329   :  { %v5940_v23 = vmax.f32 %v1231_v35, 0.0 }
 0x32b   :  { %1456 = vmatmul.f32.gmra.mxu2 %v5940_v23  ;;  %1521 = vmatmul.f32.gmra.mxu3 %v5940_v23 }
 0x32c   :  { %1586 = vmatmul.f32.gmra.mxu0 %v5940_v23  ;;  %1651 = vmatmul.f32.gmra.mxu1 %v5940_v23 }
 0x32e   :  { %v1233_v48 = vpop.f32.mrf.mxu1 }
 0x32f   :  { %v1234_v57 = vadd.f32 %v5902_v46, %v1233_v48  ;;  %v6016_v48 = vperm.slane %v1407_v39, 2 }
 0x331   :  { %v5947_v58 = vmax.f32 %v1234_v57, 0.0  ;;  %v6018_v57 = vperm.slane %v1407_v39, 3 }
 0x333   :  { %1459 = vmatmul.f32.gmra.mxu2 %v5947_v58  ;;  %1524 = vmatmul.f32.gmra.mxu3 %v5947_v58 }
 0x334   :  { %1589 = vmatmul.f32.gmra.mxu0 %v5947_v58  ;;  %1654 = vmatmul.f32.gmra.mxu1 %v5947_v58 }
 0x336   :  { %v1236_v21 = vpop.f32.mrf.mxu1 }
 0x337   :  { %v1237_v38 = vadd.f32 %v5902_v46, %v1236_v21  ;;  %v6026_v21 = vperm.slane %v1407_v39, 1 }
 0x339   :  { %v5954_v62 = vmax.f32 %v1237_v38, 0.0 }
 0x33b   :  { %1462 = vmatmul.f32.gmra.mxu2 %v5954_v62  ;;  %1527 = vmatmul.f32.gmra.mxu3 %v5954_v62 }
 0x33c   :  { %1592 = vmatmul.f32.gmra.mxu0 %v5954_v62  ;;  %1657 = vmatmul.f32.gmra.mxu1 %v5954_v62 }
 0x33e   :  { %v1239_v43 = vpop.f32.mrf.mxu1 }
 0x33f   :  { %v1240_v31 = vadd.f32 %v5902_v46, %v1239_v43 }
 0x341   :  { %v5961_v29 = vmax.f32 %v1240_v31, 0.0 }
 0x343   :  { %1465 = vmatmul.f32.gmra.mxu2 %v5961_v29  ;;  %1530 = vmatmul.f32.gmra.mxu3 %v5961_v29 }
 0x344   :  { %1595 = vmatmul.f32.gmra.mxu0 %v5961_v29  ;;  %1660 = vmatmul.f32.gmra.mxu1 %v5961_v29 }
 0x346   :  { %v1242_v59 = vpop.f32.mrf.mxu1 }
 0x347   :  { %v1243_v14 = vadd.f32 %v5902_v46, %v1242_v59 }
 0x349   :  { %v5968_v15 = vmax.f32 %v1243_v14, 0.0 }
 0x34b   :  { %1468 = vmatmul.f32.gmra.mxu2 %v5968_v15  ;;  %1533 = vmatmul.f32.gmra.mxu3 %v5968_v15 }
 0x34c   :  { %1598 = vmatmul.f32.gmra.mxu0 %v5968_v15  ;;  %1663 = vmatmul.f32.gmra.mxu1 %v5968_v15 }
 0x34e   :  { %v1245_v12 = vpop.f32.mrf.mxu1 }
 0x34f   :  { %v1246_v63 = vadd.f32 %v5902_v46, %v1245_v12 }
 0x351   :  { %v5975_v4 = vmax.f32 %v1246_v63, 0.0 }
 0x353   :  { %1471 = vmatmul.f32.gmra.mxu2 %v5975_v4  ;;  %1536 = vmatmul.f32.gmra.mxu3 %v5975_v4 }
 0x354   :  { %1601 = vmatmul.f32.gmra.mxu0 %v5975_v4  ;;  %1666 = vmatmul.f32.gmra.mxu1 %v5975_v4 }
 0x356   :  { %v1248_v45 = vpop.f32.mrf.mxu1 }
 0x357   :  { %v1249_v53 = vadd.f32 %v5902_v46, %v1248_v45 }
 0x359   :  { %v5982_v49 = vmax.f32 %v1249_v53, 0.0 }
 0x35b   :  { %1474 = vmatmul.f32.gmra.mxu2 %v5982_v49  ;;  %1539 = vmatmul.f32.gmra.mxu3 %v5982_v49 }
 0x35c   :  { %1604 = vmatmul.f32.gmra.mxu0 %v5982_v49  ;;  %1669 = vmatmul.f32.gmra.mxu1 %v5982_v49 }
 0x35e   :  { %v1251_v3 = vpop.f32.mrf.mxu1 }
 0x35f   :  { %v1252_v22 = vadd.f32 %v5902_v46, %v1251_v3 }
 0x361   :  { %v5989_v51 = vmax.f32 %v1252_v22, 0.0 }
 0x363   :  { %1477 = vmatmul.f32.gmra.mxu2 %v5989_v51  ;;  %1542 = vmatmul.f32.gmra.mxu3 %v5989_v51 }
 0x364   :  { %1607 = vmatmul.f32.gmra.mxu0 %v5989_v51  ;;  %1672 = vmatmul.f32.gmra.mxu1 %v5989_v51 }
 0x366   :  { %v1254_v37 = vpop.f32.mrf.mxu1 }
 0x367   :  { %v1255_v18 = vadd.f32 %v5902_v46, %v1254_v37 }
 0x369   :  { %v5996_v19 = vmax.f32 %v1255_v18, 0.0 }
 0x36b   :  { %1480 = vmatmul.f32.gmra.mxu2 %v5996_v19  ;;  %1545 = vmatmul.f32.gmra.mxu3 %v5996_v19 }
 0x36c   :  { %1610 = vmatmul.f32.gmra.mxu0 %v5996_v19  ;;  %1675 = vmatmul.f32.gmra.mxu1 %v5996_v19 }
 0x36e   :  { %v1257_v42 = vpop.f32.mrf.mxu1 }
 0x36f   :  { %v1258_v56 = vadd.f32 %v5902_v46, %v1257_v42 }
 0x371   :  { %v6003_v35 = vmax.f32 %v1258_v56, 0.0 }
 0x373   :  { %1483 = vmatmul.f32.gmra.mxu2 %v6003_v35  ;;  %1548 = vmatmul.f32.gmra.mxu3 %v6003_v35 }
 0x374   :  { %1613 = vmatmul.f32.gmra.mxu0 %v6003_v35  ;;  %1678 = vmatmul.f32.gmra.mxu1 %v6003_v35 }
 0x376   :  { %v1260_v26 = vpop.f32.mrf.mxu1 }
 0x377   :  { %v1261_v10 = vadd.f32 %v5902_v46, %v1260_v26 }
 0x379   :  { %v6010_v32 = vmax.f32 %v1261_v10, 0.0 }
 0x37b   :  { %1486 = vmatmul.f32.gmra.mxu2 %v6010_v32  ;;  %1551 = vmatmul.f32.gmra.mxu3 %v6010_v32 }
 0x37c   :  { %1616 = vmatmul.f32.gmra.mxu0 %v6010_v32  ;;  %1681 = vmatmul.f32.gmra.mxu1 %v6010_v32 }
 0x381   :  { %v1572_v20 = vpop.f32.mrf.mxu0  ;;  %v1637_v27 = vpop.f32.mrf.mxu1 }
 0x382   :  { %v1573_v41 = vadd.f32 %v1572_v20, %v6016_v48  ;;  %v1638_v46 = vadd.f32 %v1637_v27, %v6018_v57 }
 0x383   :  { %1701 = vmatmul.f32.vlgmr.msra.gmra.mxu2 %v5905_v52  ;;  %1766 = vmatmul.f32.vlgmr.msra.gmra.mxu3 %v5905_v52 }
 0x384   :  { %v4578_v38 = vmul.f32 -1.442695, %v1573_v41  ;;  %v4579_v47 = vmul.f32 -1.442695, %v1638_v46  ;;  %1831 = vmatmul.f32.vlgmr.msra.gmra.mxu0 %v5905_v52  ;;  %1896 = vmatmul.f32.vlgmr.msra.gmra.mxu1 %v5905_v52 }
 0x386   :  { %4782 = vpow2.f32 %v4578_v38  ;;  %v1442_v0 = vpop.f32.mrf.mxu2  ;;  %v1507_v28 = vpop.f32.mrf.mxu3 }
 0x387   :  { %4784 = vpow2.f32 %v4579_v47  ;;  %v1443_v30 = vadd.f32 %v1442_v0, %v6024_v13  ;;  %v1508_v43 = vadd.f32 %v1507_v28, %v6026_v21 }
 0x389   :  { %v4576_v31 = vmul.f32 -1.442695, %v1443_v30  ;;  %v4577_v5 = vmul.f32 -1.442695, %v1508_v43  ;;  %v1575_v44 = vpop.f32.mrf.mxu0  ;;  %v1640_v50 = vpop.f32.mrf.mxu1 }
 0x38a   :  { %v1576_v61 = vadd.f32 %v1575_v44, %v6016_v48  ;;  %v1641_v59 = vadd.f32 %v1640_v50, %v6018_v57 }
 0x38b   :  { %4786 = vpow2.f32 %v4576_v31  ;;  %1704 = vmatmul.f32.gmra.mxu2 %v5912_v36  ;;  %1769 = vmatmul.f32.gmra.mxu3 %v5912_v36 }
 0x38c   :  { %v4783_v52 = vpop.eup %4782  ;;  %4788 = vpow2.f32 %v4577_v5  ;;  %v4586_v14 = vmul.f32 -1.442695, %v1576_v61  ;;  %1834 = vmatmul.f32.gmra.mxu0 %v5912_v36  ;;  %1899 = vmatmul.f32.gmra.mxu1 %v5912_v36  ;;  %v4587_v40 = vmul.f32 -1.442695, %v1641_v59 }
 0x38d   :  { %v4785_v54 = vpop.eup %4784  ;;  %v6038_v33 = vadd.f32 1.0, %v4783_v52 }
 0x38e   :  { %v6040_v55 = vadd.f32 1.0, %v4785_v54  ;;  %4790 = vpow2.f32 %v4586_v14  ;;  %v1445_v12 = vpop.f32.mrf.mxu2  ;;  %v1510_v8 = vpop.f32.mrf.mxu3 }
 0x38f   :  { %4792 = vrcp.f32 %v6038_v33  ;;  %v2498_v60 = vand.u32 2147483648, %v6038_v33  ;;  %v1446_v1 = vadd.f32 %v1445_v12, %v6024_v13  ;;  %v2496_v36 = vand.u32 2147483647, %v6038_v33 }
 0x390   :  { %4794 = vrcp.f32 %v6040_v55  ;;  %v2513_v24 = vand.u32 2147483648, %v6040_v55  ;;  %v2511_v53 = vand.u32 2147483647, %v6040_v55  ;;  %vm2492_vm1 = vweird.f32 %v6038_v33 }
 0x391   :  { %v4787_v63 = vpop.eup %4786  ;;  %4796 = vpow2.f32 %v4587_v40  ;;  %v1578_v25 = vpop.f32.mrf.mxu0  ;;  %v4584_v3 = vmul.f32 -1.442695, %v1446_v1  ;;  %v2499_v7 = vor.u32 1.1754944e-38, %v2498_v60  ;;  %vm2507_vm2 = vweird.f32 %v6040_v55 }
 0x392   :  { %v4789_v2 = vpop.eup %4788  ;;  %v6048_v45 = vadd.f32 1.0, %v4787_v63  ;;  %vm6062_vm3 = vcmp.eq.f32.partialorder %v2496_v36, 8.507059e+37  ;;  %v2514_v42 = vor.u32 1.1754944e-38, %v2513_v24  ;;  %v1511_v56 = vadd.f32 %v1510_v8, %v6026_v21  ;;  %v1643_v26 = vpop.f32.mrf.mxu1 }
 0x393   :  { %v6051_v6 = vadd.f32 1.0, %v4789_v2  ;;  %1707 = vmatmul.f32.gmra.mxu2 %v5919_v9  ;;  %1772 = vmatmul.f32.gmra.mxu3 %v5919_v9  ;;  %vm6069_vm4 = vcmp.eq.f32.partialorder %v2511_v53, 8.507059e+37  ;;  %v6083_v43 = vadd.f32 %v1643_v26, %v6018_v57 }
 0x394   :  { %v4791_v16 = vpop.eup %4790  ;;  %4798 = vrcp.f32 %v6048_v45  ;;  %1837 = vmatmul.f32.gmra.mxu0 %v5919_v9  ;;  %1902 = vmatmul.f32.gmra.mxu1 %v5919_v9  ;;  %v1579_v9 = vadd.f32 %v1578_v25, %v6016_v48  ;;  %v2466_v27 = vand.u32 2147483647, %v6048_v45  ;;  %v2468_v41 = vand.u32 2147483648, %v6048_v45 }
 0x395   :  { %v4793_v22 = vpop.eup %4792  ;;  %4800 = vrcp.f32 %v6051_v6  ;;  %v2481_v46 = vand.u32 2147483647, %v6051_v6  ;;  %v2483_v47 = vand.u32 2147483648, %v6051_v6  ;;  %v6077_v0 = vadd.f32 1.0, %v4791_v16 }
 0x396   :  { %v4795_v17 = vpop.eup %4794  ;;  %v2488_v37 = vmul.f32 %v4793_v22, %v6038_v33  ;;  %4802 = vpow2.f32 %v4584_v3  ;;  %vm2462_vm5 = vweird.f32 %v6048_v45  ;;  %vm2493_vm6 = vweird.f32 %v4793_v22  ;;  %v1448_v53 = vpop.f32.mrf.mxu2 }
 0x397   :  { %v4797_v10 = vpop.eup %4796  ;;  %v2503_v39 = vmul.f32 %v4795_v17, %v6040_v55  ;;  %vm2477_vm7 = vweird.f32 %v6051_v6  ;;  %4804 = vrcp.f32 %v6077_v0  ;;  %vm2508_vm8 = vweird.f32 %v4795_v17  ;;  %vm2494_vm11 = vmor %vm2492_vm1, %vm2493_vm6 }
 0x398   :  { %v2489_v38 = vsub.f32 1.0, %v2488_v37  ;;  %v6080_v30 = vadd.f32 1.0, %v4797_v10  ;;  %vm6093_vm9 = vcmp.eq.f32.partialorder %v2466_v27, 8.507059e+37  ;;  %v2469_v52 = vor.u32 1.1754944e-38, %v2468_v41  ;;  %vm2509_vm12 = vmor %vm2507_vm2, %vm2508_vm8 }
 0x399   :  { %v2504_v28 = vsub.f32 1.0, %v2503_v39  ;;  %vm6101_vm10 = vcmp.eq.f32.partialorder %v2481_v46, 8.507059e+37  ;;  %v2484_v12 = vor.u32 1.1754944e-38, %v2483_v47  ;;  %v4585_v1 = vmul.f32 -1.442695, %v1511_v56  ;;  %v1581_v41 = vpop.f32.mrf.mxu0 }
 0x39a   :  { %v6085_v31 = vpop.eup %4798  ;;  %v2490_v5 = vmul.f32 %v4793_v22, %v2489_v38  ;;  %4806 = vrcp.f32 %v6080_v30  ;;  %v2618_v16 = vand.u32 2147483648, %v6077_v0  ;;  %v1449_v56 = vadd.f32 %v1448_v53, %v6024_v13 }
 0x39b   :  { %v6089_v44 = vpop.eup %4800  ;;  %v2505_v50 = vmul.f32 %v4795_v17, %v2504_v28  ;;  %v2458_v61 = vmul.f32 %v6085_v31, %v6048_v45  ;;  %1710 = vmatmul.f32.gmra.mxu2 %v5926_v11  ;;  %1775 = vmatmul.f32.gmra.mxu3 %v5926_v11  ;;  %vm2463_vm13 = vweird.f32 %v6085_v31  ;;  %vm2612_vm0 = vweird.f32 %v6077_v0 }
 0x39c   :  { %v2491_v14 = vadd.f32 %v4793_v22, %v2490_v5  ;;  %v2473_v54 = vmul.f32 %v6089_v44, %v6051_v6  ;;  %1840 = vmatmul.f32.gmra.mxu0 %v5926_v11  ;;  %1905 = vmatmul.f32.gmra.mxu1 %v5926_v11  ;;  %v4803_v2 = vpop.eup %4802  ;;  %v2616_v11 = vand.u32 2147483647, %v6077_v0  ;;  %vm2478_vm14 = vweird.f32 %v6089_v44  ;;  %vm6133_vm15 = vmor %vm2462_vm5, %vm2463_vm13 }
 0x39d   :  { %v2506_v63 = vadd.f32 %v4795_v17, %v2505_v50  ;;  %v2459_v60 = vsub.f32 1.0, %v2458_v61  ;;  %v4805_v3 = vpop.eup %4804  ;;  %v6124_v37 = vadd.f32 1.0, %v4803_v2  ;;  %vm2479_vm2 = vmor %vm2477_vm7, %vm2478_vm14  ;;  %v2619_v27 = vor.u32 1.1754944e-38, %v2618_v16 }
 0x39e   :  { %v2495_v36 = vsel %vm2494_vm11, %v4793_v22, %v2491_v14  ;;  %v2474_v24 = vsub.f32 1.0, %v2473_v54  ;;  %vm6139_vm1 = vcmp.eq.f32.partialorder %v2616_v11, 8.507059e+37  ;;  %v4592_v50 = vmul.f32 -1.442695, %v1449_v56 }
 0x39f   :  { %v2500_v33 = vsel %vm6062_vm3, %v2499_v7, %v2495_v36  ;;  %v2510_v8 = vsel %vm2509_vm12, %v4795_v17, %v2506_v63  ;;  %v2460_v25 = vmul.f32 %v6085_v31, %v2459_v60  ;;  %v2608_v7 = vmul.f32 %v4805_v3, %v6077_v0 }
 0x3a0   :  { %4379 = vst [vmem:[#allocation10 + $0x10] sm:$0xff] %v2500_v33  ;;  %v2515_v55 = vsel %vm6069_vm4, %v2514_v42, %v2510_v8  ;;  %v2475_v22 = vmul.f32 %v6089_v44, %v2474_v24  ;;  %v4594_v17 = vmul.f32 -1.442695, %v1579_v9  ;;  %4808 = vrcp.f32 %v6124_v37  ;;  %v1513_v9 = vpop.f32.mrf.mxu3  ;;  %v6144_v39 = vpop.eup %4806 }
 0x3a1   :  { %4380 = vst [vmem:[#allocation10 + $0x18] sm:$0xff] %v2515_v55  ;;  %v2461_v18 = vadd.f32 %v6085_v31, %v2460_v25  ;;  %v2609_v20 = vsub.f32 1.0, %v2608_v7  ;;  %4810 = vpow2.f32 %v4585_v1  ;;  %v2623_v47 = vmul.f32 %v6144_v39, %v6080_v30  ;;  %v1451_v8 = vpop.f32.mrf.mxu2 }
 0x3a2   :  { %v2476_v26 = vadd.f32 %v6089_v44, %v2475_v22  ;;  %vm2627_vm3 = vweird.f32 %v6080_v30  ;;  %vm2613_vm4 = vweird.f32 %v4805_v3  ;;  %4812 = vpow2.f32 %v4594_v17  ;;  %v1584_v17 = vpop.f32.mrf.mxu0 }
 0x3a3   :  { %v2465_v45 = vsel %vm6133_vm15, %v6085_v31, %v2461_v18  ;;  %1713 = vmatmul.f32.gmra.mxu2 %v5933_v34  ;;  %1778 = vmatmul.f32.gmra.mxu3 %v5933_v34  ;;  %v2610_v28 = vmul.f32 %v4805_v3, %v2609_v20  ;;  %v2631_v31 = vand.u32 2147483647, %v6080_v30  ;;  %v2624_v5 = vsub.f32 1.0, %v2623_v47  ;;  %vm2614_vm5 = vmor %vm2612_vm0, %vm2613_vm4 }
 0x3a4   :  { %v2470_v46 = vsel %vm6093_vm9, %v2469_v52, %v2465_v45  ;;  %v2480_v38 = vsel %vm2479_vm2, %v6089_v44, %v2476_v26  ;;  %1843 = vmatmul.f32.gmra.mxu0 %v5933_v34  ;;  %1908 = vmatmul.f32.gmra.mxu1 %v5933_v34  ;;  %v4595_v44 = vmul.f32 -1.442695, %v6083_v43  ;;  %v2633_v59 = vand.u32 2147483648, %v6080_v30  ;;  %v1646_v43 = vpop.f32.mrf.mxu1 }
 0x3a5   :  { %4377 = vst [vmem:[#allocation10] sm:$0xff] %v2470_v46  ;;  %v2485_v6 = vsel %vm6101_vm10, %v2484_v12, %v2480_v38  ;;  %v2611_v61 = vadd.f32 %v4805_v3, %v2610_v28  ;;  %v2586_v52 = vand.u32 2147483647, %v6124_v37  ;;  %v1514_v34 = vadd.f32 %v1513_v9, %v6026_v21 }
 0x3a6   :  { %4378 = vst [vmem:[#allocation10 + $0x8] sm:$0xff] %v2485_v6  ;;  %v4809_v14 = vpop.eup %4808  ;;  %v2625_v54 = vmul.f32 %v6144_v39, %v2624_v5  ;;  %vm2628_vm6 = vweird.f32 %v6144_v39  ;;  %v2588_v40 = vand.u32 2147483648, %v6124_v37  ;;  %4814 = vpow2.f32 %v4595_v44 }
 0x3a7   :  { %v4811_v12 = vpop.eup %4810  ;;  %v2615_v63 = vsel %vm2614_vm5, %v4805_v3, %v2611_v61  ;;  %v2578_v60 = vmul.f32 %v4809_v14, %v6124_v37  ;;  %4816 = vpow2.f32 %v4592_v50  ;;  %v1582_v1 = vadd.f32 %v1581_v41, %v6016_v48  ;;  %vm6184_vm7 = vmor %vm2627_vm3, %vm2628_vm6 }
 0x3a8   :  { %v2620_v2 = vsel %vm6139_vm1, %v2619_v27, %v2615_v63  ;;  %v2626_v0 = vadd.f32 %v6144_v39, %v2625_v54  ;;  %v6180_v36 = vadd.f32 1.0, %v4811_v12  ;;  %v4593_v24 = vmul.f32 -1.442695, %v1514_v34  ;;  %v4813_v25 = vpop.eup %4812  ;;  %v1516_v3 = vpop.f32.mrf.mxu3 }
 0x3a9   :  { %4387 = vst [vmem:[#allocation10 + $0x50] sm:$0xff] %v2620_v2  ;;  %vm2632_vm8 = vcmp.eq.f32.partialorder %v2631_v31, 8.507059e+37  ;;  %v2634_v53 = vor.u32 1.1754944e-38, %v2633_v59  ;;  %v2579_v33 = vsub.f32 1.0, %v2578_v60  ;;  %vm2582_vm9 = vweird.f32 %v6124_v37 }
 0x3aa   :  { %v2630_v16 = vsel %vm6184_vm7, %v6144_v39, %v2626_v0  ;;  %vm2583_vm10 = vweird.f32 %v4809_v14  ;;  %4818 = vrcp.f32 %v6180_v36  ;;  %v1647_v30 = vadd.f32 %v1646_v43, %v6018_v57 }
 0x3ab   :  { %1716 = vmatmul.f32.gmra.mxu2 %v5940_v23  ;;  %1781 = vmatmul.f32.gmra.mxu3 %v5940_v23  ;;  %v2635_v55 = vsel %vm2632_vm8, %v2634_v53, %v2630_v16  ;;  %v2580_v22 = vmul.f32 %v4809_v14, %v2579_v33  ;;  %v6198_v18 = vadd.f32 1.0, %v4813_v25  ;;  %v4602_v7 = vmul.f32 -1.442695, %v1582_v1  ;;  %vm2584_vm12 = vmor %vm2582_vm9, %vm2583_vm10 }
 0x3ac   :  { %1846 = vmatmul.f32.gmra.mxu0 %v5940_v23  ;;  %1911 = vmatmul.f32.gmra.mxu1 %v5940_v23  ;;  %v4815_v56 = vpop.eup %4814  ;;  %4388 = vst [vmem:[#allocation10 + $0x58] sm:$0xff] %v2635_v55  ;;  %vm6200_vm11 = vcmp.eq.f32.partialorder %v2586_v52, 8.507059e+37  ;;  %v2589_v26 = vor.u32 1.1754944e-38, %v2588_v40  ;;  %4820 = vpow2.f32 %v4593_v24  ;;  %v1452_v10 = vadd.f32 %v1451_v8, %v6024_v13  ;;  %v1649_v5 = vpop.f32.mrf.mxu1 }
 0x3ad   :  { %v4817_v9 = vpop.eup %4816  ;;  %v2581_v39 = vadd.f32 %v4809_v14, %v2580_v22  ;;  %v2601_v23 = vand.u32 2147483647, %v6180_v36  ;;  %4822 = vrcp.f32 %v6198_v18  ;;  %v1517_v45 = vadd.f32 %v1516_v3, %v6026_v21 }
 0x3ae   :  { %v2603_v20 = vand.u32 2147483648, %v6180_v36  ;;  %v6212_v27 = vadd.f32 1.0, %v4815_v56  ;;  %v6214_v41 = vadd.f32 1.0, %v4817_v9  ;;  %v1585_v46 = vadd.f32 %v1584_v17, %v6016_v48 }
 0x3af   :  { %v2585_v38 = vsel %vm2584_vm12, %v4809_v14, %v2581_v39  ;;  %vm2597_vm13 = vweird.f32 %v6180_v36  ;;  %4824 = vpow2.f32 %v4602_v7  ;;  %v4603_v47 = vmul.f32 -1.442695, %v1647_v30 }
 0x3b0   :  { %v4819_v6 = vpop.eup %4818  ;;  %v2590_v28 = vsel %vm6200_vm11, %v2589_v26, %v2585_v38  ;;  %v2736_v37 = vand.u32 2147483647, %v6198_v18  ;;  %v2738_v31 = vand.u32 2147483648, %v6198_v18  ;;  %4826 = vrcp.f32 %v6212_v27 }
 0x3b1   :  { %4385 = vst [vmem:[#allocation10 + $0x40] sm:$0xff] %v2590_v28  ;;  %v2593_v44 = vmul.f32 %v4819_v6, %v6180_v36  ;;  %vm6224_vm14 = vcmp.eq.f32.partialorder %v2601_v23, 8.507059e+37  ;;  %v4600_v61 = vmul.f32 -1.442695, %v1452_v10  ;;  %v6228_v59 = vmul.f32 -1.442695, %v1517_v45 }
 0x3b2   :  { %v4821_v52 = vpop.eup %4820  ;;  %v2604_v34 = vor.u32 1.1754944e-38, %v2603_v20  ;;  %vm2732_vm15 = vweird.f32 %v6198_v18  ;;  %4828 = vrcp.f32 %v6214_v41  ;;  %v6234_v14 = vmul.f32 -1.442695, %v1585_v46 }
 0x3b3   :  { %1719 = vmatmul.f32.gmra.mxu2 %v5947_v58  ;;  %1784 = vmatmul.f32.gmra.mxu3 %v5947_v58  ;;  %v4823_v54 = vpop.eup %4822  ;;  %v2594_v40 = vsub.f32 1.0, %v2593_v44  ;;  %v2751_v43 = vand.u32 2147483647, %v6212_v27  ;;  %v6239_v12 = vadd.f32 1.0, %v4821_v52  ;;  %v6242_v63 = vadd.f32 %v1649_v5, %v6018_v57 }
 0x3b4   :  { %1849 = vmatmul.f32.gmra.mxu0 %v5947_v58  ;;  %1914 = vmatmul.f32.gmra.mxu1 %v5947_v58  ;;  %v2728_v60 = vmul.f32 %v4823_v54, %v6198_v18  ;;  %vm6245_vm0 = vcmp.eq.f32.partialorder %v2736_v37, 8.507059e+37  ;;  %v2739_v2 = vor.u32 1.1754944e-38, %v2738_v31  ;;  %v2753_v0 = vand.u32 2147483648, %v6212_v27 }
 0x3b5   :  { %v4825_v24 = vpop.eup %4824  ;;  %v2595_v58 = vmul.f32 %v4819_v6, %v2594_v40  ;;  %vm2598_vm1 = vweird.f32 %v4819_v6  ;;  %v2706_v11 = vand.u32 2147483647, %v6214_v41  ;;  %4830 = vrcp.f32 %v6239_v12 }
 0x3b6   :  { %v4827_v53 = vpop.eup %4826  ;;  %v2729_v33 = vsub.f32 1.0, %v2728_v60  ;;  %vm2747_vm2 = vweird.f32 %v6212_v27  ;;  %v2708_v8 = vand.u32 2147483648, %v6214_v41  ;;  %v6254_v25 = vadd.f32 1.0, %v4825_v24  ;;  %vm2599_vm5 = vmor %vm2597_vm13, %vm2598_vm1 }
 0x3b7   :  { %v2596_v16 = vadd.f32 %v4819_v6, %v2595_v58  ;;  %v2743_v30 = vmul.f32 %v4827_v53, %v6212_v27  ;;  %vm6257_vm3 = vcmp.eq.f32.partialorder %v2751_v43, 8.507059e+37  ;;  %vm2702_vm4 = vweird.f32 %v6214_v41 }
 0x3b8   :  { %4832 = vpow2.f32 %v4603_v47  ;;  %v4829_v55 = vpop.eup %4828  ;;  %v2730_v22 = vmul.f32 %v4823_v54, %v2729_v33  ;;  %vm2733_vm6 = vweird.f32 %v4823_v54  ;;  %v2754_v7 = vor.u32 1.1754944e-38, %v2753_v0 }
 0x3b9   :  { %4834 = vrcp.f32 %v6254_v25  ;;  %v2600_v17 = vsel %vm2599_vm5, %v4819_v6, %v2596_v16  ;;  %v2744_v56 = vsub.f32 1.0, %v2743_v30  ;;  %v2698_v42 = vmul.f32 %v4829_v55, %v6214_v41  ;;  %vm2734_vm8 = vmor %vm2732_vm15, %vm2733_vm6 }
 0x3ba   :  { %vm6266_vm7 = vcmp.eq.f32.partialorder %v2706_v11, 8.507059e+37  ;;  %v2605_v36 = vsel %vm6224_vm14, %v2604_v34, %v2600_v17  ;;  %v2731_v10 = vadd.f32 %v4823_v54, %v2730_v22  ;;  %v2709_v9 = vor.u32 1.1754944e-38, %v2708_v8  ;;  %v1519_v8 = vpop.f32.mrf.mxu3  ;;  %v1587_v22 = vpop.f32.mrf.mxu0 }
 0x3bb   :  { %1722 = vmatmul.f32.gmra.mxu2 %v5954_v62  ;;  %1787 = vmatmul.f32.gmra.mxu3 %v5954_v62  ;;  %v2723_v39 = vand.u32 2147483648, %v6239_v12  ;;  %v4831_v23 = vpop.eup %4830  ;;  %4386 = vst [vmem:[#allocation10 + $0x48] sm:$0xff] %v2605_v36  ;;  %v2745_v45 = vmul.f32 %v4827_v53, %v2744_v56  ;;  %vm2748_vm9 = vweird.f32 %v4827_v53  ;;  %v2699_v20 = vsub.f32 1.0, %v2698_v42 }
 0x3bc   :  { %1852 = vmatmul.f32.gmra.mxu0 %v5954_v62  ;;  %1917 = vmatmul.f32.gmra.mxu1 %v5954_v62  ;;  %4836 = vpow2.f32 %v4600_v61  ;;  %v2735_v46 = vsel %vm2734_vm8, %v4823_v54, %v2731_v10  ;;  %v2713_v38 = vmul.f32 %v4831_v23, %v6239_v12  ;;  %vm2717_vm10 = vweird.f32 %v6239_v12  ;;  %vm2749_vm12 = vmor %vm2747_vm2, %vm2748_vm9 }
 0x3bd   :  { %v2721_v47 = vand.u32 2147483647, %v6239_v12  ;;  %v2740_v62 = vsel %vm6245_vm0, %v2739_v2, %v2735_v46  ;;  %v2746_v28 = vadd.f32 %v4827_v53, %v2745_v45  ;;  %v2700_v37 = vmul.f32 %v4829_v55, %v2699_v20  ;;  %v1454_v12 = vpop.f32.mrf.mxu2 }
 0x3be   :  { %v4833_v6 = vpop.eup %4832  ;;  %vm2703_vm11 = vweird.f32 %v4829_v55  ;;  %4395 = vst [vmem:[#allocation10 + $0x90] sm:$0xff] %v2740_v62  ;;  %v2714_v31 = vsub.f32 1.0, %v2713_v38  ;;  %v2724_v5 = vor.u32 1.1754944e-38, %v2723_v39  ;;  %4838 = vpow2.f32 %v6228_v59 }
 0x3bf   :  { %v4835_v18 = vpop.eup %4834  ;;  %v6287_v44 = vadd.f32 1.0, %v4833_v6  ;;  %v2750_v50 = vsel %vm2749_vm12, %v4827_v53, %v2746_v28  ;;  %v2701_v61 = vadd.f32 %v4829_v55, %v2700_v37  ;;  %v4611_v34 = vmul.f32 -1.442695, %v6242_v63  ;;  %vm2704_vm13 = vmor %vm2702_vm4, %vm2703_vm11 }
 0x3c0   :  { %v2848_v52 = vmul.f32 %v4835_v18, %v6254_v25  ;;  %v2755_v54 = vsel %vm6257_vm3, %v2754_v7, %v2750_v50  ;;  %v2715_v27 = vmul.f32 %v4831_v23, %v2714_v31  ;;  %vm2718_vm14 = vweird.f32 %v4831_v23 }
 0x3c1   :  { %4840 = vrcp.f32 %v6287_v44  ;;  %4396 = vst [vmem:[#allocation10 + $0x98] sm:$0xff] %v2755_v54  ;;  %v2705_v43 = vsel %vm2704_vm13, %v4829_v55, %v2701_v61  ;;  %v2856_v60 = vand.u32 2147483647, %v6254_v25  ;;  %v2858_v1 = vand.u32 2147483648, %v6254_v25  ;;  %vm2719_vm15 = vmor %vm2717_vm10, %vm2718_vm14 }
 0x3c2   :  { %v4837_v40 = vpop.eup %4836  ;;  %v2849_v59 = vsub.f32 1.0, %v2848_v52  ;;  %v2710_v41 = vsel %vm6266_vm7, %v2709_v9, %v2705_v43  ;;  %v2716_v63 = vadd.f32 %v4831_v23, %v2715_v27  ;;  %4842 = vpow2.f32 %v6234_v14  ;;  %v1652_v52 = vpop.f32.mrf.mxu1 }
 0x3c3   :  { %1725 = vmatmul.f32.gmra.mxu2 %v5961_v29  ;;  %1790 = vmatmul.f32.gmra.mxu3 %v5961_v29  ;;  %v6303_v2 = vadd.f32 1.0, %v4837_v40  ;;  %4393 = vst [vmem:[#allocation10 + $0x80] sm:$0xff] %v2710_v41  ;;  %vm2853_vm0 = vweird.f32 %v4835_v18  ;;  %v2871_v24 = vand.u32 2147483647, %v6287_v44  ;;  %4844 = vpow2.f32 %v4611_v34 }
 0x3c4   :  { %1855 = vmatmul.f32.gmra.mxu0 %v5961_v29  ;;  %1920 = vmatmul.f32.gmra.mxu1 %v5961_v29  ;;  %v2850_v0 = vmul.f32 %v4835_v18, %v2849_v59  ;;  %v4839_v58 = vpop.eup %4838  ;;  %v2720_v11 = vsel %vm2719_vm15, %v4831_v23, %v2716_v63  ;;  %vm2722_vm1 = vcmp.eq.f32.partialorder %v2721_v47, 8.507059e+37  ;;  %vm2852_vm2 = vweird.f32 %v6254_v25 }
 0x3c5   :  { %4846 = vrcp.f32 %v6303_v2  ;;  %v2725_v14 = vsel %vm2722_vm1, %v2724_v5, %v2720_v11  ;;  %v2873_v29 = vand.u32 2147483648, %v6287_v44  ;;  %v6315_v33 = vadd.f32 1.0, %v4839_v58  ;;  %vm2854_vm3 = vmor %vm2852_vm2, %vm2853_vm0  ;;  %v1457_v59 = vpop.f32.mrf.mxu2 }
 0x3c6   :  { %v2851_v53 = vadd.f32 %v4835_v18, %v2850_v0  ;;  %4394 = vst [vmem:[#allocation10 + $0x88] sm:$0xff] %v2725_v14  ;;  %vm2857_vm4 = vcmp.eq.f32.partialorder %v2856_v60, 8.507059e+37  ;;  %v2859_v30 = vor.u32 1.1754944e-38, %v2858_v1  ;;  %vm2867_vm5 = vweird.f32 %v6287_v44  ;;  %v1522_v60 = vpop.f32.mrf.mxu3 }
 0x3c7   :  { %v4841_v16 = vpop.eup %4840  ;;  %vm6320_vm6 = vcmp.eq.f32.partialorder %v2871_v24, 8.507059e+37  ;;  %v2826_v56 = vand.u32 2147483647, %v6303_v2  ;;  %4848 = vrcp.f32 %v6315_v33  ;;  %v1455_v42 = vadd.f32 %v1454_v12, %v6024_v13 }
 0x3c8   :  { %v2855_v3 = vsel %vm2854_vm3, %v4835_v18, %v2851_v53  ;;  %v2863_v55 = vmul.f32 %v4841_v16, %v6287_v44  ;;  %v4843_v7 = vpop.eup %4842  ;;  %v2874_v10 = vor.u32 1.1754944e-38, %v2873_v29  ;;  %v1520_v39 = vadd.f32 %v1519_v8, %v6026_v21 }
 0x3c9   :  { %v2860_v17 = vsel %vm2857_vm4, %v2859_v30, %v2855_v3  ;;  %v4845_v26 = vpop.eup %4844  ;;  %v6327_v9 = vadd.f32 1.0, %v4843_v7  ;;  %vm2868_vm7 = vweird.f32 %v4841_v16  ;;  %v2828_v45 = vand.u32 2147483648, %v6303_v2 }
 0x3ca   :  { %4403 = vst [vmem:[#allocation10 + $0xd0] sm:$0xff] %v2860_v17  ;;  %v2864_v36 = vsub.f32 1.0, %v2863_v55  ;;  %v6333_v20 = vadd.f32 1.0, %v4845_v26  ;;  %v1588_v46 = vadd.f32 %v1587_v22, %v6016_v48  ;;  %v2841_v6 = vand.u32 2147483647, %v6315_v33  ;;  %vm2869_vm10 = vmor %vm2867_vm5, %vm2868_vm7 }
 0x3cb   :  { %1728 = vmatmul.f32.gmra.mxu2 %v5968_v15  ;;  %1793 = vmatmul.f32.gmra.mxu3 %v5968_v15  ;;  %v4847_v23 = vpop.eup %4846  ;;  %v2843_v62 = vand.u32 2147483648, %v6315_v33  ;;  %vm2822_vm8 = vweird.f32 %v6303_v2  ;;  %vm6342_vm9 = vcmp.eq.f32.partialorder %v2826_v56, 8.507059e+37  ;;  %4850 = vrcp.f32 %v6327_v9 }
 0x3cc   :  { %1858 = vmatmul.f32.gmra.mxu0 %v5968_v15  ;;  %1923 = vmatmul.f32.gmra.mxu1 %v5968_v15  ;;  %v2865_v38 = vmul.f32 %v4841_v16, %v2864_v36  ;;  %v2818_v47 = vmul.f32 %v4847_v23, %v6303_v2  ;;  %v4608_v37 = vmul.f32 -1.442695, %v1455_v42  ;;  %4852 = vrcp.f32 %v6333_v20 }
 0x3cd   :  { %v4609_v15 = vmul.f32 -1.442695, %v1520_v39  ;;  %v4849_v5 = vpop.eup %4848  ;;  %vm2823_vm11 = vweird.f32 %v4847_v23  ;;  %v2829_v50 = vor.u32 1.1754944e-38, %v2828_v45  ;;  %vm2837_vm12 = vweird.f32 %v6315_v33  ;;  %v1590_v39 = vpop.f32.mrf.mxu0 }
 0x3ce   :  { %v2866_v18 = vadd.f32 %v4841_v16, %v2865_v38  ;;  %v2819_v31 = vsub.f32 1.0, %v2818_v47  ;;  %v4618_v61 = vmul.f32 -1.442695, %v1588_v46  ;;  %v2833_v27 = vmul.f32 %v4849_v5, %v6315_v33  ;;  %vm2824_vm15 = vmor %vm2822_vm8, %vm2823_vm11 }
 0x3cf   :  { %vm6353_vm13 = vcmp.eq.f32.partialorder %v2841_v6, 8.507059e+37  ;;  %v2844_v43 = vor.u32 1.1754944e-38, %v2843_v62  ;;  %v2976_v1 = vand.u32 2147483647, %v6327_v9  ;;  %v2978_v41 = vand.u32 2147483648, %v6327_v9 }
 0x3d0   :  { %v2870_v34 = vsel %vm2869_vm10, %v4841_v16, %v2866_v18  ;;  %v2820_v54 = vmul.f32 %v4847_v23, %v2819_v31  ;;  %4854 = vpow2.f32 %v4608_v37  ;;  %v2834_v0 = vsub.f32 1.0, %v2833_v27  ;;  %v1655_v31 = vpop.f32.mrf.mxu1 }
 0x3d1   :  { %v2875_v44 = vsel %vm6320_vm6, %v2874_v10, %v2870_v34  ;;  %vm2972_vm14 = vweird.f32 %v6327_v9  ;;  %4856 = vpow2.f32 %v4609_v15  ;;  %v1653_v24 = vadd.f32 %v1652_v52, %v6018_v57  ;;  %v4851_v58 = vpop.eup %4850 }
 0x3d2   :  { %4404 = vst [vmem:[#allocation10 + $0xd8] sm:$0xff] %v2875_v44  ;;  %v2821_v63 = vadd.f32 %v4847_v23, %v2820_v54  ;;  %vm2838_vm0 = vweird.f32 %v4849_v5  ;;  %v2991_v11 = vand.u32 2147483647, %v6333_v20  ;;  %v1458_v14 = vadd.f32 %v1457_v59, %v6024_v13  ;;  %v4853_v29 = vpop.eup %4852 }
 0x3d3   :  { %1731 = vmatmul.f32.gmra.mxu2 %v5975_v4  ;;  %1796 = vmatmul.f32.gmra.mxu3 %v5975_v4  ;;  %v1523_v53 = vadd.f32 %v1522_v60, %v6026_v21  ;;  %v2835_v8 = vmul.f32 %v4849_v5, %v2834_v0  ;;  %v2968_v16 = vmul.f32 %v4851_v58, %v6327_v9  ;;  %4858 = vpow2.f32 %v4618_v61  ;;  %vm2839_vm1 = vmor %vm2837_vm12, %vm2838_vm0 }
 0x3d4   :  { %1861 = vmatmul.f32.gmra.mxu0 %v5975_v4  ;;  %1926 = vmatmul.f32.gmra.mxu1 %v5975_v4  ;;  %v2825_v12 = vsel %vm2824_vm15, %v4847_v23, %v2821_v63  ;;  %v2983_v30 = vmul.f32 %v4853_v29, %v6333_v20  ;;  %v2993_v3 = vand.u32 2147483648, %v6333_v20  ;;  %v4619_v55 = vmul.f32 -1.442695, %v1653_v24 }
 0x3d5   :  { %v2830_v2 = vsel %vm6342_vm9, %v2829_v50, %v2825_v12  ;;  %v2836_v25 = vadd.f32 %v4849_v5, %v2835_v8  ;;  %v2969_v22 = vsub.f32 1.0, %v2968_v16  ;;  %v4616_v7 = vmul.f32 -1.442695, %v1458_v14 }
 0x3d6   :  { %4401 = vst [vmem:[#allocation10 + $0xc0] sm:$0xff] %v2830_v2  ;;  %v4617_v17 = vmul.f32 -1.442695, %v1523_v53  ;;  %v4855_v4 = vpop.eup %4854  ;;  %vm2973_vm2 = vweird.f32 %v4851_v58  ;;  %v2984_v56 = vsub.f32 1.0, %v2983_v30  ;;  %vm2988_vm3 = vweird.f32 %v4853_v29  ;;  %v1460_v30 = vpop.f32.mrf.mxu2 }
 0x3d7   :  { %4860 = vpow2.f32 %v4619_v55  ;;  %v4857_v42 = vpop.eup %4856  ;;  %v2840_v26 = vsel %vm2839_vm1, %v4849_v5, %v2836_v25  ;;  %v2970_v36 = vmul.f32 %v4851_v58, %v2969_v22  ;;  %v6381_v10 = vadd.f32 1.0, %v4855_v4  ;;  %vm2974_vm6 = vmor %vm2972_vm14, %vm2973_vm2  ;;  %v1525_v22 = vpop.f32.mrf.mxu3 }
 0x3d8   :  { %4862 = vpow2.f32 %v4616_v7  ;;  %v2845_v23 = vsel %vm6353_vm13, %v2844_v43, %v2840_v26  ;;  %v2985_v45 = vmul.f32 %v4853_v29, %v2984_v56  ;;  %v6385_v46 = vadd.f32 1.0, %v4857_v42 }
 0x3d9   :  { %4864 = vpow2.f32 %v4617_v17  ;;  %v4859_v33 = vpop.eup %4858  ;;  %4402 = vst [vmem:[#allocation10 + $0xc8] sm:$0xff] %v2845_v23  ;;  %v2971_v38 = vadd.f32 %v4851_v58, %v2970_v36  ;;  %vm6387_vm4 = vcmp.eq.f32.partialorder %v2976_v1, 8.507059e+37  ;;  %vm2987_vm5 = vweird.f32 %v6333_v20 }
 0x3da   :  { %4866 = vrcp.f32 %v6381_v10  ;;  %v2979_v6 = vor.u32 1.1754944e-38, %v2978_v41  ;;  %v2986_v62 = vadd.f32 %v4853_v29, %v2985_v45  ;;  %v1591_v28 = vadd.f32 %v1590_v39, %v6016_v48  ;;  %vm2989_vm7 = vmor %vm2987_vm5, %vm2988_vm3 }
 0x3db   :  { %1734 = vmatmul.f32.gmra.mxu2 %v5982_v49  ;;  %1799 = vmatmul.f32.gmra.mxu3 %v5982_v49  ;;  %4868 = vrcp.f32 %v6385_v46  ;;  %v2975_v20 = vsel %vm2974_vm6, %v4851_v58, %v2971_v38  ;;  %vm2992_vm8 = vcmp.eq.f32.partialorder %v2991_v11, 8.507059e+37  ;;  %v2994_v37 = vor.u32 1.1754944e-38, %v2993_v3 }
 0x3dc   :  { %1864 = vmatmul.f32.gmra.mxu0 %v5982_v49  ;;  %1929 = vmatmul.f32.gmra.mxu1 %v5982_v49  ;;  %v2946_v18 = vand.u32 2147483647, %v6381_v10  ;;  %v2980_v15 = vsel %vm6387_vm4, %v2979_v6, %v2975_v20  ;;  %v2990_v5 = vsel %vm2989_vm7, %v4853_v29, %v2986_v62  ;;  %v2948_v50 = vand.u32 2147483648, %v6381_v10 }
 0x3dd   :  { %v4861_v9 = vpop.eup %4860  ;;  %v6407_v61 = vadd.f32 1.0, %v4859_v33  ;;  %4411 = vst [vmem:[#allocation10 + $0x110] sm:$0xff] %v2980_v15  ;;  %v2995_v49 = vsel %vm2992_vm8, %v2994_v37, %v2990_v5  ;;  %v2961_v34 = vand.u32 2147483647, %v6385_v46  ;;  %v4626_v40 = vmul.f32 -1.442695, %v1591_v28 }
 0x3de   :  { %v4863_v52 = vpop.eup %4862  ;;  %v6410_v54 = vadd.f32 1.0, %v4861_v9  ;;  %4412 = vst [vmem:[#allocation10 + $0x118] sm:$0xff] %v2995_v49  ;;  %v1656_v43 = vadd.f32 %v1655_v31, %v6018_v57  ;;  %vm2942_vm9 = vweird.f32 %v6381_v10  ;;  %vm2957_vm10 = vweird.f32 %v6385_v46  ;;  %v1593_v31 = vpop.f32.mrf.mxu0 }
 0x3df   :  { %v4865_v27 = vpop.eup %4864  ;;  %4870 = vrcp.f32 %v6407_v61  ;;  %v2963_v60 = vand.u32 2147483648, %v6385_v46  ;;  %vm6419_vm11 = vcmp.eq.f32.partialorder %v2946_v18, 8.507059e+37  ;;  %v2949_v63 = vor.u32 1.1754944e-38, %v2948_v50 }
 0x3e0   :  { %v4867_v59 = vpop.eup %4866  ;;  %4872 = vrcp.f32 %v6410_v54  ;;  %v3098_v0 = vand.u32 2147483648, %v6407_v61  ;;  %vm6425_vm12 = vcmp.eq.f32.partialorder %v2961_v34, 8.507059e+37  ;;  %v3096_v11 = vand.u32 2147483647, %v6407_v61  ;;  %v1658_v34 = vpop.f32.mrf.mxu1 }
 0x3e1   :  { %v4869_v44 = vpop.eup %4868  ;;  %v2938_v1 = vmul.f32 %v4867_v59, %v6381_v10  ;;  %v3113_v14 = vand.u32 2147483648, %v6410_v54  ;;  %v3111_v29 = vand.u32 2147483647, %v6410_v54  ;;  %v6434_v12 = vadd.f32 1.0, %v4863_v52 }
 0x3e2   :  { %v2953_v24 = vmul.f32 %v4869_v44, %v6385_v46  ;;  %4874 = vpow2.f32 %v4626_v40  ;;  %v2964_v16 = vor.u32 1.1754944e-38, %v2963_v60  ;;  %vm3092_vm13 = vweird.f32 %v6407_v61 }
 0x3e3   :  { %1737 = vmatmul.f32.gmra.mxu2 %v5989_v51  ;;  %1802 = vmatmul.f32.gmra.mxu3 %v5989_v51  ;;  %v2939_v53 = vsub.f32 1.0, %v2938_v1  ;;  %v6439_v2 = vadd.f32 1.0, %v4865_v27  ;;  %vm2943_vm14 = vweird.f32 %v4867_v59  ;;  %v3099_v25 = vor.u32 1.1754944e-38, %v3098_v0 }
 0x3e4   :  { %1867 = vmatmul.f32.gmra.mxu0 %v5989_v51  ;;  %1932 = vmatmul.f32.gmra.mxu1 %v5989_v51  ;;  %v2954_v8 = vsub.f32 1.0, %v2953_v24  ;;  %vm3107_vm15 = vweird.f32 %v6410_v54  ;;  %4876 = vrcp.f32 %v6434_v12  ;;  %vm2958_vm0 = vweird.f32 %v4869_v44  ;;  %vm2944_vm3 = vmor %vm2942_vm9, %vm2943_vm14 }
 0x3e5   :  { %v6441_v3 = vpop.eup %4870  ;;  %v2940_v55 = vmul.f32 %v4867_v59, %v2939_v53  ;;  %vm6447_vm1 = vcmp.eq.f32.partialorder %v3096_v11, 8.507059e+37  ;;  %v3114_v56 = vor.u32 1.1754944e-38, %v3113_v14  ;;  %vm6452_vm2 = vcmp.eq.f32.partialorder %v3111_v29, 8.507059e+37  ;;  %vm2959_vm4 = vmor %vm2957_vm10, %vm2958_vm0 }
 0x3e6   :  { %v4873_v7 = vpop.eup %4872  ;;  %v2955_v17 = vmul.f32 %v4869_v44, %v2954_v8  ;;  %v3088_v51 = vmul.f32 %v6441_v3, %v6407_v61  ;;  %v4627_v39 = vmul.f32 -1.442695, %v1656_v43  ;;  %v1461_v23 = vadd.f32 %v1460_v30, %v6024_v13 }
 0x3e7   :  { %v2941_v42 = vadd.f32 %v4867_v59, %v2940_v55  ;;  %v3103_v26 = vmul.f32 %v4873_v7, %v6410_v54  ;;  %4878 = vrcp.f32 %v6439_v2  ;;  %v1526_v38 = vadd.f32 %v1525_v22, %v6026_v21 }
 0x3e8   :  { %v2956_v45 = vadd.f32 %v4869_v44, %v2955_v17  ;;  %v3089_v33 = vsub.f32 1.0, %v3088_v51  ;;  %v4875_v47 = vpop.eup %4874  ;;  %v3066_v28 = vand.u32 2147483647, %v6434_v12  ;;  %v3068_v20 = vand.u32 2147483648, %v6434_v12 }
 0x3e9   :  { %v2945_v6 = vsel %vm2944_vm3, %v4867_v59, %v2941_v42  ;;  %v3104_v62 = vsub.f32 1.0, %v3103_v26  ;;  %vm3093_vm5 = vweird.f32 %v6441_v3  ;;  %vm3108_vm6 = vweird.f32 %v4873_v7 }
 0x3ea   :  { %v2950_v10 = vsel %vm6419_vm11, %v2949_v63, %v2945_v6  ;;  %v2960_v37 = vsel %vm2959_vm4, %v4869_v44, %v2956_v45  ;;  %v3090_v18 = vmul.f32 %v6441_v3, %v3089_v33  ;;  %v6473_v46 = vpop.eup %4876  ;;  %v6477_v5 = vadd.f32 1.0, %v4875_v47  ;;  %vm3094_vm8 = vmor %vm3092_vm13, %vm3093_vm5  ;;  %v1463_v63 = vpop.f32.mrf.mxu2 }
 0x3eb   :  { %1740 = vmatmul.f32.gmra.mxu2 %v5996_v19  ;;  %1805 = vmatmul.f32.gmra.mxu3 %v5996_v19  ;;  %4409 = vst [vmem:[#allocation10 + $0x100] sm:$0xff] %v2950_v10  ;;  %v2965_v9 = vsel %vm6425_vm12, %v2964_v16, %v2960_v37  ;;  %v3105_v15 = vmul.f32 %v4873_v7, %v3104_v62  ;;  %vm3062_vm7 = vweird.f32 %v6434_v12  ;;  %v3081_v49 = vand.u32 2147483647, %v6439_v2  ;;  %vm3109_vm10 = vmor %vm3107_vm15, %vm3108_vm6 }
 0x3ec   :  { %1870 = vmatmul.f32.gmra.mxu0 %v5996_v19  ;;  %1935 = vmatmul.f32.gmra.mxu1 %v5996_v19  ;;  %4410 = vst [vmem:[#allocation10 + $0x108] sm:$0xff] %v2965_v9  ;;  %v3091_v50 = vadd.f32 %v6441_v3, %v3090_v18  ;;  %v3058_v52 = vmul.f32 %v6473_v46, %v6434_v12  ;;  %vm6490_vm9 = vcmp.eq.f32.partialorder %v3066_v28, 8.507059e+37  ;;  %v3069_v19 = vor.u32 1.1754944e-38, %v3068_v20 }
 0x3ed   :  { %v3106_v27 = vadd.f32 %v4873_v7, %v3105_v15  ;;  %4880 = vrcp.f32 %v6477_v5  ;;  %v4879_v43 = vpop.eup %4878  ;;  %v3083_v44 = vand.u32 2147483648, %v6439_v2  ;;  %vm3077_vm11 = vweird.f32 %v6439_v2 }
 0x3ee   :  { %v3095_v59 = vsel %vm3094_vm8, %v6441_v3, %v3091_v50  ;;  %v3059_v60 = vsub.f32 1.0, %v3058_v52  ;;  %4882 = vpow2.f32 %v4627_v39  ;;  %v3073_v41 = vmul.f32 %v4879_v43, %v6439_v2 }
 0x3ef   :  { %v3100_v61 = vsel %vm6447_vm1, %v3099_v25, %v3095_v59  ;;  %v3110_v1 = vsel %vm3109_vm10, %v4873_v7, %v3106_v27  ;;  %vm3063_vm12 = vweird.f32 %v6473_v46  ;;  %vm6508_vm13 = vcmp.eq.f32.partialorder %v3081_v49, 8.507059e+37  ;;  %v1528_v7 = vpop.f32.mrf.mxu3 }
 0x3f0   :  { %4419 = vst [vmem:[#allocation10 + $0x150] sm:$0xff] %v3100_v61  ;;  %v3115_v0 = vsel %vm6452_vm2, %v3114_v56, %v3110_v1  ;;  %v3060_v54 = vmul.f32 %v6473_v46, %v3059_v60  ;;  %v3074_v58 = vsub.f32 1.0, %v3073_v41  ;;  %v4624_v11 = vmul.f32 -1.442695, %v1461_v23  ;;  %vm6519_vm14 = vmor %vm3062_vm7, %vm3063_vm12  ;;  %v1596_v56 = vpop.f32.mrf.mxu0 }
 0x3f1   :  { %4420 = vst [vmem:[#allocation10 + $0x158] sm:$0xff] %v3115_v0  ;;  %v4625_v14 = vmul.f32 -1.442695, %v1526_v38  ;;  %v1594_v53 = vadd.f32 %v1593_v31, %v6016_v48  ;;  %v3084_v8 = vor.u32 1.1754944e-38, %v3083_v44  ;;  %v1659_v16 = vadd.f32 %v1658_v34, %v6018_v57  ;;  %v1661_v38 = vpop.f32.mrf.mxu1 }
 0x3f2   :  { %v3061_v29 = vadd.f32 %v6473_v46, %v3060_v54  ;;  %v1464_v30 = vadd.f32 %v1463_v63, %v6024_v13  ;;  %v3075_v25 = vmul.f32 %v4879_v43, %v3074_v58  ;;  %vm3078_vm15 = vweird.f32 %v4879_v43  ;;  %v1466_v40 = vpop.f32.mrf.mxu2 }
 0x3f3   :  { %1743 = vmatmul.f32.gmra.mxu2 %v6003_v35  ;;  %v4881_v3 = vpop.eup %4880  ;;  %4884 = vpow2.f32 %v4624_v11  ;;  %v4634_v22 = vmul.f32 -1.442695, %v1594_v53  ;;  %1808 = vmatmul.f32.gmra.mxu3 %v6003_v35  ;;  %v3216_v4 = vand.u32 2147483647, %v6477_v5  ;;  %v3218_v36 = vand.u32 2147483648, %v6477_v5  ;;  %vm3079_vm0 = vmor %vm3077_vm11, %vm3078_vm15 }
 0x3f4   :  { %1873 = vmatmul.f32.gmra.mxu0 %v6003_v35  ;;  %v4883_v17 = vpop.eup %4882  ;;  %v3065_v51 = vsel %vm6519_vm14, %v6473_v46, %v3061_v29  ;;  %v3208_v12 = vmul.f32 %v4881_v3, %v6477_v5  ;;  %4886 = vpow2.f32 %v4625_v14  ;;  %1938 = vmatmul.f32.gmra.mxu1 %v6003_v35  ;;  %v3076_v26 = vadd.f32 %v4879_v43, %v3075_v25 }
 0x3f5   :  { %v3070_v42 = vsel %vm6490_vm9, %v3069_v19, %v3065_v51  ;;  %v6534_v39 = vadd.f32 1.0, %v4883_v17  ;;  %4888 = vpow2.f32 %v4634_v22  ;;  %v4635_v45 = vmul.f32 -1.442695, %v1659_v16 }
 0x3f6   :  { %4417 = vst [vmem:[#allocation10 + $0x140] sm:$0xff] %v3070_v42  ;;  %v3209_v23 = vsub.f32 1.0, %v3208_v12  ;;  %v4632_v33 = vmul.f32 -1.442695, %v1464_v30  ;;  %v3080_v47 = vsel %vm3079_vm0, %v4879_v43, %v3076_v26  ;;  %v1529_v35 = vadd.f32 %v1528_v7, %v6026_v21 }
 0x3f7   :  { %4890 = vrcp.f32 %v6534_v39  ;;  %v1597_v6 = vadd.f32 %v1596_v56, %v6016_v48  ;;  %v3085_v62 = vsel %vm6508_vm13, %v3084_v8, %v3080_v47  ;;  %vm3213_vm1 = vweird.f32 %v4881_v3  ;;  %v1531_v19 = vpop.f32.mrf.mxu3 }
 0x3f8   :  { %v3210_v28 = vmul.f32 %v4881_v3, %v3209_v23  ;;  %4892 = vpow2.f32 %v4635_v45  ;;  %4418 = vst [vmem:[#allocation10 + $0x148] sm:$0xff] %v3085_v62  ;;  %vm3212_vm2 = vweird.f32 %v6477_v5  ;;  %v1662_v20 = vadd.f32 %v1661_v38, %v6018_v57 }
 0x3f9   :  { %v4885_v2 = vpop.eup %4884  ;;  %4894 = vpow2.f32 %v4632_v33  ;;  %v3231_v18 = vand.u32 2147483647, %v6534_v39  ;;  %v3233_v31 = vand.u32 2147483648, %v6534_v39  ;;  %vm3214_vm3 = vmor %vm3212_vm2, %vm3213_vm1  ;;  %v3219_v9 = vor.u32 1.1754944e-38, %v3218_v36 }
 0x3fa   :  { %v4887_v10 = vpop.eup %4886  ;;  %v3211_v37 = vadd.f32 %v4881_v3, %v3210_v28  ;;  %v6548_v46 = vadd.f32 1.0, %v4885_v2  ;;  %v4633_v50 = vmul.f32 -1.442695, %v1529_v35  ;;  %vm3217_vm4 = vcmp.eq.f32.partialorder %v3216_v4, 8.507059e+37 }
 0x3fb   :  { %1746 = vmatmul.f32.gmra.mxu2 %v6010_v32  ;;  %v6551_v15 = vadd.f32 1.0, %v4887_v10  ;;  %1811 = vmatmul.f32.gmra.mxu3 %v6010_v32  ;;  %v4889_v5 = vpop.eup %4888  ;;  %v4642_v49 = vmul.f32 -1.442695, %v1597_v6  ;;  %vm3227_vm5 = vweird.f32 %v6534_v39  ;;  %vm6560_vm6 = vcmp.eq.f32.partialorder %v3231_v18, 8.507059e+37 }
 0x3fc   :  { %1876 = vmatmul.f32.gmra.mxu0 %v6010_v32  ;;  %v3215_v52 = vsel %vm3214_vm3, %v4881_v3, %v3211_v37  ;;  %4896 = vrcp.f32 %v6548_v46  ;;  %1941 = vmatmul.f32.gmra.mxu1 %v6010_v32  ;;  %v3234_v44 = vor.u32 1.1754944e-38, %v3233_v31  ;;  %v6564_v61 = vmul.f32 -1.442695, %v1662_v20 }
 0x3fd   :  { %v4891_v34 = vpop.eup %4890  ;;  %v3220_v27 = vsel %vm3217_vm4, %v3219_v9, %v3215_v52  ;;  %4898 = vrcp.f32 %v6551_v15  ;;  %v3186_v1 = vand.u32 2147483647, %v6548_v46  ;;  %v6567_v41 = vadd.f32 1.0, %v4889_v5 }
 0x3fe   :  { %v4893_v43 = vpop.eup %4892  ;;  %4427 = vst [vmem:[#allocation10 + $0x190] sm:$0xff] %v3220_v27  ;;  %v3223_v59 = vmul.f32 %v4891_v34, %v6534_v39  ;;  %4900 = vpow2.f32 %v4633_v50  ;;  %v6572_v54 = vadd.f32 %v1466_v40, %v6024_v13  ;;  %v6575_v24 = vadd.f32 %v1531_v19, %v6026_v21  ;;  %v1599_v40 = vpop.f32.mrf.mxu0 }
 0x3ff   :  { %v4895_v32 = vpop.eup %4894  ;;  %v6569_v63 = vadd.f32 1.0, %v4893_v43  ;;  %4902 = vpow2.f32 %v4642_v49  ;;  %v3188_v58 = vand.u32 2147483648, %v6548_v46  ;;  %v3201_v11 = vand.u32 2147483647, %v6551_v15 }
 0x400   :  { %v3224_v0 = vsub.f32 1.0, %v3223_v59  ;;  %4904 = vrcp.f32 %v6567_v41  ;;  %v6580_v14 = vadd.f32 1.0, %v4895_v32  ;;  %vm3228_vm7 = vweird.f32 %v4891_v34 }
 0x401   :  { %v3203_v8 = vand.u32 2147483648, %v6551_v15  ;;  %4906 = vrcp.f32 %v6569_v63  ;;  %vm3182_vm8 = vweird.f32 %v6548_v46  ;;  %vm6586_vm9 = vcmp.eq.f32.partialorder %v3186_v1, 8.507059e+37  ;;  %vm3229_vm11 = vmor %vm3227_vm5, %vm3228_vm7 }
 0x402   :  { %v4897_v53 = vpop.eup %4896  ;;  %v3225_v29 = vmul.f32 %v4891_v34, %v3224_v0  ;;  %vm3197_vm10 = vweird.f32 %v6551_v15  ;;  %v3336_v22 = vand.u32 2147483647, %v6567_v41  ;;  %v3338_v7 = vand.u32 2147483648, %v6567_v41 }
 0x403   :  { %v4899_v16 = vpop.eup %4898  ;;  %v3178_v30 = vmul.f32 %v4897_v53, %v6548_v46  ;;  %v3189_v12 = vor.u32 1.1754944e-38, %v3188_v58  ;;  %vm6596_vm12 = vcmp.eq.f32.partialorder %v3201_v11, 8.507059e+37  ;;  %4908 = vrcp.f32 %v6580_v14 }
 0x404   :  { %v3226_v55 = vadd.f32 %v4891_v34, %v3225_v29  ;;  %v3193_v25 = vmul.f32 %v4899_v16, %v6551_v15  ;;  %v4901_v17 = vpop.eup %4900  ;;  %v3204_v36 = vor.u32 1.1754944e-38, %v3203_v8  ;;  %vm3332_vm13 = vweird.f32 %v6567_v41 }
 0x405   :  { %v3179_v51 = vsub.f32 1.0, %v3178_v30  ;;  %v4903_v56 = vpop.eup %4902  ;;  %vm3183_vm14 = vweird.f32 %v4897_v53  ;;  %vm3347_vm15 = vweird.f32 %v6569_v63  ;;  %v3351_v33 = vand.u32 2147483647, %v6569_v63 }
 0x406   :  { %v3230_v42 = vsel %vm3229_vm11, %v4891_v34, %v3226_v55  ;;  %v3194_v26 = vsub.f32 1.0, %v3193_v25  ;;  %v4905_v23 = vpop.eup %4904  ;;  %vm3198_vm0 = vweird.f32 %v4899_v16  ;;  %vm6607_vm1 = vcmp.eq.f32.partialorder %v3336_v22, 8.507059e+37  ;;  %vm3184_vm2 = vmor %vm3182_vm8, %vm3183_vm14 }
 0x407   :  { %v3235_v45 = vsel %vm6560_vm6, %v3234_v44, %v3230_v42  ;;  %v3180_v39 = vmul.f32 %v4897_v53, %v3179_v51  ;;  %v4907_v38 = vpop.eup %4906  ;;  %v3328_v35 = vmul.f32 %v4905_v23, %v6567_v41  ;;  %v3339_v62 = vor.u32 1.1754944e-38, %v3338_v7  ;;  %vm3199_vm4 = vmor %vm3197_vm10, %vm3198_vm0  ;;  %v1664_v51 = vpop.f32.mrf.mxu1 }
 0x408   :  { %4428 = vst [vmem:[#allocation10 + $0x198] sm:$0xff] %v3235_v45  ;;  %v3195_v47 = vmul.f32 %v4899_v16, %v3194_v26  ;;  %v3343_v2 = vmul.f32 %v4907_v38, %v6569_v63  ;;  %v3353_v20 = vand.u32 2147483648, %v6569_v63  ;;  %v3306_v10 = vand.u32 2147483647, %v6580_v14  ;;  %v1602_v45 = vpop.f32.mrf.mxu0 }
 0x409   :  { %v3181_v28 = vadd.f32 %v4897_v53, %v3180_v39  ;;  %v3329_v18 = vsub.f32 1.0, %v3328_v35  ;;  %vm3333_vm3 = vweird.f32 %v4905_v23  ;;  %v6616_v31 = vadd.f32 1.0, %v4901_v17  ;;  %v4909_v9 = vpop.eup %4908 }
 0x40a   :  { %v3196_v37 = vadd.f32 %v4899_v16, %v3195_v47  ;;  %v3344_v5 = vsub.f32 1.0, %v3343_v2  ;;  %v6621_v52 = vadd.f32 1.0, %v4903_v56  ;;  %4910 = vpow2.f32 %v6564_v61  ;;  %vm3334_vm8 = vmor %vm3332_vm13, %vm3333_vm3  ;;  %v1469_v56 = vpop.f32.mrf.mxu2 }
 0x40b   :  { %v3185_v50 = vsel %vm3184_vm2, %v4897_v53, %v3181_v28  ;;  %v3330_v34 = vmul.f32 %v4905_v23, %v3329_v18  ;;  %v3298_v27 = vmul.f32 %v4909_v9, %v6580_v14  ;;  %vm3348_vm5 = vweird.f32 %v4907_v38 }
 0x40c   :  { %v3190_v46 = vsel %vm6586_vm9, %v3189_v12, %v3185_v50  ;;  %v3200_v49 = vsel %vm3199_vm4, %v4899_v16, %v3196_v37  ;;  %v3345_v43 = vmul.f32 %v4907_v38, %v3344_v5  ;;  %4912 = vrcp.f32 %v6616_v31  ;;  %vm3349_vm9 = vmor %vm3347_vm15, %vm3348_vm5 }
 0x40d   :  { %4425 = vst [vmem:[#allocation10 + $0x180] sm:$0xff] %v3190_v46  ;;  %v3205_v19 = vsel %vm6596_vm12, %v3204_v36, %v3200_v49  ;;  %v3331_v15 = vadd.f32 %v4905_v23, %v3330_v34  ;;  %vm6630_vm6 = vcmp.eq.f32.partialorder %v3351_v33, 8.507059e+37  ;;  %v3299_v60 = vsub.f32 1.0, %v3298_v27 }
 0x40e   :  { %4426 = vst [vmem:[#allocation10 + $0x188] sm:$0xff] %v3205_v19  ;;  %vm3302_vm7 = vweird.f32 %v6580_v14  ;;  %v3346_v44 = vadd.f32 %v4907_v38, %v3345_v43  ;;  %v3308_v61 = vand.u32 2147483648, %v6580_v14  ;;  %4914 = vrcp.f32 %v6621_v52 }
 0x40f   :  { %v4640_v32 = vmul.f32 -1.442695, %v6572_v54  ;;  %v3335_v1 = vsel %vm3334_vm8, %v4905_v23, %v3331_v15  ;;  %v3354_v0 = vor.u32 1.1754944e-38, %v3353_v20  ;;  %v3300_v58 = vmul.f32 %v4909_v9, %v3299_v60  ;;  %v1534_v23 = vpop.f32.mrf.mxu3 }
 0x410   :  { %vm3303_vm10 = vweird.f32 %v4909_v9  ;;  %v4911_v11 = vpop.eup %4910  ;;  %v3340_v53 = vsel %vm6607_vm1, %v3339_v62, %v3335_v1  ;;  %v3350_v41 = vsel %vm3349_vm9, %v4907_v38, %v3346_v44  ;;  %vm6645_vm11 = vcmp.eq.f32.partialorder %v3306_v10, 8.507059e+37 }
 0x411   :  { %v3321_v8 = vand.u32 2147483647, %v6616_v31  ;;  %4435 = vst [vmem:[#allocation10 + $0x1d0] sm:$0xff] %v3340_v53  ;;  %v3355_v54 = vsel %vm6630_vm6, %v3354_v0, %v3350_v41  ;;  %v3301_v63 = vadd.f32 %v4909_v9, %v3300_v58  ;;  %v3323_v16 = vand.u32 2147483648, %v6616_v31  ;;  %vm3304_vm12 = vmor %vm3302_vm7, %vm3303_vm10  ;;  %v1667_v58 = vpop.f32.mrf.mxu1 }
 0x412   :  { %v6653_v30 = vadd.f32 1.0, %v4911_v11  ;;  %v4913_v3 = vpop.eup %4912  ;;  %4436 = vst [vmem:[#allocation10 + $0x1d8] sm:$0xff] %v3355_v54  ;;  %v3309_v55 = vor.u32 1.1754944e-38, %v3308_v61  ;;  %4916 = vpow2.f32 %v4640_v32  ;;  %v4641_v25 = vmul.f32 -1.442695, %v6575_v24  ;;  %v1472_v5 = vpop.f32.mrf.mxu2 }
 0x413   :  { %v1600_v22 = vadd.f32 %v1599_v40, %v6016_v48  ;;  %v3305_v7 = vsel %vm3304_vm12, %v4909_v9, %v3301_v63  ;;  %v3313_v17 = vmul.f32 %v4913_v3, %v6616_v31  ;;  %vm3317_vm13 = vweird.f32 %v6616_v31 }
 0x414   :  { %4918 = vrcp.f32 %v6653_v30  ;;  %v4915_v12 = vpop.eup %4914  ;;  %v3310_v4 = vsel %vm6645_vm11, %v3309_v55, %v3305_v7  ;;  %vm6664_vm14 = vcmp.eq.f32.partialorder %v3321_v8, 8.507059e+37  ;;  %vm3452_vm15 = vweird.f32 %v6621_v52 }
 0x415   :  { %v3456_v24 = vand.u32 2147483647, %v6621_v52  ;;  %4433 = vst [vmem:[#allocation10 + $0x1c0] sm:$0xff] %v3310_v4  ;;  %v3314_v42 = vsub.f32 1.0, %v3313_v17  ;;  %v3324_v26 = vor.u32 1.1754944e-38, %v3323_v16  ;;  %v3448_v36 = vmul.f32 %v4915_v12, %v6621_v52 }
 0x416   :  { %4920 = vpow2.f32 %v4641_v25  ;;  %vm3318_vm0 = vweird.f32 %v4913_v3  ;;  %v3458_v39 = vand.u32 2147483648, %v6621_v52  ;;  %v4650_v33 = vmul.f32 -1.442695, %v1600_v22 }
 0x417   :  { %v1665_v38 = vadd.f32 %v1664_v51, %v6018_v57  ;;  %v3315_v47 = vmul.f32 %v4913_v3, %v3314_v42  ;;  %v3449_v35 = vsub.f32 1.0, %v3448_v36  ;;  %vm3453_vm1 = vweird.f32 %v4915_v12  ;;  %vm3319_vm2 = vmor %vm3317_vm13, %vm3318_vm0 }
 0x418   :  { %v1470_v6 = vadd.f32 %v1469_v56, %v6024_v13  ;;  %v4917_v62 = vpop.eup %4916  ;;  %4922 = vpow2.f32 %v4650_v33  ;;  %v1535_v2 = vadd.f32 %v1534_v23, %v6026_v21  ;;  %v1603_v20 = vadd.f32 %v1602_v45, %v6016_v48  ;;  %vm3454_vm4 = vmor %vm3452_vm15, %vm3453_vm1 }
 0x419   :  { %v4651_v28 = vmul.f32 -1.442695, %v1665_v38  ;;  %v3316_v37 = vadd.f32 %v4913_v3, %v3315_v47  ;;  %v3450_v18 = vmul.f32 %v4915_v12, %v3449_v35  ;;  %v6676_v9 = vadd.f32 1.0, %v4917_v62 }
 0x41a   :  { %v4919_v10 = vpop.eup %4918  ;;  %v4648_v50 = vmul.f32 -1.442695, %v1470_v6  ;;  %vm6681_vm3 = vcmp.eq.f32.partialorder %v3456_v24, 8.507059e+37  ;;  %v3471_v49 = vand.u32 2147483647, %v6653_v30  ;;  %v3473_v19 = vand.u32 2147483648, %v6653_v30 }
 0x41b   :  { %v3463_v46 = vmul.f32 %v4919_v10, %v6653_v30  ;;  %4924 = vpow2.f32 %v4651_v28  ;;  %v3320_v27 = vsel %vm3319_vm2, %v4913_v3, %v3316_v37  ;;  %v3451_v40 = vadd.f32 %v4915_v12, %v3450_v18 }
 0x41c   :  { %v4921_v34 = vpop.eup %4920  ;;  %4926 = vrcp.f32 %v6676_v9  ;;  %v3325_v31 = vsel %vm6664_vm14, %v3324_v26, %v3320_v27  ;;  %v3459_v43 = vor.u32 1.1754944e-38, %v3458_v39  ;;  %v4649_v59 = vmul.f32 -1.442695, %v1535_v2 }
 0x41d   :  { %v3464_v15 = vsub.f32 1.0, %v3463_v46  ;;  %4434 = vst [vmem:[#allocation10 + $0x1c8] sm:$0xff] %v3325_v31  ;;  %v3455_v60 = vsel %vm3454_vm4, %v4915_v12, %v3451_v40  ;;  %v6694_v44 = vadd.f32 1.0, %v4921_v34  ;;  %4928 = vpow2.f32 %v4648_v50 }
 0x41e   :  { %v4658_v61 = vmul.f32 -1.442695, %v1603_v20  ;;  %v4923_v32 = vpop.eup %4922  ;;  %v3460_v1 = vsel %vm6681_vm3, %v3459_v43, %v3455_v60  ;;  %vm3467_vm5 = vweird.f32 %v6653_v30  ;;  %vm3468_vm6 = vweird.f32 %v4919_v10 }
 0x41f   :  { %v3465_v0 = vmul.f32 %v4919_v10, %v3464_v15  ;;  %4443 = vst [vmem:[#allocation10 + $0x210] sm:$0xff] %v3460_v1  ;;  %vm6699_vm7 = vcmp.eq.f32.partialorder %v3471_v49, 8.507059e+37  ;;  %v3474_v11 = vor.u32 1.1754944e-38, %v3473_v19  ;;  %v3426_v53 = vand.u32 2147483647, %v6676_v9  ;;  %vm3469_vm8 = vmor %vm3467_vm5, %vm3468_vm6 }
 0x420   :  { %4930 = vrcp.f32 %v6694_v44  ;;  %v3428_v8 = vand.u32 2147483648, %v6676_v9  ;;  %v6706_v54 = vadd.f32 1.0, %v4923_v32  ;;  %v3441_v16 = vand.u32 2147483647, %v6694_v44 }
 0x421   :  { %v4925_v41 = vpop.eup %4924  ;;  %v3466_v29 = vadd.f32 %v4919_v10, %v3465_v0  ;;  %4932 = vpow2.f32 %v4649_v59  ;;  %v1668_v3 = vadd.f32 %v1667_v58, %v6018_v57  ;;  %v3443_v22 = vand.u32 2147483648, %v6694_v44 }
 0x422   :  { %v4927_v63 = vpop.eup %4926  ;;  %v6709_v30 = vadd.f32 1.0, %v4925_v41  ;;  %4934 = vpow2.f32 %v4658_v61  ;;  %vm3422_vm9 = vweird.f32 %v6676_v9  ;;  %v3578_v51 = vand.u32 2147483648, %v6706_v54 }
 0x423   :  { %v3470_v55 = vsel %vm3469_vm8, %v4919_v10, %v3466_v29  ;;  %v3418_v25 = vmul.f32 %v4927_v63, %v6676_v9  ;;  %4936 = vrcp.f32 %v6706_v54  ;;  %v4929_v7 = vpop.eup %4928  ;;  %vm6719_vm10 = vcmp.eq.f32.partialorder %v3426_v53, 8.507059e+37 }
 0x424   :  { %v3475_v17 = vsel %vm6699_vm7, %v3474_v11, %v3470_v55  ;;  %v3429_v14 = vor.u32 1.1754944e-38, %v3428_v8  ;;  %4938 = vrcp.f32 %v6709_v30  ;;  %vm3437_vm11 = vweird.f32 %v6694_v44  ;;  %v1537_v11 = vpop.f32.mrf.mxu3  ;;  %v1605_v8 = vpop.f32.mrf.mxu0 }
 0x425   :  { %4444 = vst [vmem:[#allocation10 + $0x218] sm:$0xff] %v3475_v17  ;;  %v3419_v12 = vsub.f32 1.0, %v3418_v25  ;;  %v3576_v56 = vand.u32 2147483647, %v6706_v54  ;;  %v6726_v42 = vadd.f32 1.0, %v4929_v7  ;;  %vm3423_vm12 = vweird.f32 %v4927_v63 }
 0x426   :  { %v4931_v24 = vpop.eup %4930  ;;  %v4659_v26 = vmul.f32 -1.442695, %v1668_v3  ;;  %vm6729_vm13 = vcmp.eq.f32.partialorder %v3441_v16, 8.507059e+37  ;;  %v3444_v33 = vor.u32 1.1754944e-38, %v3443_v22  ;;  %vm3572_vm14 = vweird.f32 %v6706_v54  ;;  %vm3424_vm15 = vmor %vm3422_vm9, %vm3423_vm12 }
 0x427   :  { %v4933_v36 = vpop.eup %4932  ;;  %v3420_v23 = vmul.f32 %v4927_v63, %v3419_v12  ;;  %v3433_v45 = vmul.f32 %v4931_v24, %v6694_v44  ;;  %v3579_v47 = vor.u32 1.1754944e-38, %v3578_v51  ;;  %v3591_v35 = vand.u32 2147483647, %v6709_v30 }
 0x428   :  { %v4935_v38 = vpop.eup %4934  ;;  %4940 = vrcp.f32 %v6726_v42  ;;  %v3593_v2 = vand.u32 2147483648, %v6709_v30  ;;  %v6737_v20 = vadd.f32 1.0, %v4933_v36  ;;  %vm3438_vm0 = vweird.f32 %v4931_v24  ;;  %v1475_v36 = vpop.f32.mrf.mxu2 }
 0x429   :  { %v4937_v6 = vpop.eup %4936  ;;  %v3421_v62 = vadd.f32 %v4927_v63, %v3420_v23  ;;  %v3434_v28 = vsub.f32 1.0, %v3433_v45  ;;  %vm6742_vm1 = vcmp.eq.f32.partialorder %v3576_v56, 8.507059e+37  ;;  %vm3587_vm2 = vweird.f32 %v6709_v30  ;;  %vm3439_vm5 = vmor %vm3437_vm11, %vm3438_vm0 }
 0x42a   :  { %v3568_v10 = vmul.f32 %v4937_v6, %v6706_v54  ;;  %v3546_v18 = vand.u32 2147483647, %v6726_v42  ;;  %v6748_v50 = vadd.f32 1.0, %v4935_v38  ;;  %v4939_v46 = vpop.eup %4938  ;;  %v3548_v9 = vand.u32 2147483648, %v6726_v42 }
 0x42b   :  { %v3425_v49 = vsel %vm3424_vm15, %v4927_v63, %v3421_v62  ;;  %v3435_v34 = vmul.f32 %v4931_v24, %v3434_v28  ;;  %4942 = vrcp.f32 %v6737_v20  ;;  %v3583_v19 = vmul.f32 %v4939_v46, %v6709_v30 }
 0x42c   :  { %v3430_v27 = vsel %vm6719_vm10, %v3429_v14, %v3425_v49  ;;  %v3569_v40 = vsub.f32 1.0, %v3568_v10  ;;  %vm6755_vm3 = vcmp.eq.f32.partialorder %v3591_v35, 8.507059e+37  ;;  %v3594_v15 = vor.u32 1.1754944e-38, %v3593_v2  ;;  %v1540_v49 = vpop.f32.mrf.mxu3 }
 0x42d   :  { %4441 = vst [vmem:[#allocation10 + $0x200] sm:$0xff] %v3430_v27  ;;  %v3436_v43 = vadd.f32 %v4931_v24, %v3435_v34  ;;  %vm3542_vm4 = vweird.f32 %v6726_v42  ;;  %v3563_v59 = vand.u32 2147483648, %v6737_v20  ;;  %vm3573_vm6 = vweird.f32 %v4937_v6 }
 0x42e   :  { %v4941_v60 = vpop.eup %4940  ;;  %v3570_v61 = vmul.f32 %v4937_v6, %v3569_v40  ;;  %v3584_v32 = vsub.f32 1.0, %v3583_v19  ;;  %4944 = vrcp.f32 %v6748_v50  ;;  %vm3588_vm7 = vweird.f32 %v4939_v46  ;;  %vm3574_vm10 = vmor %vm3572_vm14, %vm3573_vm6 }
 0x42f   :  { %v3440_v1 = vsel %vm3439_vm5, %v4931_v24, %v3436_v43  ;;  %v3538_v0 = vmul.f32 %v4941_v60, %v6726_v42  ;;  %vm6766_vm8 = vcmp.eq.f32.partialorder %v3546_v18, 8.507059e+37  ;;  %v3549_v52 = vor.u32 1.1754944e-38, %v3548_v9  ;;  %vm3589_vm12 = vmor %vm3587_vm2, %vm3588_vm7  ;;  %v1608_v9 = vpop.f32.mrf.mxu0 }
 0x430   :  { %v3445_v53 = vsel %vm6729_vm13, %v3444_v33, %v3440_v1  ;;  %v3571_v44 = vadd.f32 %v4937_v6, %v3570_v61  ;;  %v3585_v41 = vmul.f32 %v4939_v46, %v3584_v32  ;;  %vm3557_vm9 = vweird.f32 %v6737_v20 }
 0x431   :  { %v3561_v29 = vand.u32 2147483647, %v6737_v20  ;;  %v4943_v63 = vpop.eup %4942  ;;  %4442 = vst [vmem:[#allocation10 + $0x208] sm:$0xff] %v3445_v53  ;;  %v3539_v16 = vsub.f32 1.0, %v3538_v0  ;;  %vm3543_vm11 = vweird.f32 %v4941_v60  ;;  %v3564_v3 = vor.u32 1.1754944e-38, %v3563_v59 }
 0x432   :  { %4946 = vpow2.f32 %v4659_v26  ;;  %v3575_v55 = vsel %vm3574_vm10, %v4937_v6, %v3571_v44  ;;  %v3586_v25 = vadd.f32 %v4939_v46, %v3585_v41  ;;  %v3553_v22 = vmul.f32 %v4943_v63, %v6737_v20  ;;  %v1670_v26 = vpop.f32.mrf.mxu1  ;;  %vm3544_vm15 = vmor %vm3542_vm4, %vm3543_vm11 }
 0x433   :  { %v3696_v7 = vand.u32 2147483647, %v6748_v50  ;;  %v3580_v17 = vsel %vm6742_vm1, %v3579_v47, %v3575_v55  ;;  %v3540_v51 = vmul.f32 %v4941_v60, %v3539_v16  ;;  %vm3558_vm13 = vweird.f32 %v4943_v63 }
 0x434   :  { %v3698_v54 = vand.u32 2147483648, %v6748_v50  ;;  %v4945_v12 = vpop.eup %4944  ;;  %4451 = vst [vmem:[#allocation10 + $0x250] sm:$0xff] %v3580_v17  ;;  %v3590_v4 = vsel %vm3589_vm12, %v4939_v46, %v3586_v25  ;;  %v3554_v14 = vsub.f32 1.0, %v3553_v22  ;;  %v1473_v24 = vadd.f32 %v1472_v5, %v6024_v13  ;;  %vm3559_vm0 = vmor %vm3557_vm9, %vm3558_vm13 }
 0x435   :  { %v1538_v56 = vadd.f32 %v1537_v11, %v6026_v21  ;;  %v3595_v23 = vsel %vm6755_vm3, %v3594_v15, %v3590_v4  ;;  %v3541_v45 = vadd.f32 %v4941_v60, %v3540_v51  ;;  %v3688_v30 = vmul.f32 %v4945_v12, %v6748_v50 }
 0x436   :  { %vm3693_vm14 = vweird.f32 %v4945_v12  ;;  %4452 = vst [vmem:[#allocation10 + $0x258] sm:$0xff] %v3595_v23  ;;  %v3555_v39 = vmul.f32 %v4943_v63, %v3554_v14  ;;  %v4656_v33 = vmul.f32 -1.442695, %v1473_v24  ;;  %v1606_v47 = vadd.f32 %v1605_v8, %v6016_v48 }
 0x437   :  { %v4657_v38 = vmul.f32 -1.442695, %v1538_v56  ;;  %v3545_v6 = vsel %vm3544_vm15, %v4941_v60, %v3541_v45  ;;  %v3689_v62 = vsub.f32 1.0, %v3688_v30  ;;  %v1671_v28 = vadd.f32 %v1670_v26, %v6018_v57 }
 0x438   :  { %v4947_v35 = vpop.eup %4946  ;;  %v1476_v2 = vadd.f32 %v1475_v36, %v6024_v13  ;;  %v3550_v10 = vsel %vm6766_vm8, %v3549_v52, %v3545_v6  ;;  %v3556_v37 = vadd.f32 %v4943_v63, %v3555_v39  ;;  %4948 = vpow2.f32 %v4656_v33  ;;  %v1478_v52 = vpop.f32.mrf.mxu2 }
 0x439   :  { %v6798_v18 = vadd.f32 1.0, %v4947_v35  ;;  %4449 = vst [vmem:[#allocation10 + $0x240] sm:$0xff] %v3550_v10  ;;  %v3690_v42 = vmul.f32 %v4945_v12, %v3689_v62  ;;  %4950 = vpow2.f32 %v4657_v38  ;;  %v4666_v5 = vmul.f32 -1.442695, %v1606_v47 }
 0x43a   :  { %v4667_v46 = vmul.f32 -1.442695, %v1671_v28  ;;  %v3560_v34 = vsel %vm3559_vm0, %v4943_v63, %v3556_v37  ;;  %vm3562_vm1 = vcmp.eq.f32.partialorder %v3561_v29, 8.507059e+37  ;;  %vm3692_vm2 = vweird.f32 %v6748_v50  ;;  %v1673_v58 = vpop.f32.mrf.mxu1 }
 0x43b   :  { %4952 = vrcp.f32 %v6798_v18  ;;  %v3565_v27 = vsel %vm3562_vm1, %v3564_v3, %v3560_v34  ;;  %v3691_v40 = vadd.f32 %v4945_v12, %v3690_v42  ;;  %vm3694_vm3 = vmor %vm3692_vm2, %vm3693_vm14  ;;  %v3699_v20 = vor.u32 1.1754944e-38, %v3698_v54 }
 0x43c   :  { %4954 = vpow2.f32 %v4666_v5  ;;  %4450 = vst [vmem:[#allocation10 + $0x248] sm:$0xff] %v3565_v27  ;;  %v4664_v19 = vmul.f32 -1.442695, %v1476_v2  ;;  %v1541_v31 = vadd.f32 %v1540_v49, %v6026_v21  ;;  %vm3697_vm4 = vcmp.eq.f32.partialorder %v3696_v7, 8.507059e+37  ;;  %v1543_v7 = vpop.f32.mrf.mxu3 }
 0x43d   :  { %4956 = vpow2.f32 %v4667_v46  ;;  %v3695_v43 = vsel %vm3694_vm3, %v4945_v12, %v3691_v40  ;;  %v1609_v15 = vadd.f32 %v1608_v9, %v6016_v48  ;;  %v3711_v61 = vand.u32 2147483647, %v6798_v18  ;;  %v1611_v12 = vpop.f32.mrf.mxu0 }
 0x43e   :  { %v4949_v59 = vpop.eup %4948  ;;  %v3700_v60 = vsel %vm3697_vm4, %v3699_v20, %v3695_v43  ;;  %v4665_v32 = vmul.f32 -1.442695, %v1541_v31  ;;  %v3713_v50 = vand.u32 2147483648, %v6798_v18  ;;  %4958 = vpow2.f32 %v4664_v19 }
 0x43f   :  { %v4951_v1 = vpop.eup %4950  ;;  %4459 = vst [vmem:[#allocation10 + $0x290] sm:$0xff] %v3700_v60  ;;  %v6810_v0 = vadd.f32 1.0, %v4949_v59  ;;  %v4674_v44 = vmul.f32 -1.442695, %v1609_v15  ;;  %vm3707_vm5 = vweird.f32 %v6798_v18  ;;  %vm6817_vm6 = vcmp.eq.f32.partialorder %v3711_v61, 8.507059e+37 }
 0x440   :  { %v6812_v53 = vadd.f32 1.0, %v4951_v1  ;;  %4960 = vpow2.f32 %v4665_v32  ;;  %v1674_v16 = vadd.f32 %v1673_v58, %v6018_v57  ;;  %v1479_v3 = vadd.f32 %v1478_v52, %v6024_v13 }
 0x441   :  { %v4953_v11 = vpop.eup %4952  ;;  %4962 = vrcp.f32 %v6810_v0  ;;  %v3714_v25 = vor.u32 1.1754944e-38, %v3713_v50  ;;  %v3666_v17 = vand.u32 2147483647, %v6810_v0  ;;  %v3668_v51 = vand.u32 2147483648, %v6810_v0 }
 0x442   :  { %v4955_v41 = vpop.eup %4954  ;;  %v3703_v29 = vmul.f32 %v4953_v11, %v6798_v18  ;;  %4964 = vrcp.f32 %v6812_v53  ;;  %vm3708_vm7 = vweird.f32 %v4953_v11  ;;  %v3681_v24 = vand.u32 2147483647, %v6812_v53 }
 0x443   :  { %v4957_v8 = vpop.eup %4956  ;;  %v6824_v22 = vadd.f32 1.0, %v4955_v41  ;;  %4966 = vpow2.f32 %v4674_v44  ;;  %v3683_v56 = vand.u32 2147483648, %v6812_v53  ;;  %v4675_v36 = vmul.f32 -1.442695, %v1674_v16  ;;  %vm3709_vm10 = vmor %vm3707_vm5, %vm3708_vm7 }
 0x444   :  { %v3704_v55 = vsub.f32 1.0, %v3703_v29  ;;  %v6828_v54 = vadd.f32 1.0, %v4957_v8  ;;  %v4959_v4 = vpop.eup %4958  ;;  %v6834_v23 = vmul.f32 -1.442695, %v1479_v3  ;;  %v6837_v45 = vadd.f32 %v1543_v7, %v6026_v21 }
 0x445   :  { %4968 = vrcp.f32 %v6824_v22  ;;  %vm3662_vm8 = vweird.f32 %v6810_v0  ;;  %vm3677_vm9 = vweird.f32 %v6812_v53  ;;  %v6842_v33 = vadd.f32 %v1611_v12, %v6016_v48 }
 0x446   :  { %v3705_v14 = vmul.f32 %v4953_v11, %v3704_v55  ;;  %v4961_v26 = vpop.eup %4960  ;;  %4970 = vrcp.f32 %v6828_v54  ;;  %vm6848_vm11 = vcmp.eq.f32.partialorder %v3666_v17, 8.507059e+37  ;;  %v3669_v6 = vor.u32 1.1754944e-38, %v3668_v51 }
 0x447   :  { %v4963_v30 = vpop.eup %4962  ;;  %v3816_v62 = vand.u32 2147483647, %v6824_v22  ;;  %vm6854_vm12 = vcmp.eq.f32.partialorder %v3681_v24, 8.507059e+37  ;;  %v3684_v37 = vor.u32 1.1754944e-38, %v3683_v56  ;;  %v3818_v18 = vand.u32 2147483648, %v6824_v22 }
 0x448   :  { %v3706_v39 = vadd.f32 %v4953_v11, %v3705_v14  ;;  %v4965_v38 = vpop.eup %4964  ;;  %v3658_v47 = vmul.f32 %v4963_v30, %v6810_v0  ;;  %vm3812_vm13 = vweird.f32 %v6824_v22  ;;  %v3831_v49 = vand.u32 2147483647, %v6828_v54 }
 0x449   :  { %v3673_v2 = vmul.f32 %v4965_v38, %v6812_v53  ;;  %v4967_v42 = vpop.eup %4966  ;;  %v6863_v34 = vadd.f32 1.0, %v4959_v4  ;;  %vm3663_vm14 = vweird.f32 %v4963_v30  ;;  %vm3827_vm15 = vweird.f32 %v6828_v54 }
 0x44a   :  { %v3710_v28 = vsel %vm3709_vm10, %v4953_v11, %v3706_v39  ;;  %v3659_v46 = vsub.f32 1.0, %v3658_v47  ;;  %v3833_v40 = vand.u32 2147483648, %v6828_v54  ;;  %v6867_v20 = vadd.f32 1.0, %v4961_v26  ;;  %vm3664_vm2 = vmor %vm3662_vm8, %vm3663_vm14 }
 0x44b   :  { %v3715_v5 = vsel %vm6817_vm6, %v3714_v25, %v3710_v28  ;;  %v4969_v9 = vpop.eup %4968  ;;  %v3674_v27 = vsub.f32 1.0, %v3673_v2  ;;  %vm6870_vm0 = vcmp.eq.f32.partialorder %v3816_v62, 8.507059e+37  ;;  %4972 = vrcp.f32 %v6863_v34 }
 0x44c   :  { %4460 = vst [vmem:[#allocation10 + $0x298] sm:$0xff] %v3715_v5  ;;  %v4971_v19 = vpop.eup %4970  ;;  %v3660_v31 = vmul.f32 %v4963_v30, %v3659_v46  ;;  %v3808_v43 = vmul.f32 %v4969_v9, %v6824_v22  ;;  %vm3678_vm1 = vweird.f32 %v4965_v38  ;;  %v3819_v60 = vor.u32 1.1754944e-38, %v3818_v18 }
 0x44d   :  { %v3675_v59 = vmul.f32 %v4965_v38, %v3674_v27  ;;  %v3823_v61 = vmul.f32 %v4971_v19, %v6828_v54  ;;  %v6876_v50 = vadd.f32 1.0, %v4967_v42  ;;  %4974 = vpow2.f32 %v4675_v36  ;;  %vm3679_vm4 = vmor %vm3677_vm9, %vm3678_vm1 }
 0x44e   :  { %v3661_v32 = vadd.f32 %v4963_v30, %v3660_v31  ;;  %v3809_v1 = vsub.f32 1.0, %v3808_v43  ;;  %vm6881_vm3 = vcmp.eq.f32.partialorder %v3831_v49, 8.507059e+37  ;;  %4976 = vrcp.f32 %v6867_v20  ;;  %v1546_v49 = vpop.f32.mrf.mxu3 }
 0x44f   :  { %v3676_v58 = vadd.f32 %v4965_v38, %v3675_v59  ;;  %v3824_v52 = vsub.f32 1.0, %v3823_v61  ;;  %vm3813_vm5 = vweird.f32 %v4969_v9  ;;  %vm3828_vm6 = vweird.f32 %v4971_v19 }
 0x450   :  { %v3665_v44 = vsel %vm3664_vm2, %v4963_v30, %v3661_v32  ;;  %v3810_v41 = vmul.f32 %v4969_v9, %v3809_v1  ;;  %v3786_v63 = vand.u32 2147483647, %v6863_v34  ;;  %v3788_v25 = vand.u32 2147483648, %v6863_v34  ;;  %vm3814_vm7 = vmor %vm3812_vm13, %vm3813_vm5  ;;  %v1676_v30 = vpop.f32.mrf.mxu1 }
 0x451   :  { %v3670_v29 = vsel %vm6848_vm11, %v3669_v6, %v3665_v44  ;;  %v3680_v0 = vsel %vm3679_vm4, %v4965_v38, %v3676_v58  ;;  %v3825_v8 = vmul.f32 %v4971_v19, %v3824_v52  ;;  %v4973_v16 = vpop.eup %4972  ;;  %4978 = vrcp.f32 %v6876_v50  ;;  %vm3829_vm8 = vmor %vm3827_vm15, %vm3828_vm6 }
 0x452   :  { %4457 = vst [vmem:[#allocation10 + $0x280] sm:$0xff] %v3670_v29  ;;  %v3685_v3 = vsel %vm6854_vm12, %v3684_v37, %v3680_v0  ;;  %v3811_v55 = vadd.f32 %v4969_v9, %v3810_v41  ;;  %v3834_v7 = vor.u32 1.1754944e-38, %v3833_v40  ;;  %v3778_v17 = vmul.f32 %v4973_v16, %v6863_v34 }
 0x453   :  { %4458 = vst [vmem:[#allocation10 + $0x288] sm:$0xff] %v3685_v3  ;;  %v3826_v53 = vadd.f32 %v4971_v19, %v3825_v8  ;;  %v3801_v51 = vand.u32 2147483647, %v6867_v20  ;;  %v4975_v12 = vpop.eup %4974  ;;  %vm3782_vm9 = vweird.f32 %v6863_v34  ;;  %vm3797_vm10 = vweird.f32 %v6867_v20 }
 0x454   :  { %v3815_v4 = vsel %vm3814_vm7, %v4969_v9, %v3811_v55  ;;  %v3803_v14 = vand.u32 2147483648, %v6867_v20  ;;  %v4977_v22 = vpop.eup %4976  ;;  %v3779_v26 = vsub.f32 1.0, %v3778_v17  ;;  %vm6907_vm11 = vcmp.eq.f32.partialorder %v3786_v63, 8.507059e+37 }
 0x455   :  { %v3820_v24 = vsel %vm6870_vm0, %v3819_v60, %v3815_v4  ;;  %v3830_v56 = vsel %vm3829_vm8, %v4971_v19, %v3826_v53  ;;  %vm3783_vm12 = vweird.f32 %v4973_v16  ;;  %v3789_v39 = vor.u32 1.1754944e-38, %v3788_v25  ;;  %v1614_v19 = vpop.f32.mrf.mxu0 }
 0x456   :  { %4467 = vst [vmem:[#allocation10 + $0x2d0] sm:$0xff] %v3820_v24  ;;  %v3835_v54 = vsel %vm6881_vm3, %v3834_v7, %v3830_v56  ;;  %v3793_v38 = vmul.f32 %v4977_v22, %v6867_v20  ;;  %v3780_v47 = vmul.f32 %v4973_v16, %v3779_v26  ;;  %vm6914_vm13 = vcmp.eq.f32.partialorder %v3801_v51, 8.507059e+37  ;;  %vm3784_vm14 = vmor %vm3782_vm9, %vm3783_vm12 }
 0x457   :  { %4468 = vst [vmem:[#allocation10 + $0x2d8] sm:$0xff] %v3835_v54  ;;  %v6918_v6 = vadd.f32 1.0, %v4975_v12  ;;  %4980 = vpow2.f32 %v6834_v23  ;;  %v4979_v62 = vpop.eup %4978  ;;  %v3804_v2 = vor.u32 1.1754944e-38, %v3803_v14  ;;  %v4673_v10 = vmul.f32 -1.442695, %v6837_v45  ;;  %v1481_v45 = vpop.f32.mrf.mxu2 }
 0x458   :  { %v3794_v28 = vsub.f32 1.0, %v3793_v38  ;;  %v1677_v37 = vadd.f32 %v1676_v30, %v6018_v57  ;;  %v3781_v18 = vadd.f32 %v4973_v16, %v3780_v47  ;;  %v3928_v42 = vmul.f32 %v4979_v62, %v6876_v50  ;;  %v1679_v7 = vpop.f32.mrf.mxu1 }
 0x459   :  { %4982 = vrcp.f32 %v6918_v6  ;;  %v4682_v5 = vmul.f32 -1.442695, %v6842_v33  ;;  %vm3798_vm15 = vweird.f32 %v4977_v22  ;;  %vm3932_vm0 = vweird.f32 %v6876_v50 }
 0x45a   :  { %v3795_v46 = vmul.f32 %v4977_v22, %v3794_v28  ;;  %v3936_v23 = vand.u32 2147483647, %v6876_v50  ;;  %v3785_v9 = vsel %vm3784_vm14, %v4973_v16, %v3781_v18  ;;  %v3929_v27 = vsub.f32 1.0, %v3928_v42  ;;  %vm3799_vm2 = vmor %vm3797_vm10, %vm3798_vm15 }
 0x45b   :  { %4984 = vpow2.f32 %v4673_v10  ;;  %v4683_v40 = vmul.f32 -1.442695, %v1677_v37  ;;  %v3790_v33 = vsel %vm6907_vm11, %v3789_v39, %v3785_v9  ;;  %vm3933_vm1 = vweird.f32 %v4979_v62 }
 0x45c   :  { %v3796_v31 = vadd.f32 %v4977_v22, %v3795_v46  ;;  %v3938_v34 = vand.u32 2147483648, %v6876_v50  ;;  %4465 = vst [vmem:[#allocation10 + $0x2c0] sm:$0xff] %v3790_v33  ;;  %v3930_v15 = vmul.f32 %v4979_v62, %v3929_v27  ;;  %4986 = vpow2.f32 %v4682_v5  ;;  %vm3934_vm3 = vmor %vm3932_vm0, %vm3933_vm1 }
 0x45d   :  { %v4981_v43 = vpop.eup %4980  ;;  %v1482_v59 = vadd.f32 %v1481_v45, %v6024_v13  ;;  %v1547_v60 = vadd.f32 %v1546_v49, %v6026_v21  ;;  %4988 = vpow2.f32 %v4683_v40  ;;  %v1615_v1 = vadd.f32 %v1614_v19, %v6016_v48 }
 0x45e   :  { %v3800_v61 = vsel %vm3799_vm2, %v4977_v22, %v3796_v31  ;;  %v6939_v32 = vadd.f32 1.0, %v4981_v43  ;;  %v3931_v11 = vadd.f32 %v4979_v62, %v3930_v15  ;;  %v3939_v41 = vor.u32 1.1754944e-38, %v3938_v34 }
 0x45f   :  { %v4983_v58 = vpop.eup %4982  ;;  %v3805_v52 = vsel %vm6914_vm13, %v3804_v2, %v3800_v61  ;;  %v4680_v44 = vmul.f32 -1.442695, %v1482_v59  ;;  %v4681_v20 = vmul.f32 -1.442695, %v1547_v60  ;;  %vm3937_vm4 = vcmp.eq.f32.partialorder %v3936_v23, 8.507059e+37  ;;  %v1484_v10 = vpop.f32.mrf.mxu2 }
 0x460   :  { %4466 = vst [vmem:[#allocation10 + $0x2c8] sm:$0xff] %v3805_v52  ;;  %v3943_v29 = vmul.f32 %v4983_v58, %v6918_v6  ;;  %4990 = vrcp.f32 %v6939_v32  ;;  %v3935_v8 = vsel %vm3934_vm3, %v4979_v62, %v3931_v11  ;;  %v3951_v63 = vand.u32 2147483647, %v6918_v6 }
 0x461   :  { %v4985_v0 = vpop.eup %4984  ;;  %v3940_v16 = vsel %vm3937_vm4, %v3939_v41, %v3935_v8  ;;  %4992 = vpow2.f32 %v4680_v44  ;;  %v3953_v50 = vand.u32 2147483648, %v6918_v6  ;;  %v4690_v53 = vmul.f32 -1.442695, %v1615_v1 }
 0x462   :  { %v3944_v3 = vsub.f32 1.0, %v3943_v29  ;;  %v6950_v55 = vadd.f32 1.0, %v4985_v0  ;;  %v4987_v25 = vpop.eup %4986  ;;  %4475 = vst [vmem:[#allocation10 + $0x310] sm:$0xff] %v3940_v16  ;;  %4994 = vpow2.f32 %v4681_v20  ;;  %vm3948_vm5 = vweird.f32 %v4983_v58 }
 0x463   :  { %v4989_v17 = vpop.eup %4988  ;;  %v3906_v12 = vand.u32 2147483647, %v6939_v32  ;;  %v3908_v4 = vand.u32 2147483648, %v6939_v32  ;;  %v6956_v14 = vadd.f32 1.0, %v4987_v25  ;;  %vm3947_vm6 = vweird.f32 %v6918_v6 }
 0x464   :  { %v3945_v51 = vmul.f32 %v4983_v58, %v3944_v3  ;;  %4996 = vrcp.f32 %v6950_v55  ;;  %v6958_v22 = vadd.f32 1.0, %v4989_v17  ;;  %vm3952_vm7 = vcmp.eq.f32.partialorder %v3951_v63, 8.507059e+37  ;;  %vm3949_vm8 = vmor %vm3947_vm6, %vm3948_vm5 }
 0x465   :  { %4998 = vpow2.f32 %v4690_v53  ;;  %v1680_v26 = vadd.f32 %v1679_v7, %v6018_v57  ;;  %v3954_v36 = vor.u32 1.1754944e-38, %v3953_v50  ;;  %v3921_v54 = vand.u32 2147483647, %v6950_v55 }
 0x466   :  { %v4991_v24 = vpop.eup %4990  ;;  %v3946_v56 = vadd.f32 %v4983_v58, %v3945_v51  ;;  %5000 = vrcp.f32 %v6956_v14  ;;  %vm3902_vm9 = vweird.f32 %v6939_v32  ;;  %vm6966_vm10 = vcmp.eq.f32.partialorder %v3906_v12, 8.507059e+37 }
 0x467   :  { %v3898_v30 = vmul.f32 %v4991_v24, %v6939_v32  ;;  %v4993_v39 = vpop.eup %4992  ;;  %v3923_v35 = vand.u32 2147483648, %v6950_v55  ;;  %v3909_v2 = vor.u32 1.1754944e-38, %v3908_v4  ;;  %5002 = vrcp.f32 %v6958_v22  ;;  %v1549_v32 = vpop.f32.mrf.mxu3 }
 0x468   :  { %v3950_v38 = vsel %vm3949_vm8, %v4983_v58, %v3946_v56  ;;  %v4995_v6 = vpop.eup %4994  ;;  %vm3917_vm11 = vweird.f32 %v6950_v55  ;;  %v4056_v18 = vand.u32 2147483647, %v6956_v14  ;;  %v4058_v42 = vand.u32 2147483648, %v6956_v14 }
 0x469   :  { %v3955_v62 = vsel %vm3952_vm7, %v3954_v36, %v3950_v38  ;;  %v3899_v28 = vsub.f32 1.0, %v3898_v30  ;;  %v6975_v5 = vmul.f32 -1.442695, %v1680_v26  ;;  %vm3903_vm12 = vweird.f32 %v4991_v24 }
 0x46a   :  { %v4997_v37 = vpop.eup %4996  ;;  %4476 = vst [vmem:[#allocation10 + $0x318] sm:$0xff] %v3955_v62  ;;  %vm6978_vm13 = vcmp.eq.f32.partialorder %v3921_v54, 8.507059e+37  ;;  %v6982_v9 = vadd.f32 1.0, %v4993_v39  ;;  %v3924_v27 = vor.u32 1.1754944e-38, %v3923_v35  ;;  %v4071_v40 = vand.u32 2147483647, %v6958_v22  ;;  %vm3904_vm15 = vmor %vm3902_vm9, %vm3903_vm12  ;;  %v1617_v62 = vpop.f32.mrf.mxu0 }
 0x46b   :  { %v4999_v46 = vpop.eup %4998  ;;  %v3900_v23 = vmul.f32 %v4991_v24, %v3899_v28  ;;  %v3913_v45 = vmul.f32 %v4997_v37, %v6950_v55  ;;  %v6985_v19 = vadd.f32 1.0, %v4995_v6  ;;  %v6988_v33 = vadd.f32 %v1484_v10, %v6024_v13 }
 0x46c   :  { %v5001_v31 = vpop.eup %5000  ;;  %vm4052_vm14 = vweird.f32 %v6956_v14  ;;  %5004 = vrcp.f32 %v6982_v9  ;;  %vm6995_vm0 = vcmp.eq.f32.partialorder %v4056_v18, 8.507059e+37  ;;  %v4059_v60 = vor.u32 1.1754944e-38, %v4058_v42  ;;  %v1682_v42 = vpop.f32.mrf.mxu1 }
 0x46d   :  { %v3901_v34 = vadd.f32 %v4991_v24, %v3900_v23  ;;  %v3914_v43 = vsub.f32 1.0, %v3913_v45  ;;  %v4048_v15 = vmul.f32 %v5001_v31, %v6956_v14  ;;  %vm4067_vm1 = vweird.f32 %v6958_v22  ;;  %v5003_v58 = vpop.eup %5002 }
 0x46e   :  { %v4073_v61 = vand.u32 2147483648, %v6958_v22  ;;  %v7001_v1 = vadd.f32 1.0, %v4999_v46  ;;  %vm3918_vm2 = vweird.f32 %v4997_v37  ;;  %5006 = vrcp.f32 %v6985_v19  ;;  %v1487_v46 = vpop.f32.mrf.mxu2 }
 0x46f   :  { %v3905_v52 = vsel %vm3904_vm15, %v4991_v24, %v3901_v34  ;;  %v3915_v11 = vmul.f32 %v4997_v37, %v3914_v43  ;;  %v4049_v20 = vsub.f32 1.0, %v4048_v15  ;;  %v4063_v41 = vmul.f32 %v5003_v58, %v6958_v22  ;;  %vm3919_vm5 = vmor %vm3917_vm11, %vm3918_vm2  ;;  %v1552_v49 = vpop.f32.mrf.mxu3 }
 0x470   :  { %v3910_v44 = vsel %vm6966_vm10, %v3909_v2, %v3905_v52  ;;  %vm7007_vm3 = vcmp.eq.f32.partialorder %v4071_v40, 8.507059e+37  ;;  %v4026_v0 = vand.u32 2147483647, %v6982_v9  ;;  %vm4053_vm4 = vweird.f32 %v5001_v31 }
 0x471   :  { %4473 = vst [vmem:[#allocation10 + $0x300] sm:$0xff] %v3910_v44  ;;  %v3916_v8 = vadd.f32 %v4997_v37, %v3915_v11  ;;  %v4028_v63 = vand.u32 2147483648, %v6982_v9  ;;  %v4041_v16 = vand.u32 2147483647, %v6985_v19  ;;  %v4050_v3 = vmul.f32 %v5001_v31, %v4049_v20  ;;  %vm4054_vm10 = vmor %vm4052_vm14, %vm4053_vm4 }
 0x472   :  { %v4064_v25 = vsub.f32 1.0, %v4063_v41  ;;  %v4043_v50 = vand.u32 2147483648, %v6985_v19  ;;  %5008 = vrcp.f32 %v7001_v1  ;;  %v5005_v53 = vpop.eup %5004  ;;  %vm4068_vm6 = vweird.f32 %v5003_v58 }
 0x473   :  { %v3920_v7 = vsel %vm3919_vm5, %v4997_v37, %v3916_v8  ;;  %v4074_v17 = vor.u32 1.1754944e-38, %v4073_v61  ;;  %vm4022_vm7 = vweird.f32 %v6982_v9  ;;  %v4051_v12 = vadd.f32 %v5001_v31, %v4050_v3 }
 0x474   :  { %v3925_v51 = vsel %vm6978_vm13, %v3924_v27, %v3920_v7  ;;  %v4065_v4 = vmul.f32 %v5003_v58, %v4064_v25  ;;  %v4018_v55 = vmul.f32 %v5005_v53, %v6982_v9  ;;  %vm7022_vm8 = vcmp.eq.f32.partialorder %v4026_v0, 8.507059e+37  ;;  %v5007_v56 = vpop.eup %5006  ;;  %vm4069_vm13 = vmor %vm4067_vm1, %vm4068_vm6 }
 0x475   :  { %vm4037_vm9 = vweird.f32 %v6985_v19  ;;  %4474 = vst [vmem:[#allocation10 + $0x308] sm:$0xff] %v3925_v51  ;;  %vm4023_vm11 = vweird.f32 %v5005_v53  ;;  %v4029_v26 = vor.u32 1.1754944e-38, %v4028_v63  ;;  %v4044_v36 = vor.u32 1.1754944e-38, %v4043_v50 }
 0x476   :  { %v4176_v30 = vand.u32 2147483647, %v7001_v1  ;;  %v4055_v54 = vsel %vm4054_vm10, %v5001_v31, %v4051_v12  ;;  %v4066_v39 = vadd.f32 %v5003_v58, %v4065_v4  ;;  %v4019_v38 = vsub.f32 1.0, %v4018_v55  ;;  %vm4024_vm1 = vmor %vm4022_vm7, %vm4023_vm11 }
 0x477   :  { %v4033_v47 = vmul.f32 %v5007_v56, %v6985_v19  ;;  %vm7032_vm12 = vcmp.eq.f32.partialorder %v4041_v16, 8.507059e+37  ;;  %v4060_v6 = vsel %vm6995_vm0, %v4059_v60, %v4055_v54  ;;  %vm4038_vm14 = vweird.f32 %v5007_v56 }
 0x478   :  { %vm4172_vm15 = vweird.f32 %v7001_v1  ;;  %v4178_v14 = vand.u32 2147483648, %v7001_v1  ;;  %5010 = vpow2.f32 %v6975_v5  ;;  %v5009_v28 = vpop.eup %5008  ;;  %4483 = vst [vmem:[#allocation10 + $0x350] sm:$0xff] %v4060_v6  ;;  %v4070_v2 = vsel %vm4069_vm13, %v5003_v58, %v4066_v39  ;;  %vm4039_vm2 = vmor %vm4037_vm9, %vm4038_vm14 }
 0x479   :  { %v4020_v10 = vmul.f32 %v5005_v53, %v4019_v38  ;;  %v4034_v37 = vsub.f32 1.0, %v4033_v47  ;;  %v4688_v18 = vmul.f32 -1.442695, %v6988_v33  ;;  %v4075_v22 = vsel %vm7007_vm3, %v4074_v17, %v4070_v2 }
 0x47a   :  { %v4168_v23 = vmul.f32 %v5009_v28, %v7001_v1  ;;  %vm4173_vm0 = vweird.f32 %v5009_v28  ;;  %v1550_v45 = vadd.f32 %v1549_v32, %v6026_v21  ;;  %4484 = vst [vmem:[#allocation10 + $0x358] sm:$0xff] %v4075_v22  ;;  %v1618_v40 = vadd.f32 %v1617_v62, %v6016_v48  ;;  %v5294_v1 = vld [vmem:[#allocation8] sm:$0xff] }
 0x47b   :  { %v4021_v5 = vadd.f32 %v5005_v53, %v4020_v10  ;;  %v4035_v27 = vmul.f32 %v5007_v56, %v4034_v37  ;;  %5012 = vpow2.f32 %v4688_v18  ;;  %v1683_v34 = vadd.f32 %v1682_v42, %v6018_v57  ;;  %vm4174_vm3 = vmor %vm4172_vm15, %vm4173_vm0  ;;  %v7111_v42 = vpop.f32.mrf.mxu1 }
 0x47c   :  { %v4169_v33 = vsub.f32 1.0, %v4168_v23  ;;  %v4689_v31 = vmul.f32 -1.442695, %v1550_v45  ;;  %v1488_v43 = vadd.f32 %v1487_v46, %v6024_v13  ;;  %v4698_v60 = vmul.f32 -1.442695, %v1618_v40 }
 0x47d   :  { %v4025_v15 = vsel %vm4024_vm1, %v5005_v53, %v4021_v5  ;;  %v4036_v59 = vadd.f32 %v5007_v56, %v4035_v27  ;;  %v1553_v61 = vadd.f32 %v1552_v49, %v6026_v21  ;;  %v4699_v9 = vmul.f32 -1.442695, %v1683_v34  ;;  %v1832_v53 = vpop.f32.mrf.mxu0 }
 0x47e   :  { %v5011_v58 = vpop.eup %5010  ;;  %v4030_v52 = vsel %vm7022_vm8, %v4029_v26, %v4025_v15  ;;  %v4170_v48 = vmul.f32 %v5009_v28, %v4169_v33  ;;  %5014 = vpow2.f32 %v4689_v31  ;;  %v4696_v13 = vmul.f32 -1.442695, %v1488_v43 }
 0x47f   :  { %4481 = vst [vmem:[#allocation10 + $0x340] sm:$0xff] %v4030_v52  ;;  %v4040_v57 = vsel %vm4039_vm2, %v5007_v56, %v4036_v59  ;;  %v7061_v11 = vadd.f32 1.0, %v5011_v58  ;;  %5016 = vpow2.f32 %v4698_v60  ;;  %v4697_v44 = vmul.f32 -1.442695, %v1553_v61 }
 0x480   :  { %v4045_v21 = vsel %vm7032_vm12, %v4044_v36, %v4040_v57  ;;  %v4171_v32 = vadd.f32 %v5009_v28, %v4170_v48  ;;  %5018 = vpow2.f32 %v4699_v9  ;;  %v4179_v19 = vor.u32 1.1754944e-38, %v4178_v14  ;;  %v1702_v57 = vpop.f32.mrf.mxu2 }
 0x481   :  { %v5013_v20 = vpop.eup %5012  ;;  %4482 = vst [vmem:[#allocation10 + $0x348] sm:$0xff] %v4045_v21  ;;  %5020 = vrcp.f32 %v7061_v11  ;;  %vm4177_vm4 = vcmp.eq.f32.partialorder %v4176_v30, 8.507059e+37  ;;  %v4191_v63 = vand.u32 2147483647, %v7061_v11  ;;  %v4193_v16 = vand.u32 2147483648, %v7061_v11 }
 0x482   :  { %v4175_v41 = vsel %vm4174_vm3, %v5009_v28, %v4171_v32  ;;  %v7069_v29 = vadd.f32 1.0, %v5013_v20  ;;  %5022 = vpow2.f32 %v4696_v13  ;;  %v7074_v3 = vperm.slane %v5294_v1, 6  ;;  %v1767_v32 = vpop.f32.mrf.mxu3 }
 0x483   :  { %v4180_v0 = vsel %vm4177_vm4, %v4179_v19, %v4175_v41  ;;  %5024 = vpow2.f32 %v4697_v44  ;;  %vm4187_vm5 = vweird.f32 %v7061_v11  ;;  %vm7085_vm6 = vcmp.eq.f32.partialorder %v4191_v63, 8.507059e+37 }
 0x484   :  { %v5015_v8 = vpop.eup %5014  ;;  %4491 = vst [vmem:[#allocation10 + $0x390] sm:$0xff] %v4180_v0  ;;  %5026 = vrcp.f32 %v7069_v29  ;;  %v4146_v12 = vand.u32 2147483647, %v7069_v29  ;;  %v4148_v4 = vand.u32 2147483648, %v7069_v29  ;;  %v4194_v26 = vor.u32 1.1754944e-38, %v4193_v16 }
 0x485   :  { %v5017_v25 = vpop.eup %5016  ;;  %v7076_v50 = vadd.f32 1.0, %v5015_v8  ;;  %v7091_v36 = vadd.f32 %v1832_v53, %v7074_v3  ;;  %vm4142_vm7 = vweird.f32 %v7069_v29  ;;  %v7096_v38 = vperm.slane %v5294_v1, 7 }
 0x486   :  { %v5019_v7 = vpop.eup %5018  ;;  %v7078_v17 = vadd.f32 1.0, %v5017_v25  ;;  %v7098_v47 = vperm.slane %v5294_v1, 4  ;;  %vm7106_vm8 = vcmp.eq.f32.partialorder %v4146_v12, 8.507059e+37  ;;  %v4149_v37 = vor.u32 1.1754944e-38, %v4148_v4 }
 0x487   :  { %v5021_v51 = vpop.eup %5020  ;;  %5028 = vrcp.f32 %v7076_v50  ;;  %v4161_v54 = vand.u32 2147483647, %v7076_v50  ;;  %v4163_v39 = vand.u32 2147483648, %v7076_v50  ;;  %v7101_v62 = vadd.f32 1.0, %v5019_v7 }
 0x488   :  { %v5023_v55 = vpop.eup %5022  ;;  %v4183_v24 = vmul.f32 %v5021_v51, %v7061_v11  ;;  %5030 = vrcp.f32 %v7078_v17  ;;  %v4298_v14 = vand.u32 2147483648, %v7078_v17  ;;  %v4296_v18 = vand.u32 2147483647, %v7078_v17 }
 0x489   :  { %v5025_v30 = vpop.eup %5024  ;;  %v7103_v28 = vadd.f32 1.0, %v5023_v55  ;;  %v7113_v46 = vperm.slane %v5294_v1, 5  ;;  %vm4188_vm9 = vweird.f32 %v5021_v51  ;;  %vm4157_vm10 = vweird.f32 %v7076_v50  ;;  %v1835_v1 = vpop.f32.mrf.mxu0 }
 0x48a   :  { %v5027_v35 = vpop.eup %5026  ;;  %v4184_v6 = vsub.f32 1.0, %v4183_v24  ;;  %5032 = vrcp.f32 %v7101_v62  ;;  %v4164_v49 = vor.u32 1.1754944e-38, %v4163_v39  ;;  %vm4292_vm11 = vweird.f32 %v7078_v17  ;;  %vm4189_vm14 = vmor %vm4187_vm5, %vm4188_vm9  ;;  %v1900_v55 = vpop.f32.mrf.mxu1 }
 0x48b   :  { %v4138_v2 = vmul.f32 %v5027_v35, %v7069_v29  ;;  %5034 = vrcp.f32 %v7103_v28  ;;  %v7121_v5 = vadd.f32 1.0, %v5025_v30  ;;  %vm4143_vm12 = vweird.f32 %v5027_v35 }
 0x48c   :  { %v4185_v22 = vmul.f32 %v5021_v51, %v4184_v6  ;;  %vm7125_vm13 = vcmp.eq.f32.partialorder %v4161_v54, 8.507059e+37  ;;  %v4299_v34 = vor.u32 1.1754944e-38, %v4298_v14  ;;  %vm7133_vm15 = vcmp.eq.f32.partialorder %v4296_v18, 8.507059e+37  ;;  %vm4144_vm1 = vmor %vm4142_vm7, %vm4143_vm12 }
 0x48d   :  { %v7117_v23 = vpop.eup %5028  ;;  %v4139_v45 = vsub.f32 1.0, %v4138_v2  ;;  %v4311_v60 = vand.u32 2147483647, %v7101_v62  ;;  %v4313_v61 = vand.u32 2147483648, %v7101_v62  ;;  %v4266_v48 = vand.u32 2147483647, %v7103_v28 }
 0x48e   :  { %v5031_v27 = vpop.eup %5030  ;;  %v4186_v40 = vadd.f32 %v5021_v51, %v4185_v22  ;;  %v4153_v33 = vmul.f32 %v7117_v23, %v7076_v50  ;;  %v4268_v9 = vand.u32 2147483648, %v7103_v28  ;;  %vm4307_vm0 = vweird.f32 %v7101_v62 }
 0x48f   :  { %v4140_v43 = vmul.f32 %v5027_v35, %v4139_v45  ;;  %v4288_v15 = vmul.f32 %v5031_v27, %v7078_v17  ;;  %5036 = vrcp.f32 %v7121_v5  ;;  %vm4158_vm2 = vweird.f32 %v7117_v23  ;;  %v1705_v45 = vpop.f32.mrf.mxu2 }
 0x490   :  { %v4190_v58 = vsel %vm4189_vm14, %v5021_v51, %v4186_v40  ;;  %v4154_v52 = vsub.f32 1.0, %v4153_v33  ;;  %v5033_v44 = vpop.eup %5032  ;;  %vm4293_vm3 = vweird.f32 %v5031_v27  ;;  %vm4262_vm4 = vweird.f32 %v7103_v28  ;;  %vm4159_vm7 = vmor %vm4157_vm10, %vm4158_vm2  ;;  %v1770_v33 = vpop.f32.mrf.mxu3 }
 0x491   :  { %v4195_v11 = vsel %vm7085_vm6, %v4194_v26, %v4190_v58  ;;  %v4141_v13 = vadd.f32 %v5027_v35, %v4140_v43  ;;  %v4289_v21 = vsub.f32 1.0, %v4288_v15  ;;  %v5035_v19 = vpop.eup %5034  ;;  %v4303_v8 = vmul.f32 %v5033_v44, %v7101_v62 }
 0x492   :  { %4492 = vst [vmem:[#allocation10 + $0x398] sm:$0xff] %v4195_v11  ;;  %v4155_v20 = vmul.f32 %v7117_v23, %v4154_v52  ;;  %vm7152_vm5 = vcmp.eq.f32.partialorder %v4311_v60, 8.507059e+37  ;;  %v4314_v16 = vor.u32 1.1754944e-38, %v4313_v61  ;;  %v4258_v53 = vmul.f32 %v5035_v19, %v7103_v28  ;;  %v1838_v28 = vpop.f32.mrf.mxu0 }
 0x493   :  { %v4145_v41 = vsel %vm4144_vm1, %v5027_v35, %v4141_v13  ;;  %v4290_v0 = vmul.f32 %v5031_v27, %v4289_v21  ;;  %vm7160_vm6 = vcmp.eq.f32.partialorder %v4266_v48, 8.507059e+37  ;;  %v4269_v51 = vor.u32 1.1754944e-38, %v4268_v9 }
 0x494   :  { %v4150_v29 = vsel %vm7106_vm8, %v4149_v37, %v4145_v41  ;;  %v4156_v25 = vadd.f32 %v7117_v23, %v4155_v20  ;;  %v4304_v4 = vsub.f32 1.0, %v4303_v8  ;;  %vm4308_vm9 = vweird.f32 %v5033_v44  ;;  %vm4294_vm8 = vmor %vm4292_vm11, %vm4293_vm3 }
 0x495   :  { %4489 = vst [vmem:[#allocation10 + $0x380] sm:$0xff] %v4150_v29  ;;  %v4291_v12 = vadd.f32 %v5031_v27, %v4290_v0  ;;  %vm4263_vm12 = vweird.f32 %v5035_v19  ;;  %v4259_v56 = vsub.f32 1.0, %v4258_v53  ;;  %v4582_v26 = vmul.f32 -1.442695, %v7091_v36  ;;  %v5037_v54 = vpop.eup %5036  ;;  %vm4309_vm11 = vmor %vm4307_vm0, %vm4308_vm9 }
 0x496   :  { %v4160_v24 = vsel %vm4159_vm7, %v7117_v23, %v4156_v25  ;;  %v1898_v30 = vadd.f32 %v7111_v42, %v7096_v38  ;;  %v4305_v35 = vmul.f32 %v5033_v44, %v4304_v4  ;;  %v4281_v6 = vand.u32 2147483647, %v7121_v5 }
 0x497   :  { %v4165_v50 = vsel %vm7125_vm13, %v4164_v49, %v4160_v24  ;;  %v4295_v39 = vsel %vm4294_vm8, %v5031_v27, %v4291_v12  ;;  %v4260_v17 = vmul.f32 %v5035_v19, %v4259_v56  ;;  %v4273_v2 = vmul.f32 %v5037_v54, %v7121_v5  ;;  %vm4264_vm13 = vmor %vm4262_vm4, %vm4263_vm12  ;;  %v1708_v63 = vpop.f32.mrf.mxu2 }
 0x498   :  { %4490 = vst [vmem:[#allocation10 + $0x388] sm:$0xff] %v4165_v50  ;;  %v4300_v14 = vsel %vm7133_vm15, %v4299_v34, %v4295_v39  ;;  %v4283_v36 = vand.u32 2147483648, %v7121_v5  ;;  %v4306_v10 = vadd.f32 %v5033_v44, %v4305_v35  ;;  %vm4278_vm10 = vweird.f32 %v5037_v54  ;;  %v1773_v53 = vpop.f32.mrf.mxu3 }
 0x499   :  { %4499 = vst [vmem:[#allocation10 + $0x3d0] sm:$0xff] %v4300_v14  ;;  %5038 = vpow2.f32 %v4582_v26  ;;  %v4583_v37 = vmul.f32 -1.442695, %v1898_v30  ;;  %v4261_v18 = vadd.f32 %v5035_v19, %v4260_v17  ;;  %v4274_v42 = vsub.f32 1.0, %v4273_v2 }
 0x49a   :  { %v1703_v22 = vadd.f32 %v1702_v57, %v7098_v47  ;;  %v1768_v23 = vadd.f32 %v1767_v32, %v7113_v46  ;;  %v4310_v49 = vsel %vm4309_vm11, %v5033_v44, %v4306_v10  ;;  %v1836_v27 = vadd.f32 %v1835_v1, %v7074_v3  ;;  %v1903_v57 = vpop.f32.mrf.mxu1  ;;  %v1841_v56 = vpop.f32.mrf.mxu0 }
 0x49b   :  { %5040 = vpow2.f32 %v4583_v37  ;;  %v1901_v40 = vadd.f32 %v1900_v55, %v7096_v38  ;;  %v4315_v62 = vsel %vm7152_vm5, %v4314_v16, %v4310_v49  ;;  %v4265_v31 = vsel %vm4264_vm13, %v5035_v19, %v4261_v18 }
 0x49c   :  { %v4275_v34 = vmul.f32 %v5037_v54, %v4274_v42  ;;  %v4580_v43 = vmul.f32 -1.442695, %v1703_v22  ;;  %4500 = vst [vmem:[#allocation10 + $0x3d8] sm:$0xff] %v4315_v62  ;;  %v4270_v15 = vsel %vm7160_vm6, %v4269_v51, %v4265_v31  ;;  %v4581_v59 = vmul.f32 -1.442695, %v1768_v23 }
 0x49d   :  { %v4590_v60 = vmul.f32 -1.442695, %v1836_v27  ;;  %4497 = vst [vmem:[#allocation10 + $0x3c0] sm:$0xff] %v4270_v15  ;;  %vm4277_vm14 = vweird.f32 %v7121_v5  ;;  %v1706_v58 = vadd.f32 %v1705_v45, %v7098_v47  ;;  %vm4282_vm0 = vcmp.eq.f32.partialorder %v4281_v6, 8.507059e+37 }
 0x49e   :  { %v4276_v61 = vadd.f32 %v5037_v54, %v4275_v34  ;;  %5042 = vpow2.f32 %v4580_v43  ;;  %vm4279_vm15 = vmor %vm4277_vm14, %vm4278_vm10  ;;  %v4284_v48 = vor.u32 1.1754944e-38, %v4283_v36  ;;  %v1771_v9 = vadd.f32 %v1770_v33, %v7113_v46 }
 0x49f   :  { %v5039_v52 = vpop.eup %5038  ;;  %5044 = vpow2.f32 %v4581_v59  ;;  %v4591_v21 = vmul.f32 -1.442695, %v1901_v40  ;;  %v1839_v5 = vadd.f32 %v1838_v28, %v7074_v3  ;;  %v4588_v20 = vmul.f32 -1.442695, %v1706_v58 }
 0x4a0   :  { %v4280_v11 = vsel %vm4279_vm15, %v5037_v54, %v4276_v61  ;;  %v7200_v13 = vadd.f32 1.0, %v5039_v52  ;;  %5046 = vpow2.f32 %v4590_v60  ;;  %v1904_v19 = vadd.f32 %v1903_v57, %v7096_v38 }
 0x4a1   :  { %v5041_v32 = vpop.eup %5040  ;;  %v4285_v44 = vsel %vm4282_vm0, %v4284_v48, %v4280_v11  ;;  %v4589_v0 = vmul.f32 -1.442695, %v1771_v9  ;;  %v4598_v25 = vmul.f32 -1.442695, %v1839_v5  ;;  %v1709_v24 = vadd.f32 %v1708_v63, %v7098_v47 }
 0x4a2   :  { %4498 = vst [vmem:[#allocation10 + $0x3c8] sm:$0xff] %v4285_v44  ;;  %5048 = vrcp.f32 %v7200_v13  ;;  %v7205_v41 = vadd.f32 1.0, %v5041_v32  ;;  %v2556_v1 = vand.u32 2147483647, %v7200_v13  ;;  %v2558_v29 = vand.u32 2147483648, %v7200_v13 }
 0x4a3   :  { %5050 = vpow2.f32 %v4591_v21  ;;  %v4599_v4 = vmul.f32 -1.442695, %v1904_v19  ;;  %vm2552_vm1 = vweird.f32 %v7200_v13  ;;  %v7222_v50 = vadd.f32 %v1773_v53, %v7113_v46 }
 0x4a4   :  { %v5043_v8 = vpop.eup %5042  ;;  %5052 = vrcp.f32 %v7205_v41  ;;  %v2571_v30 = vand.u32 2147483647, %v7205_v41  ;;  %v2573_v54 = vand.u32 2147483648, %v7205_v41  ;;  %vm7225_vm2 = vcmp.eq.f32.partialorder %v2556_v1, 8.507059e+37 }
 0x4a5   :  { %v5045_v16 = vpop.eup %5044  ;;  %v7210_v51 = vadd.f32 1.0, %v5043_v8  ;;  %5054 = vpow2.f32 %v4588_v20  ;;  %v2559_v6 = vor.u32 1.1754944e-38, %v2558_v29  ;;  %vm2567_vm3 = vweird.f32 %v7205_v41 }
 0x4a6   :  { %v5047_v7 = vpop.eup %5046  ;;  %v7212_v12 = vadd.f32 1.0, %v5045_v16  ;;  %5056 = vpow2.f32 %v4589_v0  ;;  %v7233_v2 = vadd.f32 %v1841_v56, %v7074_v3  ;;  %v7237_v18 = vmul.f32 -1.442695, %v1709_v24 }
 0x4a7   :  { %v7215_v55 = vadd.f32 1.0, %v5047_v7  ;;  %5058 = vrcp.f32 %v7210_v51  ;;  %v2528_v17 = vand.u32 2147483648, %v7210_v51  ;;  %v2526_v37 = vand.u32 2147483647, %v7210_v51 }
 0x4a8   :  { %v5049_v26 = vpop.eup %5048  ;;  %5060 = vrcp.f32 %v7212_v12  ;;  %vm7240_vm4 = vcmp.eq.f32.partialorder %v2571_v30, 8.507059e+37  ;;  %v2574_v45 = vor.u32 1.1754944e-38, %v2573_v54  ;;  %v2541_v49 = vand.u32 2147483647, %v7212_v12 }
 0x4a9   :  { %v2548_v39 = vmul.f32 %v5049_v26, %v7200_v13  ;;  %v5051_v14 = vpop.eup %5050  ;;  %5062 = vpow2.f32 %v4598_v25  ;;  %vm2553_vm5 = vweird.f32 %v5049_v26  ;;  %v2543_v33 = vand.u32 2147483648, %v7212_v12 }
 0x4aa   :  { %v5053_v36 = vpop.eup %5052  ;;  %5064 = vrcp.f32 %v7215_v55  ;;  %v7246_v62 = vadd.f32 1.0, %v5051_v14  ;;  %vm2522_vm6 = vweird.f32 %v7210_v51  ;;  %v2529_v43 = vor.u32 1.1754944e-38, %v2528_v17  ;;  %vm2554_vm8 = vmor %vm2552_vm1, %vm2553_vm5 }
 0x4ab   :  { %v2549_v10 = vsub.f32 1.0, %v2548_v39  ;;  %v5055_v42 = vpop.eup %5054  ;;  %v2563_v22 = vmul.f32 %v5053_v36, %v7205_v41  ;;  %5066 = vpow2.f32 %v4599_v4  ;;  %vm2537_vm7 = vweird.f32 %v7212_v12 }
 0x4ac   :  { %v5057_v27 = vpop.eup %5056  ;;  %vm2568_vm9 = vweird.f32 %v5053_v36  ;;  %vm7251_vm12 = vcmp.eq.f32.partialorder %v2526_v37, 8.507059e+37  ;;  %v2676_v61 = vand.u32 2147483647, %v7215_v55  ;;  %vm7260_vm10 = vcmp.eq.f32.partialorder %v2541_v49, 8.507059e+37 }
 0x4ad   :  { %v2550_v40 = vmul.f32 %v5049_v26, %v2549_v10  ;;  %v5059_v31 = vpop.eup %5058  ;;  %v2564_v34 = vsub.f32 1.0, %v2563_v22  ;;  %vm2672_vm11 = vweird.f32 %v7215_v55  ;;  %5068 = vrcp.f32 %v7246_v62  ;;  %vm2569_vm13 = vmor %vm2567_vm3, %vm2568_vm9 }
 0x4ae   :  { %v5061_v15 = vpop.eup %5060  ;;  %v2518_v60 = vmul.f32 %v5059_v31, %v7210_v51  ;;  %v7266_v57 = vadd.f32 1.0, %v5055_v42  ;;  %v2544_v44 = vor.u32 1.1754944e-38, %v2543_v33  ;;  %v2678_v13 = vand.u32 2147483648, %v7215_v55 }
 0x4af   :  { %v2551_v59 = vadd.f32 %v5049_v26, %v2550_v40  ;;  %v5063_v58 = vpop.eup %5062  ;;  %v2565_v52 = vmul.f32 %v5053_v36, %v2564_v34  ;;  %v2533_v48 = vmul.f32 %v5061_v15, %v7212_v12  ;;  %vm2523_vm14 = vweird.f32 %v5059_v31 }
 0x4b0   :  { %v5065_v11 = vpop.eup %5064  ;;  %v2519_v32 = vsub.f32 1.0, %v2518_v60  ;;  %vm2538_vm15 = vweird.f32 %v5061_v15  ;;  %v7275_v16 = vadd.f32 1.0, %v5057_v27  ;;  %5070 = vrcp.f32 %v7266_v57  ;;  %vm2524_vm1 = vmor %vm2522_vm6, %vm2523_vm14 }
 0x4b1   :  { %v2555_v21 = vsel %vm2554_vm8, %v5049_v26, %v2551_v59  ;;  %v5067_v5 = vpop.eup %5066  ;;  %v2566_v19 = vadd.f32 %v5053_v36, %v2565_v52  ;;  %v2534_v0 = vsub.f32 1.0, %v2533_v48  ;;  %v2668_v8 = vmul.f32 %v5065_v11, %v7215_v55  ;;  %vm2539_vm3 = vmor %vm2537_vm7, %vm2538_vm15 }
 0x4b2   :  { %v2560_v20 = vsel %vm7225_vm2, %v2559_v6, %v2555_v21  ;;  %v2520_v63 = vmul.f32 %v5059_v31, %v2519_v32  ;;  %vm7280_vm0 = vcmp.eq.f32.partialorder %v2676_v61, 8.507059e+37  ;;  %v7284_v41 = vadd.f32 1.0, %v5063_v58  ;;  %v1906_v21 = vpop.f32.mrf.mxu1 }
 0x4b3   :  { %4383 = vst [vmem:[#allocation10 + $0x30] sm:$0xff] %v2560_v20  ;;  %v2570_v1 = vsel %vm2569_vm13, %v5053_v36, %v2566_v19  ;;  %v2535_v29 = vmul.f32 %v5061_v15, %v2534_v0  ;;  %v2669_v25 = vsub.f32 1.0, %v2668_v8  ;;  %v5069_v24 = vpop.eup %5068  ;;  %vm2673_vm2 = vweird.f32 %v5065_v11 }
 0x4b4   :  { %v2575_v53 = vsel %vm7240_vm4, %v2574_v45, %v2570_v1  ;;  %v2521_v7 = vadd.f32 %v5059_v31, %v2520_v63  ;;  %v2691_v30 = vand.u32 2147483647, %v7246_v62  ;;  %v2679_v39 = vor.u32 1.1754944e-38, %v2678_v13  ;;  %vm2674_vm4 = vmor %vm2672_vm11, %vm2673_vm2 }
 0x4b5   :  { %4384 = vst [vmem:[#allocation10 + $0x38] sm:$0xff] %v2575_v53  ;;  %v2536_v56 = vadd.f32 %v5061_v15, %v2535_v29  ;;  %v2670_v26 = vmul.f32 %v5065_v11, %v2669_v25  ;;  %v2683_v35 = vmul.f32 %v5069_v24, %v7246_v62  ;;  %5072 = vrcp.f32 %v7275_v16 }
 0x4b6   :  { %v2525_v54 = vsel %vm2524_vm1, %v5059_v31, %v2521_v7  ;;  %v2693_v17 = vand.u32 2147483648, %v7246_v62  ;;  %vm2687_vm5 = vweird.f32 %v7246_v62  ;;  %v2646_v10 = vand.u32 2147483647, %v7266_v57  ;;  %v5071_v37 = vpop.eup %5070 }
 0x4b7   :  { %v2530_v6 = vsel %vm7251_vm12, %v2529_v43, %v2525_v54  ;;  %v2540_v51 = vsel %vm2539_vm3, %v5061_v15, %v2536_v56  ;;  %v2671_v14 = vadd.f32 %v5065_v11, %v2670_v26  ;;  %v2684_v12 = vsub.f32 1.0, %v2683_v35 }
 0x4b8   :  { %4381 = vst [vmem:[#allocation10 + $0x20] sm:$0xff] %v2530_v6  ;;  %v2545_v36 = vsel %vm7260_vm10, %v2544_v44, %v2540_v51  ;;  %vm7303_vm6 = vcmp.eq.f32.partialorder %v2691_v30, 8.507059e+37  ;;  %v2648_v23 = vand.u32 2147483648, %v7266_v57  ;;  %5074 = vrcp.f32 %v7284_v41  ;;  %v1776_v30 = vpop.f32.mrf.mxu3 }
 0x4b9   :  { %4382 = vst [vmem:[#allocation10 + $0x28] sm:$0xff] %v2545_v36  ;;  %v2675_v42 = vsel %vm2674_vm4, %v5065_v11, %v2671_v14  ;;  %v2685_v45 = vmul.f32 %v5069_v24, %v2684_v12  ;;  %vm2688_vm7 = vweird.f32 %v5069_v24  ;;  %v2638_v49 = vmul.f32 %v5071_v37, %v7266_v57 }
 0x4ba   :  { %v2680_v55 = vsel %vm7280_vm0, %v2679_v39, %v2675_v42  ;;  %v2694_v27 = vor.u32 1.1754944e-38, %v2693_v17  ;;  %vm2642_vm9 = vweird.f32 %v7266_v57  ;;  %v2661_v40 = vand.u32 2147483647, %v7275_v16  ;;  %vm2689_vm8 = vmor %vm2687_vm5, %vm2688_vm7 }
 0x4bb   :  { %4391 = vst [vmem:[#allocation10 + $0x70] sm:$0xff] %v2680_v55  ;;  %v2663_v33 = vand.u32 2147483648, %v7275_v16  ;;  %v5073_v31 = vpop.eup %5072  ;;  %v2686_v34 = vadd.f32 %v5069_v24, %v2685_v45  ;;  %v2639_v43 = vsub.f32 1.0, %v2638_v49  ;;  %vm7315_vm12 = vcmp.eq.f32.partialorder %v2646_v10, 8.507059e+37 }
 0x4bc   :  { %v7319_v59 = vadd.f32 1.0, %v5067_v5  ;;  %v2649_v60 = vor.u32 1.1754944e-38, %v2648_v23  ;;  %v2653_v28 = vmul.f32 %v5073_v31, %v7275_v16  ;;  %vm2657_vm10 = vweird.f32 %v7275_v16  ;;  %v1711_v5 = vpop.f32.mrf.mxu2  ;;  %v1844_v23 = vpop.f32.mrf.mxu0 }
 0x4bd   :  { %5076 = vpow2.f32 %v7237_v18  ;;  %v2690_v61 = vsel %vm2689_vm8, %v5069_v24, %v2686_v34  ;;  %v2640_v58 = vmul.f32 %v5071_v37, %v2639_v43  ;;  %vm2643_vm11 = vweird.f32 %v5071_v37 }
 0x4be   :  { %5078 = vrcp.f32 %v7319_v59  ;;  %v5075_v52 = vpop.eup %5074  ;;  %v2695_v48 = vsel %vm7303_vm6, %v2694_v27, %v2690_v61  ;;  %v2654_v9 = vsub.f32 1.0, %v2653_v28  ;;  %vm7329_vm13 = vcmp.eq.f32.partialorder %v2661_v40, 8.507059e+37  ;;  %vm2644_vm14 = vmor %vm2642_vm9, %vm2643_vm11  ;;  %v1909_v27 = vpop.f32.mrf.mxu1 }
 0x4bf   :  { %v2664_v11 = vor.u32 1.1754944e-38, %v2663_v33  ;;  %4392 = vst [vmem:[#allocation10 + $0x78] sm:$0xff] %v2695_v48  ;;  %v2641_v32 = vadd.f32 %v5071_v37, %v2640_v58  ;;  %v2788_v18 = vmul.f32 %v5075_v52, %v7284_v41  ;;  %v2796_v44 = vand.u32 2147483647, %v7284_v41 }
 0x4c0   :  { %v2798_v13 = vand.u32 2147483648, %v7284_v41  ;;  %v2655_v20 = vmul.f32 %v5073_v31, %v2654_v9  ;;  %vm2658_vm15 = vweird.f32 %v5073_v31  ;;  %v4597_v19 = vmul.f32 -1.442695, %v7222_v50 }
 0x4c1   :  { %v4606_v0 = vmul.f32 -1.442695, %v7233_v2  ;;  %v2645_v8 = vsel %vm2644_vm14, %v5071_v37, %v2641_v32  ;;  %v2789_v63 = vsub.f32 1.0, %v2788_v18  ;;  %vm2793_vm0 = vweird.f32 %v5075_v52  ;;  %vm2659_vm1 = vmor %vm2657_vm10, %vm2658_vm15  ;;  %v1779_v32 = vpop.f32.mrf.mxu3 }
 0x4c2   :  { %v1907_v1 = vadd.f32 %v1906_v21, %v7096_v38  ;;  %v2650_v25 = vsel %vm7315_vm12, %v2649_v60, %v2645_v8  ;;  %v2656_v53 = vadd.f32 %v5073_v31, %v2655_v20  ;;  %5080 = vpow2.f32 %v4597_v19 }
 0x4c3   :  { %v5077_v29 = vpop.eup %5076  ;;  %v1712_v57 = vadd.f32 %v1711_v5, %v7098_v47  ;;  %4389 = vst [vmem:[#allocation10 + $0x60] sm:$0xff] %v2650_v25  ;;  %v2790_v50 = vmul.f32 %v5075_v52, %v2789_v63  ;;  %5082 = vpow2.f32 %v4606_v0  ;;  %vm2792_vm2 = vweird.f32 %v7284_v41 }
 0x4c4   :  { %v5079_v7 = vpop.eup %5078  ;;  %v7346_v2 = vadd.f32 1.0, %v5077_v29  ;;  %v4607_v4 = vmul.f32 -1.442695, %v1907_v1  ;;  %v2660_v24 = vsel %vm2659_vm1, %v5073_v31, %v2656_v53  ;;  %vm2797_vm3 = vcmp.eq.f32.partialorder %v2796_v44, 8.507059e+37  ;;  %vm2794_vm4 = vmor %vm2792_vm2, %vm2793_vm0  ;;  %v1714_v60 = vpop.f32.mrf.mxu2 }
 0x4c5   :  { %v2803_v56 = vmul.f32 %v5079_v7, %v7319_v59  ;;  %v4604_v26 = vmul.f32 -1.442695, %v1712_v57  ;;  %v2665_v54 = vsel %vm7329_vm13, %v2664_v11, %v2660_v24  ;;  %v2791_v39 = vadd.f32 %v5075_v52, %v2790_v50 }
 0x4c6   :  { %5084 = vrcp.f32 %v7346_v2  ;;  %4390 = vst [vmem:[#allocation10 + $0x68] sm:$0xff] %v2665_v54  ;;  %v2799_v16 = vor.u32 1.1754944e-38, %v2798_v13  ;;  %v2811_v6 = vand.u32 2147483647, %v7319_v59  ;;  %v2813_v51 = vand.u32 2147483648, %v7319_v59 }
 0x4c7   :  { %v2804_v35 = vsub.f32 1.0, %v2803_v56  ;;  %5086 = vpow2.f32 %v4607_v4  ;;  %v2795_v41 = vsel %vm2794_vm4, %v5075_v52, %v2791_v39  ;;  %v1777_v14 = vadd.f32 %v1776_v30, %v7113_v46 }
 0x4c8   :  { %5088 = vpow2.f32 %v4604_v26  ;;  %v5081_v17 = vpop.eup %5080  ;;  %v2800_v36 = vsel %vm2797_vm3, %v2799_v16, %v2795_v41  ;;  %vm2808_vm5 = vweird.f32 %v5079_v7  ;;  %v2766_v37 = vand.u32 2147483647, %v7346_v2 }
 0x4c9   :  { %v2805_v12 = vmul.f32 %v5079_v7, %v2804_v35  ;;  %v5083_v10 = vpop.eup %5082  ;;  %4399 = vst [vmem:[#allocation10 + $0xb0] sm:$0xff] %v2800_v36  ;;  %v2768_v42 = vand.u32 2147483648, %v7346_v2  ;;  %v7359_v22 = vadd.f32 1.0, %v5081_v17  ;;  %vm2807_vm6 = vweird.f32 %v7319_v59 }
 0x4ca   :  { %vm7362_vm7 = vcmp.eq.f32.partialorder %v2811_v6, 8.507059e+37  ;;  %v7366_v49 = vadd.f32 1.0, %v5083_v10  ;;  %vm2809_vm9 = vmor %vm2807_vm6, %vm2808_vm5  ;;  %v2814_v33 = vor.u32 1.1754944e-38, %v2813_v51  ;;  %vm2762_vm12 = vweird.f32 %v7346_v2 }
 0x4cb   :  { %v2806_v55 = vadd.f32 %v5079_v7, %v2805_v12  ;;  %5090 = vrcp.f32 %v7359_v22  ;;  %v4605_v31 = vmul.f32 -1.442695, %v1777_v14  ;;  %v1845_v59 = vadd.f32 %v1844_v23, %v7074_v3 }
 0x4cc   :  { %v5085_v40 = vpop.eup %5084  ;;  %5092 = vrcp.f32 %v7366_v49  ;;  %vm7375_vm8 = vcmp.eq.f32.partialorder %v2766_v37, 8.507059e+37  ;;  %v2769_v52 = vor.u32 1.1754944e-38, %v2768_v42  ;;  %v1910_v48 = vadd.f32 %v1909_v27, %v7096_v38 }
 0x4cd   :  { %v5087_v34 = vpop.eup %5086  ;;  %v2810_v43 = vsel %vm2809_vm9, %v5079_v7, %v2806_v55  ;;  %v2758_v15 = vmul.f32 %v5085_v40, %v7346_v2  ;;  %v2781_v62 = vand.u32 2147483647, %v7359_v22  ;;  %v2783_v11 = vand.u32 2147483648, %v7359_v22 }
 0x4ce   :  { %v5089_v28 = vpop.eup %5088  ;;  %v2815_v61 = vsel %vm7362_vm7, %v2814_v33, %v2810_v43  ;;  %v7382_v21 = vadd.f32 1.0, %v5087_v34  ;;  %vm2763_vm10 = vweird.f32 %v5085_v40  ;;  %5094 = vpow2.f32 %v4605_v31 }
 0x4cf   :  { %4400 = vst [vmem:[#allocation10 + $0xb8] sm:$0xff] %v2815_v61  ;;  %v2759_v9 = vsub.f32 1.0, %v2758_v15  ;;  %v7384_v18 = vadd.f32 1.0, %v5089_v28  ;;  %v1715_v44 = vadd.f32 %v1714_v60, %v7098_v47  ;;  %v2916_v5 = vand.u32 2147483647, %v7366_v49  ;;  %vm2764_vm14 = vmor %vm2762_vm12, %vm2763_vm10 }
 0x4d0   :  { %v2918_v20 = vand.u32 2147483648, %v7366_v49  ;;  %5096 = vrcp.f32 %v7382_v21  ;;  %vm2777_vm11 = vweird.f32 %v7359_v22  ;;  %v4614_v0 = vmul.f32 -1.442695, %v1845_v59 }
 0x4d1   :  { %v2760_v13 = vmul.f32 %v5085_v40, %v2759_v9  ;;  %v5091_v19 = vpop.eup %5090  ;;  %5098 = vrcp.f32 %v7384_v18  ;;  %v1780_v8 = vadd.f32 %v1779_v32, %v7113_v46  ;;  %vm7394_vm13 = vcmp.eq.f32.partialorder %v2781_v62, 8.507059e+37  ;;  %v1912_v32 = vpop.f32.mrf.mxu1 }
 0x4d2   :  { %v5093_v63 = vpop.eup %5092  ;;  %v2773_v29 = vmul.f32 %v5091_v19, %v7359_v22  ;;  %v2784_v53 = vor.u32 1.1754944e-38, %v2783_v11  ;;  %vm2912_vm15 = vweird.f32 %v7366_v49  ;;  %v4615_v7 = vmul.f32 -1.442695, %v1910_v48  ;;  %v1847_v11 = vpop.f32.mrf.mxu0 }
 0x4d3   :  { %v2761_v1 = vadd.f32 %v5085_v40, %v2760_v13  ;;  %v2908_v57 = vmul.f32 %v5093_v63, %v7366_v49  ;;  %v4612_v50 = vmul.f32 -1.442695, %v1715_v44  ;;  %vm7403_vm0 = vcmp.eq.f32.partialorder %v2916_v5, 8.507059e+37 }
 0x4d4   :  { %v2774_v24 = vsub.f32 1.0, %v2773_v29  ;;  %v2919_v26 = vor.u32 1.1754944e-38, %v2918_v20  ;;  %v5095_v30 = vpop.eup %5094  ;;  %vm2927_vm1 = vweird.f32 %v7382_v21  ;;  %v2931_v2 = vand.u32 2147483647, %v7382_v21 }
 0x4d5   :  { %v2765_v4 = vsel %vm2764_vm14, %v5085_v40, %v2761_v1  ;;  %v2909_v39 = vsub.f32 1.0, %v2908_v57  ;;  %5100 = vpow2.f32 %v4614_v0  ;;  %vm2778_vm2 = vweird.f32 %v5091_v19 }
 0x4d6   :  { %v2770_v54 = vsel %vm7375_vm8, %v2769_v52, %v2765_v4  ;;  %v5097_v16 = vpop.eup %5096  ;;  %v2775_v35 = vmul.f32 %v5091_v19, %v2774_v24  ;;  %v2933_v6 = vand.u32 2147483648, %v7382_v21  ;;  %v7412_v41 = vadd.f32 1.0, %v5095_v30  ;;  %vm2779_vm5 = vmor %vm2777_vm11, %vm2778_vm2 }
 0x4d7   :  { %4397 = vst [vmem:[#allocation10 + $0xa0] sm:$0xff] %v2770_v54  ;;  %v5099_v51 = vpop.eup %5098  ;;  %v2910_v14 = vmul.f32 %v5093_v63, %v2909_v39  ;;  %vm2913_vm3 = vweird.f32 %v5093_v63  ;;  %v2923_v17 = vmul.f32 %v5097_v16, %v7382_v21  ;;  %5102 = vpow2.f32 %v4615_v7  ;;  %v1717_v7 = vpop.f32.mrf.mxu2 }
 0x4d8   :  { %v2776_v36 = vadd.f32 %v5091_v19, %v2775_v35  ;;  %v2878_v12 = vmul.f32 %v5099_v51, %v7384_v18  ;;  %vm2882_vm4 = vweird.f32 %v7384_v18  ;;  %5104 = vrcp.f32 %v7412_v41  ;;  %vm2914_vm6 = vmor %vm2912_vm15, %vm2913_vm3 }
 0x4d9   :  { %v2911_v10 = vadd.f32 %v5093_v63, %v2910_v14  ;;  %v2924_v37 = vsub.f32 1.0, %v2923_v17  ;;  %v2886_v42 = vand.u32 2147483647, %v7384_v18  ;;  %v4613_v23 = vmul.f32 -1.442695, %v1780_v8 }
 0x4da   :  { %v2780_v55 = vsel %vm2779_vm5, %v5091_v19, %v2776_v36  ;;  %v2879_v45 = vsub.f32 1.0, %v2878_v12  ;;  %v2888_v27 = vand.u32 2147483648, %v7384_v18  ;;  %5106 = vpow2.f32 %v4612_v50 }
 0x4db   :  { %v5101_v40 = vpop.eup %5100  ;;  %v2785_v33 = vsel %vm7394_vm13, %v2784_v53, %v2780_v55  ;;  %v2915_v31 = vsel %vm2914_vm6, %v5093_v63, %v2911_v10  ;;  %v2925_v22 = vmul.f32 %v5097_v16, %v2924_v37  ;;  %vm2928_vm7 = vweird.f32 %v5097_v16  ;;  %v1782_v37 = vpop.f32.mrf.mxu3 }
 0x4dc   :  { %4398 = vst [vmem:[#allocation10 + $0xa8] sm:$0xff] %v2785_v33  ;;  %v2920_v34 = vsel %vm7403_vm0, %v2919_v26, %v2915_v31  ;;  %v2880_v43 = vmul.f32 %v5099_v51, %v2879_v45  ;;  %vm2883_vm9 = vweird.f32 %v5099_v51  ;;  %v7428_v15 = vadd.f32 1.0, %v5101_v40  ;;  %vm2929_vm8 = vmor %vm2927_vm1, %vm2928_vm7  ;;  %v1850_v33 = vpop.f32.mrf.mxu0  ;;  %v1915_v31 = vpop.f32.mrf.mxu1 }
 0x4dd   :  { %v5103_v49 = vpop.eup %5102  ;;  %4407 = vst [vmem:[#allocation10 + $0xf0] sm:$0xff] %v2920_v34  ;;  %v2926_v59 = vadd.f32 %v5097_v16, %v2925_v22  ;;  %vm7430_vm12 = vcmp.eq.f32.partialorder %v2931_v2, 8.507059e+37  ;;  %v2901_v28 = vand.u32 2147483647, %v7412_v41  ;;  %5108 = vpow2.f32 %v4613_v23  ;;  %vm2884_vm11 = vmor %vm2882_vm4, %vm2883_vm9 }
 0x4de   :  { %v5105_v61 = vpop.eup %5104  ;;  %v2934_v58 = vor.u32 1.1754944e-38, %v2933_v6  ;;  %v2881_v52 = vadd.f32 %v5099_v51, %v2880_v43  ;;  %vm2887_vm10 = vcmp.eq.f32.partialorder %v2886_v42, 8.507059e+37  ;;  %5110 = vrcp.f32 %v7428_v15 }
 0x4df   :  { %v2930_v48 = vsel %vm2929_vm8, %v5097_v16, %v2926_v59  ;;  %v2889_v9 = vor.u32 1.1754944e-38, %v2888_v27  ;;  %v2893_v62 = vmul.f32 %v5105_v61, %v7412_v41  ;;  %vm2897_vm13 = vweird.f32 %v7412_v41 }
 0x4e0   :  { %v5107_v44 = vpop.eup %5106  ;;  %v2935_v21 = vsel %vm7430_vm12, %v2934_v58, %v2930_v48  ;;  %v2885_v13 = vsel %vm2884_vm11, %v5099_v51, %v2881_v52  ;;  %v2903_v5 = vand.u32 2147483648, %v7412_v41  ;;  %v7446_v20 = vadd.f32 1.0, %v5103_v49 }
 0x4e1   :  { %4408 = vst [vmem:[#allocation10 + $0xf8] sm:$0xff] %v2935_v21  ;;  %v2890_v19 = vsel %vm2887_vm10, %v2889_v9, %v2885_v13  ;;  %v2894_v18 = vsub.f32 1.0, %v2893_v62  ;;  %vm7448_vm14 = vcmp.eq.f32.partialorder %v2901_v28, 8.507059e+37  ;;  %v7452_v8 = vadd.f32 1.0, %v5107_v44 }
 0x4e2   :  { %4405 = vst [vmem:[#allocation10 + $0xe0] sm:$0xff] %v2890_v19  ;;  %v3036_v63 = vand.u32 2147483647, %v7428_v15  ;;  %v3038_v1 = vand.u32 2147483648, %v7428_v15  ;;  %5112 = vrcp.f32 %v7446_v20  ;;  %v1848_v29 = vadd.f32 %v1847_v11, %v7074_v3  ;;  %v1720_v11 = vpop.f32.mrf.mxu2 }
 0x4e3   :  { %v5109_v25 = vpop.eup %5108  ;;  %v2895_v53 = vmul.f32 %v5105_v61, %v2894_v18  ;;  %vm2898_vm15 = vweird.f32 %v5105_v61  ;;  %v3053_v57 = vand.u32 2147483648, %v7446_v20  ;;  %5114 = vrcp.f32 %v7452_v8 }
 0x4e4   :  { %v5111_v50 = vpop.eup %5110  ;;  %v2904_v4 = vor.u32 1.1754944e-38, %v2903_v5  ;;  %vm3032_vm0 = vweird.f32 %v7428_v15  ;;  %v7461_v24 = vadd.f32 1.0, %v5109_v25  ;;  %v1913_v56 = vadd.f32 %v1912_v32, %v7096_v38  ;;  %vm2899_vm1 = vmor %vm2897_vm13, %vm2898_vm15 }
 0x4e5   :  { %v2896_v26 = vadd.f32 %v5105_v61, %v2895_v53  ;;  %v3028_v30 = vmul.f32 %v5111_v50, %v7428_v15  ;;  %v3051_v54 = vand.u32 2147483647, %v7446_v20  ;;  %v3008_v39 = vand.u32 2147483648, %v7452_v8 }
 0x4e6   :  { %vm7469_vm2 = vcmp.eq.f32.partialorder %v3036_v63, 8.507059e+37  ;;  %v3039_v16 = vor.u32 1.1754944e-38, %v3038_v1  ;;  %v3006_v35 = vand.u32 2147483647, %v7452_v8  ;;  %5116 = vrcp.f32 %v7461_v24 }
 0x4e7   :  { %v2900_v6 = vsel %vm2899_vm1, %v5105_v61, %v2896_v26  ;;  %v3029_v51 = vsub.f32 1.0, %v3028_v30  ;;  %vm3047_vm3 = vweird.f32 %v7446_v20  ;;  %v3054_v14 = vor.u32 1.1754944e-38, %v3053_v57 }
 0x4e8   :  { %v4622_v17 = vmul.f32 -1.442695, %v1848_v29  ;;  %v5113_v36 = vpop.eup %5112  ;;  %v2905_v41 = vsel %vm7448_vm14, %v2904_v4, %v2900_v6  ;;  %vm3033_vm4 = vweird.f32 %v5111_v50  ;;  %vm3002_vm5 = vweird.f32 %v7452_v8 }
 0x4e9   :  { %v4623_v12 = vmul.f32 -1.442695, %v1913_v56  ;;  %v1718_v10 = vadd.f32 %v1717_v7, %v7098_v47  ;;  %v5115_v42 = vpop.eup %5114  ;;  %4406 = vst [vmem:[#allocation10 + $0xe8] sm:$0xff] %v2905_v41  ;;  %v3030_v23 = vmul.f32 %v5111_v50, %v3029_v51  ;;  %v3043_v55 = vmul.f32 %v5113_v36, %v7446_v20  ;;  %vm3034_vm12 = vmor %vm3032_vm0, %vm3033_vm4  ;;  %v1853_v51 = vpop.f32.mrf.mxu0 }
 0x4ea   :  { %vm7481_vm6 = vcmp.eq.f32.partialorder %v3051_v54, 8.507059e+37  ;;  %v3009_v27 = vor.u32 1.1754944e-38, %v3008_v39  ;;  %v3021_v40 = vand.u32 2147483647, %v7461_v24  ;;  %vm3048_vm7 = vweird.f32 %v5113_v36  ;;  %v1785_v39 = vpop.f32.mrf.mxu3 }
 0x4eb   :  { %v2998_v22 = vmul.f32 %v5115_v42, %v7452_v8  ;;  %vm7487_vm9 = vcmp.eq.f32.partialorder %v3006_v35, 8.507059e+37  ;;  %5118 = vpow2.f32 %v4622_v17  ;;  %v4620_v43 = vmul.f32 -1.442695, %v1718_v10  ;;  %vm3049_vm10 = vmor %vm3047_vm3, %vm3048_vm7 }
 0x4ec   :  { %v3031_v49 = vadd.f32 %v5111_v50, %v3030_v23  ;;  %v3044_v59 = vsub.f32 1.0, %v3043_v55  ;;  %5120 = vpow2.f32 %v4623_v12  ;;  %v1783_v60 = vadd.f32 %v1782_v37, %v7113_v46  ;;  %v5117_v28 = vpop.eup %5116 }
 0x4ed   :  { %v2999_v61 = vsub.f32 1.0, %v2998_v22  ;;  %5122 = vpow2.f32 %v4620_v43  ;;  %v1851_v58 = vadd.f32 %v1850_v33, %v7074_v3  ;;  %v1916_v52 = vadd.f32 %v1915_v31, %v7096_v38 }
 0x4ee   :  { %v3035_v48 = vsel %vm3034_vm12, %v5111_v50, %v3031_v49  ;;  %v3045_v9 = vmul.f32 %v5113_v36, %v3044_v59  ;;  %vm3003_vm8 = vweird.f32 %v5115_v42  ;;  %v3013_v62 = vmul.f32 %v5117_v28, %v7461_v24 }
 0x4ef   :  { %v3040_v32 = vsel %vm7469_vm2, %v3039_v16, %v3035_v48  ;;  %v3000_v44 = vmul.f32 %v5115_v42, %v2999_v61  ;;  %v4621_v21 = vmul.f32 -1.442695, %v1783_v60  ;;  %v4630_v13 = vmul.f32 -1.442695, %v1851_v58  ;;  %vm3004_vm13 = vmor %vm3002_vm5, %vm3003_vm8 }
 0x4f0   :  { %4415 = vst [vmem:[#allocation10 + $0x130] sm:$0xff] %v3040_v32  ;;  %v3046_v15 = vadd.f32 %v5113_v36, %v3045_v9  ;;  %v3014_v5 = vsub.f32 1.0, %v3013_v62  ;;  %v3023_v19 = vand.u32 2147483648, %v7461_v24  ;;  %v4631_v18 = vmul.f32 -1.442695, %v1916_v52 }
 0x4f1   :  { %v5119_v0 = vpop.eup %5118  ;;  %v3001_v63 = vadd.f32 %v5115_v42, %v3000_v44  ;;  %vm3018_vm11 = vweird.f32 %v5117_v28  ;;  %5124 = vpow2.f32 %v4621_v21  ;;  %v1721_v1 = vadd.f32 %v1720_v11, %v7098_v47 }
 0x4f2   :  { %v5121_v29 = vpop.eup %5120  ;;  %v3050_v25 = vsel %vm3049_vm10, %v5113_v36, %v3046_v15  ;;  %v3015_v53 = vmul.f32 %v5117_v28, %v3014_v5  ;;  %v7508_v57 = vadd.f32 1.0, %v5119_v0  ;;  %5126 = vpow2.f32 %v4630_v13 }
 0x4f3   :  { %v5123_v7 = vpop.eup %5122  ;;  %v3055_v20 = vsel %vm7481_vm6, %v3054_v14, %v3050_v25  ;;  %v3005_v50 = vsel %vm3004_vm13, %v5115_v42, %v3001_v63  ;;  %v7512_v4 = vadd.f32 1.0, %v5121_v29  ;;  %5128 = vpow2.f32 %v4631_v18 }
 0x4f4   :  { %4416 = vst [vmem:[#allocation10 + $0x138] sm:$0xff] %v3055_v20  ;;  %v3010_v56 = vsel %vm7487_vm9, %v3009_v27, %v3005_v50  ;;  %v3016_v26 = vadd.f32 %v5117_v28, %v3015_v53  ;;  %vm3017_vm14 = vweird.f32 %v7461_v24  ;;  %5130 = vrcp.f32 %v7508_v57 }
 0x4f5   :  { %4413 = vst [vmem:[#allocation10 + $0x120] sm:$0xff] %v3010_v56  ;;  %vm3019_vm15 = vmor %vm3017_vm14, %vm3018_vm11  ;;  %v3024_v8 = vor.u32 1.1754944e-38, %v3023_v19  ;;  %5132 = vrcp.f32 %v7512_v4  ;;  %vm3022_vm0 = vcmp.eq.f32.partialorder %v3021_v40, 8.507059e+37  ;;  %v7520_v54 = vadd.f32 1.0, %v5123_v7 }
 0x4f6   :  { %v3020_v30 = vsel %vm3019_vm15, %v5117_v28, %v3016_v26  ;;  %v3156_v35 = vand.u32 2147483647, %v7508_v57  ;;  %v3158_v6 = vand.u32 2147483648, %v7508_v57  ;;  %v4628_v24 = vmul.f32 -1.442695, %v1721_v1 }
 0x4f7   :  { %v5125_v2 = vpop.eup %5124  ;;  %v3025_v16 = vsel %vm3022_vm0, %v3024_v8, %v3020_v30  ;;  %v3171_v17 = vand.u32 2147483647, %v7512_v4  ;;  %v3173_v36 = vand.u32 2147483648, %v7512_v4  ;;  %5134 = vrcp.f32 %v7520_v54 }
 0x4f8   :  { %v5127_v14 = vpop.eup %5126  ;;  %4414 = vst [vmem:[#allocation10 + $0x128] sm:$0xff] %v3025_v16  ;;  %v7527_v12 = vadd.f32 1.0, %v5125_v2  ;;  %v1786_v37 = vadd.f32 %v1785_v39, %v7113_v46  ;;  %vm3152_vm1 = vweird.f32 %v7508_v57  ;;  %vm3167_vm2 = vweird.f32 %v7512_v4  ;;  %v1918_v2 = vpop.f32.mrf.mxu1 }
 0x4f9   :  { %v5129_v41 = vpop.eup %5128  ;;  %v7529_v10 = vadd.f32 1.0, %v5127_v14  ;;  %5136 = vpow2.f32 %v4628_v24  ;;  %v1854_v23 = vadd.f32 %v1853_v51, %v7074_v3  ;;  %vm7536_vm3 = vcmp.eq.f32.partialorder %v3156_v35, 8.507059e+37 }
 0x4fa   :  { %v5131_v42 = vpop.eup %5130  ;;  %v3159_v40 = vor.u32 1.1754944e-38, %v3158_v6  ;;  %v3126_v33 = vand.u32 2147483647, %v7520_v54  ;;  %vm7542_vm4 = vcmp.eq.f32.partialorder %v3171_v17, 8.507059e+37  ;;  %v3174_v34 = vor.u32 1.1754944e-38, %v3173_v36  ;;  %v1723_v17 = vpop.f32.mrf.mxu2 }
 0x4fb   :  { %v5133_v55 = vpop.eup %5132  ;;  %v3148_v45 = vmul.f32 %v5131_v42, %v7508_v57  ;;  %v3128_v43 = vand.u32 2147483648, %v7520_v54  ;;  %5138 = vrcp.f32 %v7527_v12  ;;  %vm3122_vm5 = vweird.f32 %v7520_v54 }
 0x4fc   :  { %v3163_v31 = vmul.f32 %v5133_v55, %v7512_v4  ;;  %5140 = vrcp.f32 %v7529_v10  ;;  %v7550_v59 = vadd.f32 1.0, %v5129_v41  ;;  %vm3153_vm6 = vweird.f32 %v5131_v42 }
 0x4fd   :  { %v3149_v49 = vsub.f32 1.0, %v3148_v45  ;;  %v5135_v60 = vpop.eup %5134  ;;  %v4629_v61 = vmul.f32 -1.442695, %v1786_v37  ;;  %v7552_v58 = vmul.f32 -1.442695, %v1854_v23  ;;  %vm7555_vm7 = vcmp.eq.f32.partialorder %v3126_v33, 8.507059e+37  ;;  %vm3154_vm8 = vmor %vm3152_vm1, %vm3153_vm6  ;;  %v1788_v37 = vpop.f32.mrf.mxu3 }
 0x4fe   :  { %v3164_v28 = vsub.f32 1.0, %v3163_v31  ;;  %v3118_v48 = vmul.f32 %v5135_v60, %v7520_v54  ;;  %v3141_v62 = vand.u32 2147483647, %v7527_v12  ;;  %v3143_v11 = vand.u32 2147483648, %v7527_v12 }
 0x4ff   :  { %v3150_v52 = vmul.f32 %v5131_v42, %v3149_v49  ;;  %v5137_v32 = vpop.eup %5136  ;;  %vm3168_vm9 = vweird.f32 %v5133_v55  ;;  %v3129_v21 = vor.u32 1.1754944e-38, %v3128_v43  ;;  %v3276_v13 = vand.u32 2147483647, %v7529_v10 }
 0x500   :  { %v3165_v44 = vmul.f32 %v5133_v55, %v3164_v28  ;;  %v3119_v5 = vsub.f32 1.0, %v3118_v48  ;;  %vm3137_vm12 = vweird.f32 %v7527_v12  ;;  %5142 = vrcp.f32 %v7550_v59  ;;  %vm3169_vm13 = vmor %vm3167_vm2, %vm3168_vm9 }
 0x501   :  { %v3151_v15 = vadd.f32 %v5131_v42, %v3150_v52  ;;  %v5139_v19 = vpop.eup %5138  ;;  %vm3123_vm10 = vweird.f32 %v5135_v60  ;;  %vm3272_vm11 = vweird.f32 %v7529_v10  ;;  %v3278_v0 = vand.u32 2147483648, %v7529_v10 }
 0x502   :  { %v3166_v18 = vadd.f32 %v5133_v55, %v3165_v44  ;;  %v7569_v63 = vadd.f32 1.0, %v5137_v32  ;;  %v5141_v1 = vpop.eup %5140  ;;  %v3120_v25 = vmul.f32 %v5135_v60, %v3119_v5  ;;  %v3133_v53 = vmul.f32 %v5139_v19, %v7527_v12  ;;  %vm3124_vm0 = vmor %vm3122_vm5, %vm3123_vm10 }
 0x503   :  { %v3155_v29 = vsel %vm3154_vm8, %v5131_v42, %v3151_v15  ;;  %vm7575_vm14 = vcmp.eq.f32.partialorder %v3141_v62, 8.507059e+37  ;;  %v3144_v7 = vor.u32 1.1754944e-38, %v3143_v11  ;;  %v3268_v56 = vmul.f32 %v5141_v1, %v7529_v10  ;;  %v1856_v42 = vpop.f32.mrf.mxu0 }
 0x504   :  { %v3160_v20 = vsel %vm7536_vm3, %v3159_v40, %v3155_v29  ;;  %v3170_v50 = vsel %vm3169_vm13, %v5133_v55, %v3166_v18  ;;  %vm7582_vm15 = vcmp.eq.f32.partialorder %v3276_v13, 8.507059e+37  ;;  %v3121_v8 = vadd.f32 %v5135_v60, %v3120_v25  ;;  %v1921_v13 = vpop.f32.mrf.mxu1 }
 0x505   :  { %4423 = vst [vmem:[#allocation10 + $0x170] sm:$0xff] %v3160_v20  ;;  %v3175_v4 = vsel %vm7542_vm4, %v3174_v34, %v3170_v50  ;;  %v3134_v30 = vsub.f32 1.0, %v3133_v53  ;;  %v3291_v39 = vand.u32 2147483647, %v7550_v59  ;;  %v3269_v16 = vsub.f32 1.0, %v3268_v56 }
 0x506   :  { %4424 = vst [vmem:[#allocation10 + $0x178] sm:$0xff] %v3175_v4  ;;  %v3279_v35 = vor.u32 1.1754944e-38, %v3278_v0  ;;  %vm3287_vm1 = vweird.f32 %v7550_v59  ;;  %5144 = vrcp.f32 %v7569_v63  ;;  %v5143_v6 = vpop.eup %5142  ;;  %v3125_v24 = vsel %vm3124_vm0, %v5135_v60, %v3121_v8 }
 0x507   :  { %v3135_v51 = vmul.f32 %v5139_v19, %v3134_v30  ;;  %vm3138_vm2 = vweird.f32 %v5139_v19  ;;  %v3293_v14 = vand.u32 2147483648, %v7550_v59  ;;  %v3130_v36 = vsel %vm7555_vm7, %v3129_v21, %v3125_v24 }
 0x508   :  { %v3270_v41 = vmul.f32 %v5141_v1, %v3269_v16  ;;  %vm3273_vm3 = vweird.f32 %v5141_v1  ;;  %v3283_v54 = vmul.f32 %v5143_v6, %v7550_v59  ;;  %4421 = vst [vmem:[#allocation10 + $0x160] sm:$0xff] %v3130_v36  ;;  %vm3288_vm4 = vweird.f32 %v5143_v6  ;;  %vm3139_vm6 = vmor %vm3137_vm12, %vm3138_vm2  ;;  %v1726_v59 = vpop.f32.mrf.mxu2 }
 0x509   :  { %v3136_v23 = vadd.f32 %v5139_v19, %v3135_v51  ;;  %vm7598_vm5 = vcmp.eq.f32.partialorder %v3291_v39, 8.507059e+37  ;;  %5146 = vpow2.f32 %v4629_v61  ;;  %v1919_v40 = vadd.f32 %v1918_v2, %v7096_v38  ;;  %vm3274_vm7 = vmor %vm3272_vm11, %vm3273_vm3 }
 0x50a   :  { %v3271_v45 = vadd.f32 %v5141_v1, %v3270_v41  ;;  %v3284_v27 = vsub.f32 1.0, %v3283_v54  ;;  %5148 = vpow2.f32 %v7552_v58  ;;  %v1724_v31 = vadd.f32 %v1723_v17, %v7098_v47  ;;  %vm3289_vm9 = vmor %vm3287_vm1, %vm3288_vm4 }
 0x50b   :  { %v3140_v33 = vsel %vm3139_vm6, %v5139_v19, %v3136_v23  ;;  %v1789_v22 = vadd.f32 %v1788_v37, %v7113_v46  ;;  %v1857_v34 = vadd.f32 %v1856_v42, %v7074_v3  ;;  %v4639_v28 = vmul.f32 -1.442695, %v1919_v40 }
 0x50c   :  { %v5145_v43 = vpop.eup %5144  ;;  %v3145_v12 = vsel %vm7575_vm14, %v3144_v7, %v3140_v33  ;;  %v3275_v49 = vsel %vm3274_vm7, %v5141_v1, %v3271_v45  ;;  %v3285_v60 = vmul.f32 %v5143_v6, %v3284_v27  ;;  %v3294_v58 = vor.u32 1.1754944e-38, %v3293_v14 }
 0x50d   :  { %4422 = vst [vmem:[#allocation10 + $0x168] sm:$0xff] %v3145_v12  ;;  %v3280_v61 = vsel %vm7582_vm15, %v3279_v35, %v3275_v49  ;;  %v3238_v10 = vmul.f32 %v5145_v43, %v7569_v63  ;;  %v4636_v52 = vmul.f32 -1.442695, %v1724_v31  ;;  %5150 = vpow2.f32 %v4639_v28 }
 0x50e   :  { %4431 = vst [vmem:[#allocation10 + $0x1b0] sm:$0xff] %v3280_v61  ;;  %v3286_v48 = vadd.f32 %v5143_v6, %v3285_v60  ;;  %v4637_v9 = vmul.f32 -1.442695, %v1789_v22  ;;  %v4646_v62 = vmul.f32 -1.442695, %v1857_v34  ;;  %v3248_v21 = vand.u32 2147483648, %v7569_v63 }
 0x50f   :  { %v5147_v11 = vpop.eup %5146  ;;  %v3239_v32 = vsub.f32 1.0, %v3238_v10  ;;  %v3246_v44 = vand.u32 2147483647, %v7569_v63  ;;  %5152 = vpow2.f32 %v4636_v52  ;;  %vm3243_vm12 = vweird.f32 %v5145_v43 }
 0x510   :  { %v5149_v15 = vpop.eup %5148  ;;  %v3290_v5 = vsel %vm3289_vm9, %v5143_v6, %v3286_v48  ;;  %v7622_v19 = vadd.f32 1.0, %v5147_v11  ;;  %5154 = vpow2.f32 %v4637_v9  ;;  %v1922_v29 = vadd.f32 %v1921_v13, %v7096_v38 }
 0x511   :  { %v3295_v18 = vsel %vm7598_vm5, %v3294_v58, %v3290_v5  ;;  %v3240_v0 = vmul.f32 %v5145_v43, %v3239_v32  ;;  %v7626_v1 = vadd.f32 1.0, %v5149_v15  ;;  %5156 = vpow2.f32 %v4646_v62  ;;  %v1859_v15 = vpop.f32.mrf.mxu0 }
 0x512   :  { %4432 = vst [vmem:[#allocation10 + $0x1b8] sm:$0xff] %v3295_v18  ;;  %5158 = vrcp.f32 %v7622_v19  ;;  %vm3242_vm8 = vweird.f32 %v7569_v63  ;;  %vm3247_vm11 = vcmp.eq.f32.partialorder %v3246_v44, 8.507059e+37  ;;  %v3249_v57 = vor.u32 1.1754944e-38, %v3248_v21  ;;  %v1791_v63 = vpop.f32.mrf.mxu3 }
 0x513   :  { %v3241_v25 = vadd.f32 %v5145_v43, %v3240_v0  ;;  %5160 = vrcp.f32 %v7626_v1  ;;  %v5151_v53 = vpop.eup %5150  ;;  %vm3244_vm10 = vmor %vm3242_vm8, %vm3243_vm12  ;;  %v3261_v7 = vand.u32 2147483647, %v7622_v19  ;;  %v1727_v20 = vadd.f32 %v1726_v59, %v7098_v47 }
 0x514   :  { %v3263_v26 = vand.u32 2147483648, %v7622_v19  ;;  %v3396_v4 = vand.u32 2147483647, %v7626_v1  ;;  %v7637_v8 = vadd.f32 1.0, %v5151_v53  ;;  %v3398_v2 = vand.u32 2147483648, %v7626_v1 }
 0x515   :  { %v5153_v50 = vpop.eup %5152  ;;  %v3245_v56 = vsel %vm3244_vm10, %v5145_v43, %v3241_v25  ;;  %v4647_v35 = vmul.f32 -1.442695, %v1922_v29  ;;  %vm3257_vm13 = vweird.f32 %v7622_v19  ;;  %v4644_v51 = vmul.f32 -1.442695, %v1727_v20  ;;  %v1924_v29 = vpop.f32.mrf.mxu1 }
 0x516   :  { %v5155_v30 = vpop.eup %5154  ;;  %v3250_v39 = vsel %vm3247_vm11, %v3249_v57, %v3245_v56  ;;  %v7640_v16 = vadd.f32 1.0, %v5153_v50  ;;  %5162 = vrcp.f32 %v7637_v8  ;;  %v1792_v14 = vadd.f32 %v1791_v63, %v7113_v46 }
 0x517   :  { %v5157_v6 = vpop.eup %5156  ;;  %4429 = vst [vmem:[#allocation10 + $0x1a0] sm:$0xff] %v3250_v39  ;;  %vm7647_vm14 = vcmp.eq.f32.partialorder %v3261_v7, 8.507059e+37  ;;  %v3264_v54 = vor.u32 1.1754944e-38, %v3263_v26  ;;  %vm3392_vm15 = vweird.f32 %v7626_v1  ;;  %vm7653_vm0 = vcmp.eq.f32.partialorder %v3396_v4, 8.507059e+37 }
 0x518   :  { %v5159_v24 = vpop.eup %5158  ;;  %5164 = vrcp.f32 %v7640_v16  ;;  %v3399_v23 = vor.u32 1.1754944e-38, %v3398_v2  ;;  %v3411_v55 = vand.u32 2147483647, %v7637_v8  ;;  %v3413_v27 = vand.u32 2147483648, %v7637_v8 }
 0x519   :  { %v5161_v17 = vpop.eup %5160  ;;  %v3253_v36 = vmul.f32 %v5159_v24, %v7622_v19  ;;  %5166 = vpow2.f32 %v4647_v35  ;;  %v3366_v40 = vand.u32 2147483647, %v7640_v16  ;;  %v7660_v33 = vadd.f32 1.0, %v5155_v30 }
 0x51a   :  { %v3388_v37 = vmul.f32 %v5161_v17, %v7626_v1  ;;  %vm3407_vm1 = vweird.f32 %v7637_v8  ;;  %v3368_v22 = vand.u32 2147483648, %v7640_v16  ;;  %v7664_v34 = vadd.f32 1.0, %v5157_v6 }
 0x51b   :  { %v3254_v45 = vsub.f32 1.0, %v3253_v36  ;;  %5168 = vpow2.f32 %v4644_v51  ;;  %vm3258_vm2 = vweird.f32 %v5159_v24  ;;  %vm3362_vm3 = vweird.f32 %v7640_v16 }
 0x51c   :  { %v3389_v31 = vsub.f32 1.0, %v3388_v37  ;;  %v5163_v43 = vpop.eup %5162  ;;  %5170 = vrcp.f32 %v7660_v33  ;;  %vm3393_vm4 = vweird.f32 %v5161_v17  ;;  %vm7669_vm5 = vcmp.eq.f32.partialorder %v3411_v55, 8.507059e+37  ;;  %vm3259_vm7 = vmor %vm3257_vm13, %vm3258_vm2  ;;  %v1794_v55 = vpop.f32.mrf.mxu3 }
 0x51d   :  { %v3255_v12 = vmul.f32 %v5159_v24, %v3254_v45  ;;  %v3403_v28 = vmul.f32 %v5163_v43, %v7637_v8  ;;  %v3414_v10 = vor.u32 1.1754944e-38, %v3413_v27  ;;  %vm7674_vm6 = vcmp.eq.f32.partialorder %v3366_v40, 8.507059e+37  ;;  %vm3394_vm9 = vmor %vm3392_vm15, %vm3393_vm4  ;;  %v1729_v8 = vpop.f32.mrf.mxu2 }
 0x51e   :  { %v5165_v49 = vpop.eup %5164  ;;  %v3390_v60 = vmul.f32 %v5161_v17, %v3389_v31  ;;  %v3369_v32 = vor.u32 1.1754944e-38, %v3368_v22  ;;  %5172 = vrcp.f32 %v7664_v34  ;;  %vm3408_vm12 = vweird.f32 %v5163_v43 }
 0x51f   :  { %v3256_v58 = vadd.f32 %v5159_v24, %v3255_v12  ;;  %v3358_v52 = vmul.f32 %v5165_v49, %v7640_v16  ;;  %v5167_v9 = vpop.eup %5166  ;;  %v3404_v11 = vsub.f32 1.0, %v3403_v28  ;;  %v3381_v13 = vand.u32 2147483647, %v7660_v33  ;;  %vm3409_vm10 = vmor %vm3407_vm1, %vm3408_vm12 }
 0x520   :  { %v3391_v62 = vadd.f32 %v5161_v17, %v3390_v60  ;;  %v3383_v59 = vand.u32 2147483648, %v7660_v33  ;;  %vm3363_vm8 = vweird.f32 %v5165_v49  ;;  %v7689_v57 = vadd.f32 1.0, %v5167_v9 }
 0x521   :  { %v3260_v44 = vsel %vm3259_vm7, %v5159_v24, %v3256_v58  ;;  %v3359_v21 = vsub.f32 1.0, %v3358_v52  ;;  %v5169_v5 = vpop.eup %5168  ;;  %v3405_v0 = vmul.f32 %v5163_v43, %v3404_v11  ;;  %v4645_v50 = vmul.f32 -1.442695, %v1792_v14  ;;  %vm3364_vm13 = vmor %vm3362_vm3, %vm3363_vm8  ;;  %v1862_v52 = vpop.f32.mrf.mxu0 }
 0x522   :  { %v3265_v18 = vsel %vm7647_vm14, %v3264_v54, %v3260_v44  ;;  %v3395_v19 = vsel %vm3394_vm9, %v5161_v17, %v3391_v62  ;;  %v5171_v25 = vpop.eup %5170  ;;  %v1860_v56 = vadd.f32 %v1859_v15, %v7074_v3  ;;  %vm3377_vm11 = vweird.f32 %v7660_v33 }
 0x523   :  { %4430 = vst [vmem:[#allocation10 + $0x1a8] sm:$0xff] %v3265_v18  ;;  %v3400_v1 = vsel %vm7653_vm0, %v3399_v23, %v3395_v19  ;;  %v3360_v53 = vmul.f32 %v5165_v49, %v3359_v21  ;;  %v3406_v7 = vadd.f32 %v5163_v43, %v3405_v0  ;;  %v3373_v20 = vmul.f32 %v5171_v25, %v7660_v33  ;;  %v1927_v21 = vpop.f32.mrf.mxu1 }
 0x524   :  { %4439 = vst [vmem:[#allocation10 + $0x1f0] sm:$0xff] %v3400_v1  ;;  %5174 = vrcp.f32 %v7689_v57  ;;  %v1925_v4 = vadd.f32 %v1924_v29, %v7096_v38  ;;  %v5173_v63 = vpop.eup %5172  ;;  %vm7701_vm14 = vcmp.eq.f32.partialorder %v3381_v13, 8.507059e+37  ;;  %v7705_v35 = vadd.f32 1.0, %v5169_v5 }
 0x525   :  { %v3361_v26 = vadd.f32 %v5165_v49, %v3360_v53  ;;  %v3410_v30 = vsel %vm3409_vm10, %v5163_v43, %v3406_v7  ;;  %v3374_v39 = vsub.f32 1.0, %v3373_v20  ;;  %v3384_v51 = vor.u32 1.1754944e-38, %v3383_v59  ;;  %v1732_v13 = vpop.f32.mrf.mxu2 }
 0x526   :  { %v3415_v6 = vsel %vm7669_vm5, %v3414_v10, %v3410_v30  ;;  %v3508_v14 = vmul.f32 %v5173_v63, %v7664_v34  ;;  %vm3378_vm15 = vweird.f32 %v5171_v25  ;;  %v3516_v36 = vand.u32 2147483647, %v7664_v34 }
 0x527   :  { %v3365_v24 = vsel %vm3364_vm13, %v5165_v49, %v3361_v26  ;;  %4440 = vst [vmem:[#allocation10 + $0x1f8] sm:$0xff] %v3415_v6  ;;  %v3375_v17 = vmul.f32 %v5171_v25, %v3374_v39  ;;  %vm3512_vm0 = vweird.f32 %v7664_v34  ;;  %v3518_v54 = vand.u32 2147483648, %v7664_v34  ;;  %vm3379_vm1 = vmor %vm3377_vm11, %vm3378_vm15 }
 0x528   :  { %v3370_v16 = vsel %vm7674_vm6, %v3369_v32, %v3365_v24  ;;  %v3509_v41 = vsub.f32 1.0, %v3508_v14  ;;  %5176 = vrcp.f32 %v7705_v35  ;;  %v3531_v42 = vand.u32 2147483647, %v7689_v57 }
 0x529   :  { %4437 = vst [vmem:[#allocation10 + $0x1e0] sm:$0xff] %v3370_v16  ;;  %v3376_v37 = vadd.f32 %v5171_v25, %v3375_v17  ;;  %5178 = vpow2.f32 %v4645_v50  ;;  %v4654_v23 = vmul.f32 -1.442695, %v1860_v56  ;;  %vm3513_vm2 = vweird.f32 %v5173_v63 }
 0x52a   :  { %v5175_v45 = vpop.eup %5174  ;;  %v3510_v27 = vmul.f32 %v5173_v63, %v3509_v41  ;;  %v4655_v40 = vmul.f32 -1.442695, %v1925_v4  ;;  %v1730_v31 = vadd.f32 %v1729_v8, %v7098_v47  ;;  %vm7720_vm3 = vcmp.eq.f32.partialorder %v3516_v36, 8.507059e+37  ;;  %vm3514_vm4 = vmor %vm3512_vm0, %vm3513_vm2  ;;  %v1797_v4 = vpop.f32.mrf.mxu3 }
 0x52b   :  { %v3380_v22 = vsel %vm3379_vm1, %v5171_v25, %v3376_v37  ;;  %v3523_v12 = vmul.f32 %v5175_v45, %v7689_v57  ;;  %v3533_v49 = vand.u32 2147483648, %v7689_v57  ;;  %5180 = vpow2.f32 %v4654_v23 }
 0x52c   :  { %v3385_v60 = vsel %vm7701_vm14, %v3384_v51, %v3380_v22  ;;  %v3511_v28 = vadd.f32 %v5173_v63, %v3510_v27  ;;  %v4652_v33 = vmul.f32 -1.442695, %v1730_v31  ;;  %v3519_v61 = vor.u32 1.1754944e-38, %v3518_v54 }
 0x52d   :  { %4438 = vst [vmem:[#allocation10 + $0x1e8] sm:$0xff] %v3385_v60  ;;  %v3524_v58 = vsub.f32 1.0, %v3523_v12  ;;  %5182 = vpow2.f32 %v4655_v40  ;;  %v1795_v10 = vadd.f32 %v1794_v55, %v7113_v46  ;;  %vm3527_vm5 = vweird.f32 %v7689_v57 }
 0x52e   :  { %v5177_v48 = vpop.eup %5176  ;;  %v3515_v9 = vsel %vm3514_vm4, %v5173_v63, %v3511_v28  ;;  %vm7732_vm6 = vcmp.eq.f32.partialorder %v3531_v42, 8.507059e+37  ;;  %5184 = vpow2.f32 %v4652_v33  ;;  %vm3528_vm7 = vweird.f32 %v5175_v45 }
 0x52f   :  { %v5179_v11 = vpop.eup %5178  ;;  %v3520_v34 = vsel %vm7720_vm3, %v3519_v61, %v3515_v9  ;;  %v3525_v32 = vmul.f32 %v5175_v45, %v3524_v58  ;;  %v3478_v44 = vmul.f32 %v5177_v48, %v7705_v35  ;;  %v3534_v15 = vor.u32 1.1754944e-38, %v3533_v49  ;;  %vm3529_vm9 = vmor %vm3527_vm5, %vm3528_vm7 }
 0x530   :  { %4447 = vst [vmem:[#allocation10 + $0x230] sm:$0xff] %v3520_v34  ;;  %v7739_v5 = vadd.f32 1.0, %v5179_v11  ;;  %v4653_v18 = vmul.f32 -1.442695, %v1795_v10  ;;  %v1863_v19 = vadd.f32 %v1862_v52, %v7074_v3  ;;  %v3486_v29 = vand.u32 2147483647, %v7705_v35  ;;  %v1865_v52 = vpop.f32.mrf.mxu0 }
 0x531   :  { %v3526_v0 = vadd.f32 %v5175_v45, %v3525_v32  ;;  %v3479_v59 = vsub.f32 1.0, %v3478_v44  ;;  %v3488_v25 = vand.u32 2147483648, %v7705_v35  ;;  %v5181_v1 = vpop.eup %5180  ;;  %vm3483_vm12 = vweird.f32 %v5177_v48 }
 0x532   :  { %5186 = vrcp.f32 %v7739_v5  ;;  %v1928_v53 = vadd.f32 %v1927_v21, %v7096_v38  ;;  %v1733_v7 = vadd.f32 %v1732_v13, %v7098_v47  ;;  %v7749_v26 = vadd.f32 1.0, %v5181_v1 }
 0x533   :  { %v5183_v20 = vpop.eup %5182  ;;  %v3530_v50 = vsel %vm3529_vm9, %v5175_v45, %v3526_v0  ;;  %v3480_v56 = vmul.f32 %v5177_v48, %v3479_v59  ;;  %5188 = vpow2.f32 %v4653_v18  ;;  %vm3482_vm8 = vweird.f32 %v7705_v35 }
 0x534   :  { %v5185_v63 = vpop.eup %5184  ;;  %v3535_v30 = vsel %vm7732_vm6, %v3534_v15, %v3530_v50  ;;  %v7754_v57 = vadd.f32 1.0, %v5183_v20  ;;  %v4662_v39 = vmul.f32 -1.442695, %v1863_v19  ;;  %vm3487_vm10 = vcmp.eq.f32.partialorder %v3486_v29, 8.507059e+37  ;;  %vm3484_vm11 = vmor %vm3482_vm8, %vm3483_vm12 }
 0x535   :  { %4448 = vst [vmem:[#allocation10 + $0x238] sm:$0xff] %v3535_v30  ;;  %v3481_v2 = vadd.f32 %v5177_v48, %v3480_v56  ;;  %v3489_v8 = vor.u32 1.1754944e-38, %v3488_v25  ;;  %5190 = vrcp.f32 %v7749_v26  ;;  %v3501_v6 = vand.u32 2147483647, %v7739_v5 }
 0x536   :  { %v3503_v24 = vand.u32 2147483648, %v7739_v5  ;;  %5192 = vrcp.f32 %v7754_v57  ;;  %v1798_v51 = vadd.f32 %v1797_v4, %v7113_v46  ;;  %v7762_v14 = vadd.f32 1.0, %v5185_v63  ;;  %v1930_v63 = vpop.f32.mrf.mxu1 }
 0x537   :  { %v3485_v35 = vsel %vm3484_vm11, %v5177_v48, %v3481_v2  ;;  %v4663_v16 = vmul.f32 -1.442695, %v1928_v53  ;;  %v4660_v17 = vmul.f32 -1.442695, %v1733_v7  ;;  %v3636_v54 = vand.u32 2147483647, %v7749_v26 }
 0x538   :  { %v5187_v36 = vpop.eup %5186  ;;  %v3490_v41 = vsel %vm3487_vm10, %v3489_v8, %v3485_v35  ;;  %v3638_v37 = vand.u32 2147483648, %v7749_v26  ;;  %5194 = vpow2.f32 %v4662_v39  ;;  %v3651_v55 = vand.u32 2147483647, %v7754_v57 }
 0x539   :  { %v5189_v42 = vpop.eup %5188  ;;  %4445 = vst [vmem:[#allocation10 + $0x220] sm:$0xff] %v3490_v41  ;;  %v3493_v23 = vmul.f32 %v5187_v36, %v7739_v5  ;;  %v3653_v45 = vand.u32 2147483648, %v7754_v57  ;;  %5196 = vrcp.f32 %v7762_v14  ;;  %vm3497_vm13 = vweird.f32 %v7739_v5 }
 0x53a   :  { %vm7771_vm14 = vcmp.eq.f32.partialorder %v3501_v6, 8.507059e+37  ;;  %v3504_v40 = vor.u32 1.1754944e-38, %v3503_v24  ;;  %v7775_v31 = vadd.f32 1.0, %v5189_v42  ;;  %vm3632_vm15 = vweird.f32 %v7749_v26 }
 0x53b   :  { %v5191_v22 = vpop.eup %5190  ;;  %v3494_v43 = vsub.f32 1.0, %v3493_v23  ;;  %vm3647_vm0 = vweird.f32 %v7754_v57  ;;  %5198 = vpow2.f32 %v4663_v16  ;;  %vm3498_vm1 = vweird.f32 %v5187_v36 }
 0x53c   :  { %v5193_v12 = vpop.eup %5192  ;;  %v3628_v49 = vmul.f32 %v5191_v22, %v7749_v26  ;;  %vm7783_vm2 = vcmp.eq.f32.partialorder %v3636_v54, 8.507059e+37  ;;  %v3639_v28 = vor.u32 1.1754944e-38, %v3638_v37  ;;  %vm7791_vm3 = vcmp.eq.f32.partialorder %v3651_v55, 8.507059e+37  ;;  %vm3499_vm5 = vmor %vm3497_vm13, %vm3498_vm1 }
 0x53d   :  { %v3495_v33 = vmul.f32 %v5187_v36, %v3494_v43  ;;  %v3643_v61 = vmul.f32 %v5193_v12, %v7754_v57  ;;  %v3654_v10 = vor.u32 1.1754944e-38, %v3653_v45  ;;  %5200 = vrcp.f32 %v7775_v31 }
 0x53e   :  { %v5195_v48 = vpop.eup %5194  ;;  %v3629_v9 = vsub.f32 1.0, %v3628_v49  ;;  %vm3602_vm4 = vweird.f32 %v7762_v14  ;;  %v3606_v62 = vand.u32 2147483647, %v7762_v14  ;;  %v3608_v11 = vand.u32 2147483648, %v7762_v14 }
 0x53f   :  { %v7799_v34 = vmul.f32 -1.442695, %v1798_v51  ;;  %v5197_v32 = vpop.eup %5196  ;;  %v3496_v44 = vadd.f32 %v5187_v36, %v3495_v33  ;;  %v3644_v21 = vsub.f32 1.0, %v3643_v61  ;;  %v7801_v13 = vadd.f32 1.0, %v5195_v48 }
 0x540   :  { %5202 = vpow2.f32 %v4660_v17  ;;  %v3630_v15 = vmul.f32 %v5191_v22, %v3629_v9  ;;  %vm3633_vm6 = vweird.f32 %v5191_v22  ;;  %v3598_v18 = vmul.f32 %v5197_v32, %v7762_v14  ;;  %v1735_v14 = vpop.f32.mrf.mxu2 }
 0x541   :  { %v1866_v19 = vadd.f32 %v1865_v52, %v7074_v3  ;;  %v5199_v0 = vpop.eup %5198  ;;  %v3500_v59 = vsel %vm3499_vm5, %v5187_v36, %v3496_v44  ;;  %v3645_v29 = vmul.f32 %v5193_v12, %v3644_v21  ;;  %vm3648_vm7 = vweird.f32 %v5193_v12  ;;  %vm3634_vm12 = vmor %vm3632_vm15, %vm3633_vm6  ;;  %v1868_v52 = vpop.f32.mrf.mxu0 }
 0x542   :  { %5204 = vrcp.f32 %v7801_v13  ;;  %v3505_v25 = vsel %vm7771_vm14, %v3504_v40, %v3500_v59  ;;  %v3631_v1 = vadd.f32 %v5191_v22, %v3630_v15  ;;  %v3599_v53 = vsub.f32 1.0, %v3598_v18  ;;  %vm3649_vm8 = vmor %vm3647_vm0, %vm3648_vm7 }
 0x543   :  { %vm7811_vm9 = vcmp.eq.f32.partialorder %v3606_v62, 8.507059e+37  ;;  %v5201_v7 = vpop.eup %5200  ;;  %4446 = vst [vmem:[#allocation10 + $0x228] sm:$0xff] %v3505_v25  ;;  %v3646_v20 = vadd.f32 %v5193_v12, %v3645_v29  ;;  %v3621_v50 = vand.u32 2147483647, %v7775_v31  ;;  %v3623_v56 = vand.u32 2147483648, %v7775_v31 }
 0x544   :  { %v7819_v4 = vadd.f32 1.0, %v5199_v0  ;;  %v3635_v30 = vsel %vm3634_vm12, %v5191_v22, %v3631_v1  ;;  %v3600_v39 = vmul.f32 %v5197_v32, %v3599_v53  ;;  %vm3603_vm10 = vweird.f32 %v5197_v32 }
 0x545   :  { %v3613_v2 = vmul.f32 %v5201_v7, %v7775_v31  ;;  %v3640_v26 = vsel %vm7783_vm2, %v3639_v28, %v3635_v30  ;;  %v3650_v6 = vsel %vm3649_vm8, %v5193_v12, %v3646_v20  ;;  %v3756_v24 = vand.u32 2147483647, %v7801_v13  ;;  %vm3604_vm11 = vmor %vm3602_vm4, %vm3603_vm10 }
 0x546   :  { %v5203_v8 = vpop.eup %5202  ;;  %v3758_v51 = vand.u32 2147483648, %v7801_v13  ;;  %4455 = vst [vmem:[#allocation10 + $0x270] sm:$0xff] %v3640_v26  ;;  %v3655_v35 = vsel %vm7791_vm3, %v3654_v10, %v3650_v6  ;;  %v3601_v16 = vadd.f32 %v5197_v32, %v3600_v39  ;;  %5206 = vrcp.f32 %v7819_v4  ;;  %v1800_v10 = vpop.f32.mrf.mxu3 }
 0x547   :  { %v3614_v57 = vsub.f32 1.0, %v3613_v2  ;;  %4456 = vst [vmem:[#allocation10 + $0x278] sm:$0xff] %v3655_v35  ;;  %v3609_v36 = vor.u32 1.1754944e-38, %v3608_v11  ;;  %vm3617_vm13 = vweird.f32 %v7775_v31  ;;  %vm7835_vm14 = vcmp.eq.f32.partialorder %v3621_v50, 8.507059e+37  ;;  %v1933_v11 = vpop.f32.mrf.mxu1 }
 0x548   :  { %v5205_v17 = vpop.eup %5204  ;;  %v7839_v54 = vadd.f32 1.0, %v5203_v8  ;;  %v3605_v37 = vsel %vm3604_vm11, %v5197_v32, %v3601_v16  ;;  %vm3618_vm15 = vweird.f32 %v5201_v7  ;;  %v3624_v45 = vor.u32 1.1754944e-38, %v3623_v56  ;;  %v1738_v2 = vpop.f32.mrf.mxu2 }
 0x549   :  { %v3615_v42 = vmul.f32 %v5201_v7, %v3614_v57  ;;  %v3748_v23 = vmul.f32 %v5205_v17, %v7801_v13  ;;  %v3610_v55 = vsel %vm7811_vm9, %v3609_v36, %v3605_v37  ;;  %vm3752_vm0 = vweird.f32 %v7801_v13  ;;  %vm3619_vm2 = vmor %vm3617_vm13, %vm3618_vm15 }
 0x54a   :  { %5208 = vrcp.f32 %v7839_v54  ;;  %4453 = vst [vmem:[#allocation10 + $0x260] sm:$0xff] %v3610_v55  ;;  %vm7846_vm1 = vcmp.eq.f32.partialorder %v3756_v24, 8.507059e+37  ;;  %v3759_v43 = vor.u32 1.1754944e-38, %v3758_v51  ;;  %v3771_v12 = vand.u32 2147483647, %v7819_v4 }
 0x54b   :  { %v3616_v27 = vadd.f32 %v5201_v7, %v3615_v42  ;;  %v3749_v40 = vsub.f32 1.0, %v3748_v23  ;;  %5210 = vpow2.f32 %v7799_v34  ;;  %v4670_v49 = vmul.f32 -1.442695, %v1866_v19 }
 0x54c   :  { %v1931_v60 = vadd.f32 %v1930_v63, %v7096_v38  ;;  %v5207_v28 = vpop.eup %5206  ;;  %vm3753_vm3 = vweird.f32 %v5205_v17  ;;  %v1736_v58 = vadd.f32 %v1735_v14, %v7098_v47  ;;  %v3773_v9 = vand.u32 2147483648, %v7819_v4 }
 0x54d   :  { %v3620_v33 = vsel %vm3619_vm2, %v5201_v7, %v3616_v27  ;;  %v3750_v61 = vmul.f32 %v5205_v17, %v3749_v40  ;;  %v3763_v31 = vmul.f32 %v5207_v28, %v7819_v4  ;;  %v3726_v62 = vand.u32 2147483647, %v7839_v54  ;;  %vm3754_vm4 = vmor %vm3752_vm0, %vm3753_vm3 }
 0x54e   :  { %v3625_v48 = vsel %vm7835_vm14, %v3624_v45, %v3620_v33  ;;  %5212 = vpow2.f32 %v4670_v49  ;;  %v4671_v32 = vmul.f32 -1.442695, %v1931_v60  ;;  %v4668_v44 = vmul.f32 -1.442695, %v1736_v58  ;;  %v1803_v36 = vpop.f32.mrf.mxu3 }
 0x54f   :  { %4454 = vst [vmem:[#allocation10 + $0x268] sm:$0xff] %v3625_v48  ;;  %v3751_v34 = vadd.f32 %v5205_v17, %v3750_v61  ;;  %v3764_v15 = vsub.f32 1.0, %v3763_v31  ;;  %vm3768_vm5 = vweird.f32 %v5207_v28  ;;  %v1801_v18 = vadd.f32 %v1800_v10, %v7113_v46 }
 0x550   :  { %v5209_v21 = vpop.eup %5208  ;;  %v1869_v19 = vadd.f32 %v1868_v52, %v7074_v3  ;;  %5214 = vpow2.f32 %v4671_v32  ;;  %v1934_v29 = vadd.f32 %v1933_v11, %v7096_v38  ;;  %vm3767_vm6 = vweird.f32 %v7819_v4 }
 0x551   :  { %v3755_v0 = vsel %vm3754_vm4, %v5205_v17, %v3751_v34  ;;  %v3718_v59 = vmul.f32 %v5209_v21, %v7839_v54  ;;  %v5211_v25 = vpop.eup %5210  ;;  %v3765_v53 = vmul.f32 %v5207_v28, %v3764_v15  ;;  %5216 = vpow2.f32 %v4668_v44  ;;  %vm3769_vm9 = vmor %vm3767_vm6, %vm3768_vm5 }
 0x552   :  { %v3760_v1 = vsel %vm7846_vm1, %v3759_v43, %v3755_v0  ;;  %v4669_v13 = vmul.f32 -1.442695, %v1801_v18  ;;  %v7871_v7 = vadd.f32 1.0, %v5211_v25  ;;  %v4678_v20 = vmul.f32 -1.442695, %v1869_v19 }
 0x553   :  { %4463 = vst [vmem:[#allocation10 + $0x2b0] sm:$0xff] %v3760_v1  ;;  %v3719_v5 = vsub.f32 1.0, %v3718_v59  ;;  %v3766_v50 = vadd.f32 %v5207_v28, %v3765_v53  ;;  %vm3772_vm7 = vcmp.eq.f32.partialorder %v3771_v12, 8.507059e+37  ;;  %v3728_v56 = vand.u32 2147483648, %v7839_v54 }
 0x554   :  { %5218 = vpow2.f32 %v4669_v13  ;;  %v5213_v63 = vpop.eup %5212  ;;  %v3774_v30 = vor.u32 1.1754944e-38, %v3773_v9  ;;  %vm3723_vm12 = vweird.f32 %v5209_v21  ;;  %v4679_v26 = vmul.f32 -1.442695, %v1934_v29 }
 0x555   :  { %v3720_v39 = vmul.f32 %v5209_v21, %v3719_v5  ;;  %5220 = vrcp.f32 %v7871_v7  ;;  %v3770_v8 = vsel %vm3769_vm9, %v5207_v28, %v3766_v50  ;;  %v7876_v4 = vadd.f32 1.0, %v5213_v63  ;;  %v1871_v50 = vpop.f32.mrf.mxu0 }
 0x556   :  { %5222 = vpow2.f32 %v4678_v20  ;;  %v5215_v6 = vpop.eup %5214  ;;  %v3775_v24 = vsel %vm3772_vm7, %v3774_v30, %v3770_v8  ;;  %vm3722_vm8 = vweird.f32 %v7839_v54  ;;  %vm3727_vm10 = vcmp.eq.f32.partialorder %v3726_v62, 8.507059e+37 }
 0x557   :  { %v3721_v51 = vadd.f32 %v5209_v21, %v3720_v39  ;;  %v5217_v35 = vpop.eup %5216  ;;  %4464 = vst [vmem:[#allocation10 + $0x2b8] sm:$0xff] %v3775_v24  ;;  %vm3724_vm11 = vmor %vm3722_vm8, %vm3723_vm12  ;;  %v3729_v16 = vor.u32 1.1754944e-38, %v3728_v56  ;;  %v3741_v57 = vand.u32 2147483647, %v7871_v7  ;;  %5224 = vrcp.f32 %v7876_v4 }
 0x558   :  { %v1739_v17 = vadd.f32 %v1738_v2, %v7098_v47  ;;  %v3743_v37 = vand.u32 2147483648, %v7871_v7  ;;  %v7883_v42 = vadd.f32 1.0, %v5215_v6  ;;  %v7885_v23 = vadd.f32 1.0, %v5217_v35 }
 0x559   :  { %v3725_v41 = vsel %vm3724_vm11, %v5209_v21, %v3721_v51  ;;  %5226 = vpow2.f32 %v4679_v26  ;;  %v3876_v14 = vand.u32 2147483647, %v7876_v4  ;;  %v1804_v27 = vadd.f32 %v1803_v36, %v7113_v46 }
 0x55a   :  { %v5219_v54 = vpop.eup %5218  ;;  %v3730_v55 = vsel %vm3727_vm10, %v3729_v16, %v3725_v41  ;;  %5228 = vrcp.f32 %v7883_v42  ;;  %vm3737_vm13 = vweird.f32 %v7871_v7  ;;  %vm7892_vm14 = vcmp.eq.f32.partialorder %v3741_v57, 8.507059e+37 }
 0x55b   :  { %v5221_v45 = vpop.eup %5220  ;;  %4461 = vst [vmem:[#allocation10 + $0x2a0] sm:$0xff] %v3730_v55  ;;  %5230 = vrcp.f32 %v7885_v23  ;;  %v3744_v12 = vor.u32 1.1754944e-38, %v3743_v37  ;;  %vm3872_vm15 = vweird.f32 %v7876_v4  ;;  %v3878_v49 = vand.u32 2147483648, %v7876_v4 }
 0x55c   :  { %v5223_v40 = vpop.eup %5222  ;;  %v3733_v22 = vmul.f32 %v5221_v45, %v7871_v7  ;;  %v4676_v60 = vmul.f32 -1.442695, %v1739_v17  ;;  %v3891_v61 = vand.u32 2147483647, %v7883_v42  ;;  %v7900_v58 = vadd.f32 1.0, %v5219_v54  ;;  %v1936_v17 = vpop.f32.mrf.mxu1 }
 0x55d   :  { %v5225_v28 = vpop.eup %5224  ;;  %v7902_v10 = vadd.f32 1.0, %v5223_v40  ;;  %vm3738_vm0 = vweird.f32 %v5221_v45  ;;  %vm7905_vm1 = vcmp.eq.f32.partialorder %v3876_v14, 8.507059e+37  ;;  %v3893_v31 = vand.u32 2147483648, %v7883_v42 }
 0x55e   :  { %v3734_v33 = vsub.f32 1.0, %v3733_v22  ;;  %v3868_v52 = vmul.f32 %v5225_v28, %v7876_v4  ;;  %v4677_v9 = vmul.f32 -1.442695, %v1804_v27  ;;  %v3846_v34 = vand.u32 2147483647, %v7885_v23  ;;  %vm3739_vm5 = vmor %vm3737_vm13, %vm3738_vm0 }
 0x55f   :  { %v5227_v62 = vpop.eup %5226  ;;  %v3848_v32 = vand.u32 2147483648, %v7885_v23  ;;  %5232 = vrcp.f32 %v7900_v58  ;;  %v3879_v15 = vor.u32 1.1754944e-38, %v3878_v49  ;;  %vm3887_vm2 = vweird.f32 %v7883_v42 }
 0x560   :  { %v3735_v11 = vmul.f32 %v5221_v45, %v3734_v33  ;;  %v5229_v44 = vpop.eup %5228  ;;  %v3869_v21 = vsub.f32 1.0, %v3868_v52  ;;  %5234 = vrcp.f32 %v7902_v10  ;;  %vm7916_vm3 = vcmp.eq.f32.partialorder %v3891_v61, 8.507059e+37  ;;  %v1806_v33 = vpop.f32.mrf.mxu3 }
 0x561   :  { %v5231_v18 = vpop.eup %5230  ;;  %v3883_v0 = vmul.f32 %v5229_v44, %v7883_v42  ;;  %vm3842_vm4 = vweird.f32 %v7885_v23  ;;  %vm3873_vm6 = vweird.f32 %v5225_v28  ;;  %v3894_v25 = vor.u32 1.1754944e-38, %v3893_v31  ;;  %v1874_v31 = vpop.f32.mrf.mxu0 }
 0x562   :  { %v3736_v19 = vadd.f32 %v5221_v45, %v3735_v11  ;;  %v3870_v29 = vmul.f32 %v5225_v28, %v3869_v21  ;;  %v3838_v1 = vmul.f32 %v5231_v18, %v7885_v23  ;;  %vm7925_vm7 = vcmp.eq.f32.partialorder %v3846_v34, 8.507059e+37  ;;  %vm3874_vm12 = vmor %vm3872_vm15, %vm3873_vm6  ;;  %v1741_v23 = vpop.f32.mrf.mxu2 }
 0x563   :  { %v3884_v13 = vsub.f32 1.0, %v3883_v0  ;;  %v3849_v20 = vor.u32 1.1754944e-38, %v3848_v32  ;;  %vm3857_vm9 = vweird.f32 %v7900_v58  ;;  %v7932_v7 = vadd.f32 1.0, %v5227_v62 }
 0x564   :  { %v3740_v53 = vsel %vm3739_vm5, %v5221_v45, %v3736_v19  ;;  %v3871_v63 = vadd.f32 %v5225_v28, %v3870_v29  ;;  %v3839_v30 = vsub.f32 1.0, %v3838_v1  ;;  %vm3888_vm8 = vweird.f32 %v5229_v44  ;;  %v1939_v1 = vpop.f32.mrf.mxu1 }
 0x565   :  { %v3745_v56 = vsel %vm7892_vm14, %v3744_v12, %v3740_v53  ;;  %v5233_v39 = vpop.eup %5232  ;;  %v3885_v2 = vmul.f32 %v5229_v44, %v3884_v13  ;;  %v3861_v8 = vand.u32 2147483647, %v7900_v58  ;;  %5236 = vpow2.f32 %v4676_v60  ;;  %vm3889_vm11 = vmor %vm3887_vm2, %vm3888_vm8 }
 0x566   :  { %4462 = vst [vmem:[#allocation10 + $0x2a8] sm:$0xff] %v3745_v56  ;;  %v5235_v26 = vpop.eup %5234  ;;  %v3875_v6 = vsel %vm3874_vm12, %v5225_v28, %v3871_v63  ;;  %v3840_v24 = vmul.f32 %v5231_v18, %v3839_v30  ;;  %vm3843_vm10 = vweird.f32 %v5231_v18  ;;  %v3853_v51 = vmul.f32 %v5233_v39, %v7900_v58 }
 0x567   :  { %v3880_v35 = vsel %vm7905_vm1, %v3879_v15, %v3875_v6  ;;  %v3886_v16 = vadd.f32 %v5229_v44, %v3885_v2  ;;  %v3863_v57 = vand.u32 2147483648, %v7900_v58  ;;  %v3988_v4 = vmul.f32 %v5235_v26, %v7902_v10  ;;  %vm3844_vm13 = vmor %vm3842_vm4, %vm3843_vm10 }
 0x568   :  { %4471 = vst [vmem:[#allocation10 + $0x2f0] sm:$0xff] %v3880_v35  ;;  %v3841_v36 = vadd.f32 %v5231_v18, %v3840_v24  ;;  %v3854_v41 = vsub.f32 1.0, %v3853_v51  ;;  %v3996_v37 = vand.u32 2147483647, %v7902_v10  ;;  %5238 = vrcp.f32 %v7932_v7  ;;  %v1809_v24 = vpop.f32.mrf.mxu3 }
 0x569   :  { %v3890_v54 = vsel %vm3889_vm11, %v5229_v44, %v3886_v16  ;;  %vm3858_vm14 = vweird.f32 %v5233_v39  ;;  %v3989_v55 = vsub.f32 1.0, %v3988_v4  ;;  %v3998_v45 = vand.u32 2147483648, %v7902_v10 }
 0x56a   :  { %v3895_v14 = vsel %vm7916_vm3, %v3894_v25, %v3890_v54  ;;  %v3845_v27 = vsel %vm3844_vm13, %v5231_v18, %v3841_v36  ;;  %v3855_v42 = vmul.f32 %v5233_v39, %v3854_v41  ;;  %5240 = vpow2.f32 %v4677_v9  ;;  %vm3859_vm2 = vmor %vm3857_vm9, %vm3858_vm14  ;;  %v1744_v2 = vpop.f32.mrf.mxu2 }
 0x56b   :  { %v5237_v40 = vpop.eup %5236  ;;  %4472 = vst [vmem:[#allocation10 + $0x2f8] sm:$0xff] %v3895_v14  ;;  %v3850_v22 = vsel %vm7925_vm7, %v3849_v20, %v3845_v27  ;;  %v3990_v43 = vmul.f32 %v5235_v26, %v3989_v55  ;;  %vm3992_vm15 = vweird.f32 %v7902_v10  ;;  %vm3993_vm0 = vweird.f32 %v5235_v26 }
 0x56c   :  { %4469 = vst [vmem:[#allocation10 + $0x2e0] sm:$0xff] %v3850_v22  ;;  %v3856_v12 = vadd.f32 %v5233_v39, %v3855_v42  ;;  %vm7955_vm1 = vcmp.eq.f32.partialorder %v3861_v8, 8.507059e+37  ;;  %v7959_v60 = vadd.f32 1.0, %v5237_v40  ;;  %v1872_v28 = vadd.f32 %v1871_v50, %v7074_v3  ;;  %vm3994_vm4 = vmor %vm3992_vm15, %vm3993_vm0 }
 0x56d   :  { %v3864_v61 = vor.u32 1.1754944e-38, %v3863_v57  ;;  %v3991_v52 = vadd.f32 %v5235_v26, %v3990_v43  ;;  %vm3997_vm3 = vcmp.eq.f32.partialorder %v3996_v37, 8.507059e+37  ;;  %v1937_v48 = vadd.f32 %v1936_v17, %v7096_v38  ;;  %v1877_v17 = vpop.f32.mrf.mxu0 }
 0x56e   :  { %v5239_v9 = vpop.eup %5238  ;;  %v3860_v62 = vsel %vm3859_vm2, %v5233_v39, %v3856_v12  ;;  %v3999_v11 = vor.u32 1.1754944e-38, %v3998_v45  ;;  %5242 = vrcp.f32 %v7959_v60  ;;  %v1742_v34 = vadd.f32 %v1741_v23, %v7098_v47 }
 0x56f   :  { %v3865_v58 = vsel %vm7955_vm1, %v3864_v61, %v3860_v62  ;;  %v3995_v32 = vsel %vm3994_vm4, %v5235_v26, %v3991_v52  ;;  %v4003_v44 = vmul.f32 %v5239_v9, %v7932_v7  ;;  %v1807_v21 = vadd.f32 %v1806_v33, %v7113_v46 }
 0x570   :  { %v5241_v15 = vpop.eup %5240  ;;  %4470 = vst [vmem:[#allocation10 + $0x2e8] sm:$0xff] %v3865_v58  ;;  %v4000_v18 = vsel %vm3997_vm3, %v3999_v11, %v3995_v32  ;;  %v4011_v19 = vand.u32 2147483647, %v7932_v7  ;;  %v4686_v10 = vmul.f32 -1.442695, %v1872_v28  ;;  %v1875_v0 = vadd.f32 %v1874_v31, %v7074_v3  ;;  %v1942_v31 = vpop.f32.mrf.mxu1 }
 0x571   :  { %4479 = vst [vmem:[#allocation10 + $0x330] sm:$0xff] %v4000_v18  ;;  %v4004_v59 = vsub.f32 1.0, %v4003_v44  ;;  %v7977_v29 = vadd.f32 1.0, %v5241_v15  ;;  %v4687_v25 = vmul.f32 -1.442695, %v1937_v48  ;;  %v4013_v53 = vand.u32 2147483648, %v7932_v7 }
 0x572   :  { %5244 = vpow2.f32 %v4686_v10  ;;  %v4684_v13 = vmul.f32 -1.442695, %v1742_v34  ;;  %vm4008_vm5 = vweird.f32 %v5239_v9  ;;  %v4685_v20 = vmul.f32 -1.442695, %v1807_v21 }
 0x573   :  { %v4005_v5 = vmul.f32 %v5239_v9, %v4004_v59  ;;  %5246 = vrcp.f32 %v7977_v29  ;;  %v4694_v56 = vmul.f32 -1.442695, %v1875_v0  ;;  %v1940_v63 = vadd.f32 %v1939_v1, %v7096_v38 }
 0x574   :  { %v5243_v50 = vpop.eup %5242  ;;  %5248 = vpow2.f32 %v4687_v25  ;;  %vm4007_vm6 = vweird.f32 %v7932_v7  ;;  %vm4012_vm7 = vcmp.eq.f32.partialorder %v4011_v19, 8.507059e+37  ;;  %v4014_v8 = vor.u32 1.1754944e-38, %v4013_v53 }
 0x575   :  { %v4006_v30 = vadd.f32 %v5239_v9, %v4005_v5  ;;  %v3958_v39 = vmul.f32 %v5243_v50, %v7959_v60  ;;  %vm4009_vm9 = vmor %vm4007_vm6, %vm4008_vm5  ;;  %v3966_v26 = vand.u32 2147483647, %v7959_v60  ;;  %v3968_v6 = vand.u32 2147483648, %v7959_v60 }
 0x576   :  { %5250 = vpow2.f32 %v4684_v13  ;;  %vm3962_vm12 = vweird.f32 %v7959_v60  ;;  %v4695_v7 = vmul.f32 -1.442695, %v1940_v63  ;;  %v1745_v4 = vadd.f32 %v1744_v2, %v7098_v47 }
 0x577   :  { %v4010_v51 = vsel %vm4009_vm9, %v5239_v9, %v4006_v30  ;;  %v3959_v35 = vsub.f32 1.0, %v3958_v39  ;;  %5252 = vpow2.f32 %v4685_v20  ;;  %vm3963_vm8 = vweird.f32 %v5243_v50 }
 0x578   :  { %v5245_v16 = vpop.eup %5244  ;;  %v4015_v57 = vsel %vm4012_vm7, %v4014_v8, %v4010_v51  ;;  %5254 = vpow2.f32 %v4694_v56  ;;  %v1810_v54 = vadd.f32 %v1809_v24, %v7113_v46  ;;  %vm7991_vm10 = vcmp.eq.f32.partialorder %v3966_v26, 8.507059e+37  ;;  %vm3964_vm11 = vmor %vm3962_vm12, %vm3963_vm8 }
 0x579   :  { %v5247_v36 = vpop.eup %5246  ;;  %4480 = vst [vmem:[#allocation10 + $0x338] sm:$0xff] %v4015_v57  ;;  %v3960_v41 = vmul.f32 %v5243_v50, %v3959_v35  ;;  %v7988_v37 = vadd.f32 1.0, %v5245_v16  ;;  %v3969_v14 = vor.u32 1.1754944e-38, %v3968_v6  ;;  %v3981_v42 = vand.u32 2147483647, %v7977_v29 }
 0x57a   :  { %v5249_v55 = vpop.eup %5248  ;;  %v3973_v27 = vmul.f32 %v5247_v36, %v7977_v29  ;;  %v3983_v22 = vand.u32 2147483648, %v7977_v29  ;;  %v1878_v43 = vadd.f32 %v1877_v17, %v7074_v3  ;;  %vm3977_vm13 = vweird.f32 %v7977_v29 }
 0x57b   :  { %v3961_v40 = vadd.f32 %v5243_v50, %v3960_v41  ;;  %5256 = vrcp.f32 %v7988_v37  ;;  %v8003_v49 = vadd.f32 1.0, %v5249_v55  ;;  %v4692_v28 = vmul.f32 -1.442695, %v1745_v4 }
 0x57c   :  { %v5251_v23 = vpop.eup %5250  ;;  %v3974_v12 = vsub.f32 1.0, %v3973_v27  ;;  %5258 = vpow2.f32 %v4695_v7  ;;  %v4693_v48 = vmul.f32 -1.442695, %v1810_v54  ;;  %vm3978_vm14 = vweird.f32 %v5247_v36 }
 0x57d   :  { %v5253_v33 = vpop.eup %5252  ;;  %v3965_v61 = vsel %vm3964_vm11, %v5243_v50, %v3961_v40  ;;  %v8005_v52 = vadd.f32 1.0, %v5251_v23  ;;  %5260 = vrcp.f32 %v8003_v49  ;;  %vm8010_vm15 = vcmp.eq.f32.partialorder %v3981_v42, 8.507059e+37  ;;  %vm3979_vm0 = vmor %vm3977_vm13, %vm3978_vm14 }
 0x57e   :  { %v5255_v9 = vpop.eup %5254  ;;  %v3970_v3 = vsel %vm7991_vm10, %v3969_v14, %v3965_v61  ;;  %v3975_v62 = vmul.f32 %v5247_v36, %v3974_v12  ;;  %v3984_v11 = vor.u32 1.1754944e-38, %v3983_v22  ;;  %v4702_v34 = vmul.f32 -1.442695, %v1878_v43 }
 0x57f   :  { %4477 = vst [vmem:[#allocation10 + $0x320] sm:$0xff] %v3970_v3  ;;  %5262 = vrcp.f32 %v8005_v52  ;;  %v4116_v32 = vand.u32 2147483647, %v7988_v37  ;;  %v8017_v44 = vadd.f32 %v1942_v31, %v7096_v38  ;;  %vm4112_vm1 = vweird.f32 %v7988_v37 }
 0x580   :  { %v3976_v58 = vadd.f32 %v5247_v36, %v3975_v62  ;;  %5264 = vpow2.f32 %v4692_v28  ;;  %v4118_v15 = vand.u32 2147483648, %v7988_v37  ;;  %v8023_v18 = vadd.f32 1.0, %v5253_v33 }
 0x581   :  { %v5257_v21 = vpop.eup %5256  ;;  %v8025_v19 = vadd.f32 1.0, %v5255_v9  ;;  %v4131_v59 = vand.u32 2147483647, %v8003_v49  ;;  %5266 = vpow2.f32 %v4693_v48  ;;  %v4133_v29 = vand.u32 2147483648, %v8003_v49 }
 0x582   :  { %v3980_v10 = vsel %vm3979_vm0, %v5247_v36, %v3976_v58  ;;  %v4108_v0 = vmul.f32 %v5257_v21, %v7988_v37  ;;  %v5259_v38 = vpop.eup %5258  ;;  %v4086_v1 = vand.u32 2147483647, %v8005_v52  ;;  %5268 = vrcp.f32 %v8023_v18 }
 0x583   :  { %v3985_v25 = vsel %vm8010_vm15, %v3984_v11, %v3980_v10  ;;  %v5261_v53 = vpop.eup %5260  ;;  %vm8034_vm2 = vcmp.eq.f32.partialorder %v4116_v32, 8.507059e+37  ;;  %v4088_v20 = vand.u32 2147483648, %v8005_v52  ;;  %5270 = vrcp.f32 %v8025_v19 }
 0x584   :  { %4478 = vst [vmem:[#allocation10 + $0x328] sm:$0xff] %v3985_v25  ;;  %v4109_v13 = vsub.f32 1.0, %v4108_v0  ;;  %v4119_v56 = vor.u32 1.1754944e-38, %v4118_v15  ;;  %v4123_v63 = vmul.f32 %v5261_v53, %v8003_v49  ;;  %vm4127_vm3 = vweird.f32 %v8003_v49 }
 0x585   :  { %v5263_v50 = vpop.eup %5262  ;;  %5272 = vpow2.f32 %v4702_v34  ;;  %vm4113_vm4 = vweird.f32 %v5257_v21  ;;  %vm4082_vm5 = vweird.f32 %v8005_v52  ;;  %vm8044_vm6 = vcmp.eq.f32.partialorder %v4131_v59, 8.507059e+37  ;;  %v1747_v59 = vpop.f32.mrf.mxu2 }
 0x586   :  { %v5265_v30 = vpop.eup %5264  ;;  %v4110_v39 = vmul.f32 %v5257_v21, %v4109_v13  ;;  %v4078_v2 = vmul.f32 %v5263_v50, %v8005_v52  ;;  %v4124_v8 = vsub.f32 1.0, %v4123_v63  ;;  %v4134_v6 = vor.u32 1.1754944e-38, %v4133_v29  ;;  %vm4114_vm9 = vmor %vm4112_vm1, %vm4113_vm4  ;;  %v1812_v29 = vpop.f32.mrf.mxu3 }
 0x587   :  { %vm8048_vm7 = vcmp.eq.f32.partialorder %v4086_v1, 8.507059e+37  ;;  %v5267_v51 = vpop.eup %5266  ;;  %v4089_v57 = vor.u32 1.1754944e-38, %v4088_v20  ;;  %v8052_v7 = vadd.f32 1.0, %v5259_v38  ;;  %vm4128_vm12 = vweird.f32 %v5261_v53 }
 0x588   :  { %v4111_v35 = vadd.f32 %v5257_v21, %v4110_v39  ;;  %v4079_v16 = vsub.f32 1.0, %v4078_v2  ;;  %v5269_v4 = vpop.eup %5268  ;;  %v4125_v17 = vmul.f32 %v5261_v53, %v4124_v8  ;;  %vm4083_vm8 = vweird.f32 %v5263_v50  ;;  %vm4129_vm10 = vmor %vm4127_vm3, %vm4128_vm12 }
 0x589   :  { %v4101_v36 = vand.u32 2147483647, %v8023_v18  ;;  %v5271_v41 = vpop.eup %5270  ;;  %v4093_v45 = vmul.f32 %v5269_v4, %v8023_v18  ;;  %v8058_v14 = vadd.f32 1.0, %v5265_v30  ;;  %v4103_v37 = vand.u32 2147483648, %v8023_v18  ;;  %vm4084_vm11 = vmor %vm4082_vm5, %vm4083_vm8 }
 0x58a   :  { %v4115_v54 = vsel %vm4114_vm9, %v5257_v21, %v4111_v35  ;;  %v4080_v55 = vmul.f32 %v5263_v50, %v4079_v16  ;;  %v4126_v40 = vadd.f32 %v5261_v53, %v4125_v17  ;;  %v4228_v22 = vmul.f32 %v5271_v41, %v8025_v19 }
 0x58b   :  { %v5273_v27 = vpop.eup %5272  ;;  %v4120_v42 = vsel %vm8034_vm2, %v4119_v56, %v4115_v54  ;;  %v4094_v23 = vsub.f32 1.0, %v4093_v45  ;;  %v4238_v12 = vand.u32 2147483648, %v8025_v19  ;;  %5274 = vrcp.f32 %v8052_v7 }
 0x58c   :  { %4487 = vst [vmem:[#allocation10 + $0x370] sm:$0xff] %v4120_v42  ;;  %v4081_v43 = vadd.f32 %v5263_v50, %v4080_v55  ;;  %v4130_v28 = vsel %vm4129_vm10, %v5261_v53, %v4126_v40  ;;  %vm4098_vm13 = vweird.f32 %v5269_v4  ;;  %v4229_v33 = vsub.f32 1.0, %v4228_v22 }
 0x58d   :  { %v8071_v61 = vadd.f32 1.0, %v5267_v51  ;;  %v4135_v48 = vsel %vm8044_vm6, %v4134_v6, %v4130_v28  ;;  %v4095_v31 = vmul.f32 %v5269_v4, %v4094_v23  ;;  %5276 = vrcp.f32 %v8058_v14 }
 0x58e   :  { %v4085_v49 = vsel %vm4084_vm11, %v5263_v50, %v4081_v43  ;;  %4488 = vst [vmem:[#allocation10 + $0x378] sm:$0xff] %v4135_v48  ;;  %v4230_v3 = vmul.f32 %v5271_v41, %v4229_v33  ;;  %vm4233_vm14 = vweird.f32 %v5271_v41  ;;  %v4236_v52 = vand.u32 2147483647, %v8025_v19 }
 0x58f   :  { %v4090_v9 = vsel %vm8048_vm7, %v4089_v57, %v4085_v49  ;;  %v4096_v62 = vadd.f32 %v5269_v4, %v4095_v31  ;;  %vm4097_vm15 = vweird.f32 %v8023_v18  ;;  %vm4232_vm0 = vweird.f32 %v8025_v19 }
 0x590   :  { %4485 = vst [vmem:[#allocation10 + $0x360] sm:$0xff] %v4090_v9  ;;  %v8081_v60 = vadd.f32 1.0, %v5273_v27  ;;  %vm4099_vm1 = vmor %vm4097_vm15, %vm4098_vm13  ;;  %v4104_v11 = vor.u32 1.1754944e-38, %v4103_v37  ;;  %v4231_v34 = vadd.f32 %v5271_v41, %v4230_v3  ;;  %v4251_v58 = vand.u32 2147483647, %v8052_v7 }
 0x591   :  { %5278 = vrcp.f32 %v8071_v61  ;;  %v5275_v32 = vpop.eup %5274  ;;  %v4100_v21 = vsel %vm4099_vm1, %v5269_v4, %v4096_v62  ;;  %vm4102_vm2 = vcmp.eq.f32.partialorder %v4101_v36, 8.507059e+37  ;;  %vm4234_vm3 = vmor %vm4232_vm0, %vm4233_vm14  ;;  %v4239_v15 = vor.u32 1.1754944e-38, %v4238_v12 }
 0x592   :  { %v4253_v18 = vand.u32 2147483648, %v8052_v7  ;;  %v4105_v10 = vsel %vm4102_vm2, %v4104_v11, %v4100_v21  ;;  %v4235_v19 = vsel %vm4234_vm3, %v5271_v41, %v4231_v34  ;;  %vm4237_vm4 = vcmp.eq.f32.partialorder %v4236_v52, 8.507059e+37 }
 0x593   :  { %v4243_v0 = vmul.f32 %v5275_v32, %v8052_v7  ;;  %v5277_v38 = vpop.eup %5276  ;;  %4486 = vst [vmem:[#allocation10 + $0x368] sm:$0xff] %v4105_v10  ;;  %v4240_v25 = vsel %vm4237_vm4, %v4239_v15, %v4235_v19  ;;  %5280 = vrcp.f32 %v8081_v60  ;;  %vm4247_vm5 = vweird.f32 %v8052_v7 }
 0x594   :  { %4495 = vst [vmem:[#allocation10 + $0x3b0] sm:$0xff] %v4240_v25  ;;  %vm8091_vm6 = vcmp.eq.f32.partialorder %v4251_v58, 8.507059e+37  ;;  %v4198_v13 = vmul.f32 %v5277_v38, %v8058_v14  ;;  %v4254_v5 = vor.u32 1.1754944e-38, %v4253_v18  ;;  %v4208_v20 = vand.u32 2147483648, %v8058_v14 }
 0x595   :  { %v4244_v1 = vsub.f32 1.0, %v4243_v0  ;;  %v4703_v50 = vmul.f32 -1.442695, %v8017_v44  ;;  %v1748_v56 = vadd.f32 %v1747_v59, %v7098_v47  ;;  %vm4248_vm7 = vweird.f32 %v5275_v32 }
 0x596   :  { %v4199_v39 = vsub.f32 1.0, %v4198_v13  ;;  %v1813_v2 = vadd.f32 %v1812_v29, %v7113_v46  ;;  %vm4202_vm9 = vweird.f32 %v8058_v14  ;;  %vm4203_vm12 = vweird.f32 %v5277_v38  ;;  %vm4249_vm8 = vmor %vm4247_vm5, %vm4248_vm7 }
 0x597   :  { %v5279_v63 = vpop.eup %5278  ;;  %v4245_v30 = vmul.f32 %v5275_v32, %v4244_v1  ;;  %v4206_v8 = vand.u32 2147483647, %v8058_v14  ;;  %5282 = vpow2.f32 %v4703_v50  ;;  %v4700_v51 = vmul.f32 -1.442695, %v1748_v56  ;;  %vm4204_vm10 = vmor %vm4202_vm9, %vm4203_vm12 }
 0x598   :  { %v4213_v26 = vmul.f32 %v5279_v63, %v8071_v61  ;;  %v4200_v24 = vmul.f32 %v5277_v38, %v4199_v39  ;;  %v4209_v47 = vor.u32 1.1754944e-38, %v4208_v20  ;;  %v4221_v16 = vand.u32 2147483647, %v8071_v61 }
 0x599   :  { %v4246_v6 = vadd.f32 %v5275_v32, %v4245_v30  ;;  %v5281_v44 = vpop.eup %5280  ;;  %v4701_v46 = vmul.f32 -1.442695, %v1813_v2  ;;  %v4223_v17 = vand.u32 2147483648, %v8071_v61  ;;  %vm4218_vm11 = vweird.f32 %v5279_v63 }
 0x59a   :  { %v4214_v35 = vsub.f32 1.0, %v4213_v26  ;;  %v4201_v4 = vadd.f32 %v5277_v38, %v4200_v24  ;;  %v4348_v36 = vmul.f32 %v5281_v44, %v8081_v60  ;;  %5284 = vpow2.f32 %v4700_v51 }
 0x59b   :  { %v4250_v57 = vsel %vm4249_vm8, %v5275_v32, %v4246_v6  ;;  %vm4207_vm13 = vcmp.eq.f32.partialorder %v4206_v8, 8.507059e+37  ;;  %5286 = vpow2.f32 %v4701_v46  ;;  %vm4217_vm14 = vweird.f32 %v8071_v61 }
 0x59c   :  { %v4255_v41 = vsel %vm8091_vm6, %v4254_v5, %v4250_v57  ;;  %v4215_v7 = vmul.f32 %v5279_v63, %v4214_v35  ;;  %v4205_v54 = vsel %vm4204_vm10, %v5277_v38, %v4201_v4  ;;  %v4349_v55 = vsub.f32 1.0, %v4348_v36  ;;  %vm4219_vm15 = vmor %vm4217_vm14, %vm4218_vm11 }
 0x59d   :  { %4496 = vst [vmem:[#allocation10 + $0x3b8] sm:$0xff] %v4255_v41  ;;  %v4210_v45 = vsel %vm4207_vm13, %v4209_v47, %v4205_v54  ;;  %v4358_v42 = vand.u32 2147483648, %v8081_v60  ;;  %v5283_v40 = vpop.eup %5282  ;;  %v4224_v37 = vor.u32 1.1754944e-38, %v4223_v17  ;;  %vm4353_vm0 = vweird.f32 %v5281_v44 }
 0x59e   :  { %v4216_v27 = vadd.f32 %v5279_v63, %v4215_v7  ;;  %4493 = vst [vmem:[#allocation10 + $0x3a0] sm:$0xff] %v4210_v45  ;;  %v4350_v14 = vmul.f32 %v5281_v44, %v4349_v55  ;;  %v4356_v22 = vand.u32 2147483647, %v8081_v60  ;;  %vm4222_vm1 = vcmp.eq.f32.partialorder %v4221_v16, 8.507059e+37 }
 0x59f   :  { %v2456_v23 = vadd.f32 1.0, %v5283_v40  ;;  %vm4352_vm2 = vweird.f32 %v8081_v60  ;;  %v4359_v61 = vor.u32 1.1754944e-38, %v4358_v42 }
 0x5a0   :  { %v4220_v43 = vsel %vm4219_vm15, %v5279_v63, %v4216_v27  ;;  %v4351_v28 = vadd.f32 %v5281_v44, %v4350_v14  ;;  %v5285_v33 = vpop.eup %5284  ;;  %vm4354_vm3 = vmor %vm4352_vm2, %vm4353_vm0  ;;  %vm4357_vm4 = vcmp.eq.f32.partialorder %v4356_v22, 8.507059e+37 }
 0x5a1   :  { %v4225_v12 = vsel %vm4222_vm1, %v4224_v37, %v4220_v43  ;;  %5288 = vrcp.f32 %v2456_v23  ;;  %v5287_v48 = vpop.eup %5286  ;;  %v2453_v31 = vadd.f32 1.0, %v5285_v33  ;;  %v4371_v11 = vand.u32 2147483647, %v2456_v23 }
 0x5a2   :  { %4494 = vst [vmem:[#allocation10 + $0x3a8] sm:$0xff] %v4225_v12  ;;  %v4355_v49 = vsel %vm4354_vm3, %v5281_v44, %v4351_v28  ;;  %v2454_v3 = vadd.f32 1.0, %v5287_v48  ;;  %v4373_v60 = vand.u32 2147483648, %v2456_v23  ;;  %vm4367_vm6 = vweird.f32 %v2456_v23 }
 0x5a3   :  { %v4360_v9 = vsel %vm4357_vm4, %v4359_v61, %v4355_v49  ;;  %5290 = vrcp.f32 %v2453_v31  ;;  %vm4372_vm7 = vcmp.eq.f32.partialorder %v4371_v11, 8.507059e+37  ;;  %v4328_v59 = vand.u32 2147483648, %v2453_v31 }
 0x5a4   :  { %4503 = vst [vmem:[#allocation10 + $0x3f0] sm:$0xff] %v4360_v9  ;;  %5292 = vrcp.f32 %v2454_v3  ;;  %v4374_v0 = vor.u32 1.1754944e-38, %v4373_v60  ;;  %v4326_v29 = vand.u32 2147483647, %v2453_v31  ;;  %v4343_v1 = vand.u32 2147483648, %v2454_v3 }
 0x5a5   :  { %v4341_v5 = vand.u32 2147483647, %v2454_v3  ;;  %vm4322_vm10 = vweird.f32 %v2453_v31  ;;  %v4329_v56 = vor.u32 1.1754944e-38, %v4328_v59  ;;  %vm4337_vm13 = vweird.f32 %v2454_v3 }
 0x5a6   :  { %vm4327_vm14 = vcmp.eq.f32.partialorder %v4326_v29, 8.507059e+37  ;;  %v4344_v39 = vor.u32 1.1754944e-38, %v4343_v1 }
 0x5a7   :  { %v5289_v52 = vpop.eup %5288  ;;  %vm4342_vm0 = vcmp.eq.f32.partialorder %v4341_v5, 8.507059e+37 }
 0x5a8   :  { %v4363_v62 = vmul.f32 %v5289_v52, %v2456_v23  ;;  %vm4368_vm5 = vweird.f32 %v5289_v52 }
 0x5a9   :  { %v5291_v34 = vpop.eup %5290  ;;  %vm4369_vm9 = vmor %vm4367_vm6, %vm4368_vm5 }
 0x5aa   :  { %v4364_v58 = vsub.f32 1.0, %v4363_v62  ;;  %v5293_v32 = vpop.eup %5292  ;;  %v4318_v21 = vmul.f32 %v5291_v34, %v2453_v31  ;;  %vm4323_vm12 = vweird.f32 %v5291_v34 }
 0x5ab   :  { %v4333_v18 = vmul.f32 %v5293_v32, %v2454_v3  ;;  %vm4338_vm8 = vweird.f32 %v5293_v32  ;;  %vm4324_vm11 = vmor %vm4322_vm10, %vm4323_vm12 }
 0x5ac   :  { %v4365_v15 = vmul.f32 %v5289_v52, %v4364_v58  ;;  %v4319_v10 = vsub.f32 1.0, %v4318_v21  ;;  %vm4339_vm15 = vmor %vm4337_vm13, %vm4338_vm8 }
 0x5ad   :  { %v4334_v38 = vsub.f32 1.0, %v4333_v18 }
 0x5ae   :  { %v4366_v19 = vadd.f32 %v5289_v52, %v4365_v15  ;;  %v4320_v25 = vmul.f32 %v5291_v34, %v4319_v10 }
 0x5af   :  { %v4335_v13 = vmul.f32 %v5293_v32, %v4334_v38 }
 0x5b0   :  { %v4370_v53 = vsel %vm4369_vm9, %v5289_v52, %v4366_v19  ;;  %v4321_v50 = vadd.f32 %v5291_v34, %v4320_v25 }
 0x5b1   :  { %v4375_v20 = vsel %vm4372_vm7, %v4374_v0, %v4370_v53  ;;  %v4336_v63 = vadd.f32 %v5293_v32, %v4335_v13 }
 0x5b2   :  { %4504 = vst [vmem:[#allocation10 + $0x3f8] sm:$0xff] %v4375_v20  ;;  %v4325_v30 = vsel %vm4324_vm11, %v5291_v34, %v4321_v50 }
 0x5b3   :  { %v4330_v2 = vsel %vm4327_vm14, %v4329_v56, %v4325_v30  ;;  %v4340_v8 = vsel %vm4339_vm15, %v5293_v32, %v4336_v63 }
 0x5b4   :  { %4501 = vst [vmem:[#allocation10 + $0x3e0] sm:$0xff] %v4330_v2  ;;  %v4345_v26 = vsel %vm4342_vm0, %v4344_v39, %v4340_v8 }
 0x5b5   :  { %4502 = vst [vmem:[#allocation10 + $0x3e8] sm:$0xff] %v4345_v26 }
 0x5b6   :  { %4533 = dma.vmem_to_hbm [thread:$0]  %s4526_s25, 16384, %s4528_s16, [#allocation4], %s5453_s2, %s5453_s2, %s5454_s29  }
 0x5b7   :  { %5445 = dma.done.wait [#allocation4], 16384  }
 0x5b8   :  { %5446 = vsyncadd [#allocation4], 4294950912 }
 0x5b9   :  { %5447 = dma.done.wait [#allocation12], 2048  }
 0x5ba   :  { %5448 = vsyncadd [#allocation12], 4294965248 }
 0x5bb   :  { %4555 = vsyncpa [#allocation3], 1 }
 0x5bc   :  { %4556 = vsyncpa [#allocation6], 1 }
 0x5bd   :  { %4557 = vsyncpa [#allocation9], 1 }
 0x5be   :  { %4558 = vsyncpa [#allocation4], 1 }
 0x5bf   :  { %4559 = vsyncpa [#allocation12], 1 }

</bundles_post_ra>
